<compile_context>
chip_gen: v5e
topology: v5e:2x2
jax: 0.10.0
libtpu: 0.0.40
codegen_flags: <defaults>
</compile_context>

<pallas_src>
import jax
import jax.numpy as jnp
from jax.experimental import pallas as pl
from jax.experimental.pallas import tpu as pltpu


def bottleneck_kernel(x_ref, wcat_ref, bcat_ref, w3_ref, b3_ref, w2_ref, b2_ref,
                      o_ref, h1p_ref, patch_ref):
    # x_ref:     (1, H, W, Cin)     bf16, full image (VMEM-resident across row blocks)
    # o_ref:     (1, TH, W, Cout)   f32, one row block
    # h1p_ref:   (TH+2, W+2, Cmid)  bf16 SAME-padded h1 tile (1-px halo)
    # patch_ref: (TH*W, 9*Cmid)     bf16 im2col buffer
    _, H, W, Cin = x_ref.shape
    _, TH, _, Cout = o_ref.shape
    Cmid = w3_ref.shape[1]

    r = pl.program_id(1)
    nrb = pl.num_programs(1)
    row0 = pl.multiple_of(r * TH, TH)

    # --- fused conv1x1(in->mid) + dim_equalizer conv1x1(in->out): one MXU pass
    # wcat = [weq | w1] so the w1 lane slice starts at Cout (multiple of 128).
    xi = x_ref[0, pl.ds(row0, TH), :, :]                       # (TH, W, Cin) bf16
    hcat = jnp.dot(xi.reshape(TH * W, Cin), wcat_ref[...],
                   preferred_element_type=jnp.float32)
    hcat = hcat + bcat_ref[0]                                  # f32 bias add (VPU)

    # Park the equalizer/residual path in the VMEM-resident output block right
    # away so it is not held live in vregs across the 3x3 / final matmuls.
    o_ref[...] = hcat[:, :Cout].reshape(1, TH, W, Cout).astype(o_ref.dtype)
    h1 = jnp.maximum(hcat[:, Cout:], 0.0)                      # (TH*W, Cmid) f32

    # --- SAME-padded h1 tile: zero only the left/right halo columns, write the
    # interior, and compute the 1-row top/bottom halo from neighbour rows of x.
    zcol = jnp.zeros((TH + 2, 1, Cmid), jnp.bfloat16)
    h1p_ref[:, pl.ds(0, 1), :] = zcol
    h1p_ref[:, pl.ds(W + 1, 1), :] = zcol
    h1p_ref[pl.ds(1, TH), pl.ds(1, W), :] = (
        h1.reshape(TH, W, Cmid).astype(jnp.bfloat16))

    def halo_row(idx, keep):
        xr = x_ref[0, pl.ds(idx, 1), :, :].reshape(W, Cin)     # (W, Cin) bf16
        hh = jnp.dot(xr, wcat_ref[...], preferred_element_type=jnp.float32)
        hh = jnp.maximum(hh[:, Cout:] + bcat_ref[0][Cout:], 0.0)
        return jnp.where(keep, hh, 0.0).astype(jnp.bfloat16)   # (W, Cmid)

    h1p_ref[0, pl.ds(1, W), :] = halo_row(jnp.maximum(row0 - 1, 0), r > 0)
    h1p_ref[TH + 1, pl.ds(1, W), :] = halo_row(
        jnp.minimum(row0 + TH, H - 1), r < nrb - 1)

    # --- conv3x3 (mid->mid, stride=1, pad=1) + ReLU via im2col in VMEM scratch
    # patches[:, (ky*3+kx)*Cmid + c] = h1_padded[y+ky, x+kx, c]  (matches w3
    # HWIO reshaped to (9*Cmid, Cmid) in the wrapper).
    # TODO(synk): on v7x use 9 accumulating K=Cmid matmuls (MRB) instead.
    for k in range(9):
        ky, kx = k // 3, k % 3
        tap = h1p_ref[pl.ds(ky, TH), pl.ds(kx, W), :]          # (TH, W, Cmid) bf16
        patch_ref[:, pl.ds(k * Cmid, Cmid)] = tap.reshape(TH * W, Cmid)

    h2 = jnp.dot(patch_ref[...], w3_ref[...], preferred_element_type=jnp.float32)
    h2 = jnp.maximum(h2 + b3_ref[0], 0.0)                      # (TH*W, Cmid) f32

    # --- conv1x1 (mid->out) + ReLU, then residual add into the parked eq.
    h3 = jnp.dot(h2.astype(jnp.bfloat16), w2_ref[...],
                 preferred_element_type=jnp.float32)
    h3 = jnp.maximum(h3 + b2_ref[0], 0.0)                      # (TH*W, Cout) f32
    o_ref[...] = o_ref[...] + h3.reshape(1, TH, W, Cout).astype(o_ref.dtype)


def bottleneck_pallas(x_nhwc, params, *, row_tile=8):
    """x_nhwc: (N, H, W, Cin) float32. Returns (N, H, W, Cout) float32."""
    w1, b1, w3, b3, w2, b2, weq, beq = params
    N, H, W, Cin = x_nhwc.shape
    Cmid = w1.shape[1]
    Cout = w2.shape[1]

    TH = min(row_tile, H)
    assert H % TH == 0, (H, TH)
    RB = H // TH

    # bf16 activations at the boundary (halves HBM<->VMEM DMA for x).
    x_bf = x_nhwc.astype(jnp.bfloat16)

    # Fuse conv1 + dim_equalizer weights; bf16 matmul weights, f32 biases.
    wcat = jnp.concatenate([weq, w1], axis=1).astype(jnp.bfloat16)   # (Cin, Cout+Cmid)
    bcat = jnp.concatenate([beq, b1]).reshape(1, Cout + Cmid).astype(jnp.float32)
    w3f = w3.reshape(9 * Cmid, Cmid).astype(jnp.bfloat16)            # HWIO -> (9*Cmid, Cmid)
    b3r = b3.reshape(1, Cmid).astype(jnp.float32)
    w2b = w2.astype(jnp.bfloat16)
    b2r = b2.reshape(1, Cout).astype(jnp.float32)

    flops = 2 * N * H * W * (Cin * (Cout + Cmid) + 9 * Cmid * Cmid + Cmid * Cout)
    bytes_accessed = (x_bf.size * 2 + N * H * W * Cout * 4
                      + (wcat.size + w3f.size + w2b.size) * 2
                      + (bcat.size + b3r.size + b2r.size) * 4)

    out = pl.pallas_call(
        bottleneck_kernel,
        out_shape=jax.ShapeDtypeStruct((N, H, W, Cout), jnp.float32),
        grid_spec=pltpu.PrefetchScalarGridSpec(
            num_scalar_prefetch=0,
            grid=(N, RB),
            in_specs=[
                # x: full image per batch element; index map constant over the
                # row axis, so Pallas keeps it VMEM-resident (no re-fetch).
                pl.BlockSpec((1, H, W, Cin), lambda n, r: (n, 0, 0, 0)),
                pl.BlockSpec((Cin, Cout + Cmid), lambda n, r: (0, 0)),
                pl.BlockSpec((1, Cout + Cmid), lambda n, r: (0, 0)),
                pl.BlockSpec((9 * Cmid, Cmid), lambda n, r: (0, 0)),
                pl.BlockSpec((1, Cmid), lambda n, r: (0, 0)),
                pl.BlockSpec((Cmid, Cout), lambda n, r: (0, 0)),
                pl.BlockSpec((1, Cout), lambda n, r: (0, 0)),
            ],
            out_specs=pl.BlockSpec((1, TH, W, Cout), lambda n, r: (n, r, 0, 0)),
            scratch_shapes=[
                pltpu.VMEM((TH + 2, W + 2, Cmid), jnp.bfloat16),   # padded h1 tile
                pltpu.VMEM((TH * W, 9 * Cmid), jnp.bfloat16),      # im2col buffer
            ],
        ),
        compiler_params=pltpu.CompilerParams(
            dimension_semantics=("parallel", "arbitrary"),
            vmem_limit_bytes=32 * 1024 * 1024),
        cost_estimate=pl.CostEstimate(flops=flops, transcendentals=0,
                                      bytes_accessed=bytes_accessed),
    )(x_bf, wcat, bcat, w3f, b3r, w2b, b2r)
    return out


def bottleneck_pallas_nchw(x_nchw, params):
    """PyTorch-layout convenience adapter (adds two transposes; prefer NHWC)."""
    out = bottleneck_pallas(jnp.transpose(x_nchw, (0, 2, 3, 1)), params)
    return jnp.transpose(out, (0, 3, 1, 2))


def bottleneck_ref(x_nhwc, params, mm_dtype=jnp.float32):
    """Pure-JAX NHWC reference.  mm_dtype controls matmul operand precision so
    the kernel (bf16 operands, f32 accumulation) can be checked tightly."""
    w1, b1, w3, b3, w2, b2, weq, beq = params
    N, H, W, Cin = x_nhwc.shape
    Cmid, Cout = w1.shape[1], w2.shape[1]
    c = lambda a: a.astype(mm_dtype)
    x2d = x_nhwc.reshape(-1, Cin)
    h1 = jax.nn.relu(
        jnp.dot(c(x2d), c(w1), preferred_element_type=jnp.float32) + b1)
    h1 = h1.reshape(N, H, W, Cmid)
    h2 = jax.lax.conv_general_dilated(
        c(h1), c(w3), window_strides=(1, 1), padding='SAME',
        dimension_numbers=('NHWC', 'HWIO', 'NHWC'),
        preferred_element_type=jnp.float32)
    h2 = jax.nn.relu(h2 + b3)
    h3 = jax.nn.relu(
        jnp.dot(c(h2.reshape(-1, Cmid)), c(w2),
                preferred_element_type=jnp.float32) + b2)
    eq = jnp.dot(c(x2d), c(weq), preferred_element_type=jnp.float32) + beq
    return (h3 + eq).reshape(N, H, W, Cout)


def init_params(key, in_dim, mid_dim, out_dim):
    ks = jax.random.split(key, 8)
    scale = 0.1
    w1 = scale * jax.random.normal(ks[0], (in_dim, mid_dim), jnp.float32)
    b1 = scale * jax.random.normal(ks[1], (mid_dim,), jnp.float32)
    w3 = scale * jax.random.normal(ks[2], (3, 3, mid_dim, mid_dim), jnp.float32)  # HWIO
    b3 = scale * jax.random.normal(ks[3], (mid_dim,), jnp.float32)
    w2 = scale * jax.random.normal(ks[4], (mid_dim, out_dim), jnp.float32)
    b2 = scale * jax.random.normal(ks[5], (out_dim,), jnp.float32)
    weq = scale * jax.random.normal(ks[6], (in_dim, out_dim), jnp.float32)
    beq = scale * jax.random.normal(ks[7], (out_dim,), jnp.float32)
    return (w1, b1, w3, b3, w2, b2, weq, beq)


if __name__ == "__main__":
    # Channel sizes match the module's first bottleneck (base_dim=64:
    # in=64, mid=64, out=256); spatial kept small for the test.
    N, Cin, Cmid, Cout, H, W = 2, 64, 64, 256, 16, 16
    key = jax.random.PRNGKey(0)
    kx, kp = jax.random.split(key)
    x = jax.random.normal(kx, (N, H, W, Cin), jnp.float32)   # NHWC
    params = init_params(kp, Cin, Cmid, Cout)

    out = jax.block_until_ready(bottleneck_pallas(x, params))
    assert out.shape == (N, H, W, Cout), out.shape

    # Matched-precision reference (bf16 matmul operands, f32 accumulation).
    ref_bf16 = jax.block_until_ready(bottleneck_ref(x, params, jnp.bfloat16))
    assert jnp.allclose(out, ref_bf16, atol=1e-3, rtol=1e-3), \
        float(jnp.max(jnp.abs(out - ref_bf16)))

    # Full-f32 reference: loose tolerance (kernel matmul operands are bf16).
    ref_f32 = jax.block_until_ready(bottleneck_ref(x, params, jnp.float32))
    assert jnp.allclose(out, ref_f32, atol=1e-1, rtol=1e-1), \
        float(jnp.max(jnp.abs(out - ref_f32)))

    print("KERNEL_OK")
</pallas_src>

<mosaic_0001>
module attributes {stable_mosaic.version = 11 : i64} {
  func.func @bottleneck_kernel(%arg0: i32, %arg1: i32, %arg2: memref<1x16x16x64xbf16, #tpu.memory_space<vmem>>, %arg3: memref<64x320xbf16, #tpu.memory_space<vmem>>, %arg4: memref<1x320xf32, #tpu.memory_space<vmem>>, %arg5: memref<576x64xbf16, #tpu.memory_space<vmem>>, %arg6: memref<1x64xf32, #tpu.memory_space<vmem>>, %arg7: memref<64x256xbf16, #tpu.memory_space<vmem>>, %arg8: memref<1x256xf32, #tpu.memory_space<vmem>>, %arg9: memref<1x8x16x256xf32, #tpu.memory_space<vmem>>, %arg10: memref<10x18x64xbf16, #tpu.memory_space<vmem>>, %arg11: memref<128x576xbf16, #tpu.memory_space<vmem>>) attributes {dimension_semantics = [#tpu.dimension_semantics<parallel>, #tpu.dimension_semantics<arbitrary>], iteration_bounds = array<i64: 2, 2>, scalar_prefetch = 0 : i64, scratch_operands = 2 : i64, tpu.core_type = #tpu.core_type<tc>, window_params = [{transform_indices = @transform_0, window_bounds = array<i64: 1, 16, 16, 64>}, {pipeline_mode = #tpu.pipeline_mode<synchronous>, transform_indices = @transform_1, window_bounds = array<i64: 64, 320>}, {pipeline_mode = #tpu.pipeline_mode<synchronous>, transform_indices = @transform_2, window_bounds = array<i64: 1, 320>}, {pipeline_mode = #tpu.pipeline_mode<synchronous>, transform_indices = @transform_3, window_bounds = array<i64: 576, 64>}, {pipeline_mode = #tpu.pipeline_mode<synchronous>, transform_indices = @transform_4, window_bounds = array<i64: 1, 64>}, {pipeline_mode = #tpu.pipeline_mode<synchronous>, transform_indices = @transform_5, window_bounds = array<i64: 64, 256>}, {pipeline_mode = #tpu.pipeline_mode<synchronous>, transform_indices = @transform_6, window_bounds = array<i64: 1, 256>}, {transform_indices = @transform_7, window_bounds = array<i64: 1, 8, 16, 256>}]} {
    %c8_i32 = arith.constant 8 : i32
    %0 = arith.muli %arg1, %c8_i32 : i32
    %1 = tpu.assume_multiple %0, 8 : i32
    %c0 = arith.constant 0 : index
    %2 = arith.index_cast %1 : i32 to index
    %c0_0 = arith.constant 0 : index
    %c0_1 = arith.constant 0 : index
    %3 = vector.load %arg2[%c0, %2, %c0_0, %c0_1] : memref<1x16x16x64xbf16, #tpu.memory_space<vmem>>, vector<1x8x16x64xbf16>
    %4 = vector.shape_cast %3 : vector<1x8x16x64xbf16> to vector<8x16x64xbf16>
    %5 = vector.shape_cast %4 : vector<8x16x64xbf16> to vector<128x64xbf16>
    %c0_2 = arith.constant 0 : index
    %c0_3 = arith.constant 0 : index
    %6 = vector.load %arg3[%c0_2, %c0_3] : memref<64x320xbf16, #tpu.memory_space<vmem>>, vector<64x320xbf16>
    %cst = arith.constant dense<0.000000e+00> : vector<128x320xf32>
    %7 = tpu.matmul %5, %6, %cst {dimension_numbers = #tpu.dot_dimension_numbers<[1], [0], [0], [1], [0, 0, 1, 1], [], []>} : vector<128x64xbf16>, vector<64x320xbf16>, vector<128x320xf32> -> vector<128x320xf32>
    %c0_4 = arith.constant 0 : index
    %c0_5 = arith.constant 0 : index
    %8 = vector.load %arg4[%c0_4, %c0_5] : memref<1x320xf32, #tpu.memory_space<vmem>>, vector<1x320xf32>
    %9 = vector.shape_cast %8 : vector<1x320xf32> to vector<320xf32>
    %10 = vector.shape_cast %9 : vector<320xf32> to vector<1x320xf32>
    %11 = vector.broadcast %10 : vector<1x320xf32> to vector<128x320xf32>
    %12 = arith.addf %7, %11 : vector<128x320xf32>
    %13 = vector.extract_strided_slice %12 {offsets = [0, 0], sizes = [128, 256], strides = [1, 1]} : vector<128x320xf32> to vector<128x256xf32>
    %14 = vector.shape_cast %13 : vector<128x256xf32> to vector<1x8x16x256xf32>
    %c0_6 = arith.constant 0 : index
    %c0_7 = arith.constant 0 : index
    %c0_8 = arith.constant 0 : index
    %c0_9 = arith.constant 0 : index
    %15 = vector.load %arg9[%c0_6, %c0_7, %c0_8, %c0_9] : memref<1x8x16x256xf32, #tpu.memory_space<vmem>>, vector<1x8x16x256xf32>
    tpu.vector_store %arg9[%c0_6, %c0_7, %c0_8, %c0_9], %14 {strides = array<i32>} : memref<1x8x16x256xf32, #tpu.memory_space<vmem>>, vector<1x8x16x256xf32>,
    %16 = vector.extract_strided_slice %12 {offsets = [0, 256], sizes = [128, 64], strides = [1, 1]} : vector<128x320xf32> to vector<128x64xf32>
    %cst_10 = arith.constant 0.000000e+00 : f32
    %17 = vector.broadcast %cst_10 : f32 to vector<128x64xf32>
    %18 = arith.maximumf %16, %17 : vector<128x64xf32>
    %cst_11 = arith.constant 0.000000e+00 : bf16
    %19 = vector.broadcast %cst_11 : bf16 to vector<10x1x64xbf16>
    %c0_12 = arith.constant 0 : index
    %c0_13 = arith.constant 0 : index
    %c0_14 = arith.constant 0 : index
    %20 = vector.load %arg10[%c0_12, %c0_13, %c0_14] : memref<10x18x64xbf16, #tpu.memory_space<vmem>>, vector<10x1x64xbf16>
    tpu.vector_store %arg10[%c0_12, %c0_13, %c0_14], %19 {strides = array<i32>} : memref<10x18x64xbf16, #tpu.memory_space<vmem>>, vector<10x1x64xbf16>,
    %c0_15 = arith.constant 0 : index
    %c17 = arith.constant 17 : index
    %c0_16 = arith.constant 0 : index
    %21 = vector.load %arg10[%c0_15, %c17, %c0_16] : memref<10x18x64xbf16, #tpu.memory_space<vmem>>, vector<10x1x64xbf16>
    tpu.vector_store %arg10[%c0_15, %c17, %c0_16], %19 {strides = array<i32>} : memref<10x18x64xbf16, #tpu.memory_space<vmem>>, vector<10x1x64xbf16>,
    %22 = vector.shape_cast %18 : vector<128x64xf32> to vector<8x16x64xf32>
    %23 = arith.truncf %22 : vector<8x16x64xf32> to vector<8x16x64xbf16>
    %c1 = arith.constant 1 : index
    %c1_17 = arith.constant 1 : index
    %c0_18 = arith.constant 0 : index
    %24 = vector.load %arg10[%c1, %c1_17, %c0_18] : memref<10x18x64xbf16, #tpu.memory_space<vmem>>, vector<8x16x64xbf16>
    tpu.vector_store %arg10[%c1, %c1_17, %c0_18], %23 {strides = array<i32>} : memref<10x18x64xbf16, #tpu.memory_space<vmem>>, vector<8x16x64xbf16>,
    %c1_i32 = arith.constant 1 : i32
    %25 = arith.subi %1, %c1_i32 : i32
    %c0_i32 = arith.constant 0 : i32
    %26 = arith.maxsi %25, %c0_i32 : i32
    %c0_i32_19 = arith.constant 0 : i32
    %27 = arith.cmpi sgt, %arg1, %c0_i32_19 : i32
    %c0_20 = arith.constant 0 : index
    %28 = arith.index_cast %26 : i32 to index
    %c0_21 = arith.constant 0 : index
    %c0_22 = arith.constant 0 : index
    %29 = vector.load %arg2[%c0_20, %28, %c0_21, %c0_22] : memref<1x16x16x64xbf16, #tpu.memory_space<vmem>>, vector<1x1x16x64xbf16>
    %30 = vector.shape_cast %29 : vector<1x1x16x64xbf16> to vector<1x16x64xbf16>
    %31 = vector.shape_cast %30 : vector<1x16x64xbf16> to vector<16x64xbf16>
    %c0_23 = arith.constant 0 : index
    %c0_24 = arith.constant 0 : index
    %32 = vector.load %arg3[%c0_23, %c0_24] : memref<64x320xbf16, #tpu.memory_space<vmem>>, vector<64x320xbf16>
    %cst_25 = arith.constant dense<0.000000e+00> : vector<16x320xf32>
    %33 = tpu.matmul %31, %32, %cst_25 {dimension_numbers = #tpu.dot_dimension_numbers<[1], [0], [0], [1], [0, 0, 1, 1], [], []>} : vector<16x64xbf16>, vector<64x320xbf16>, vector<16x320xf32> -> vector<16x320xf32>
    %34 = vector.extract_strided_slice %33 {offsets = [0, 256], sizes = [16, 64], strides = [1, 1]} : vector<16x320xf32> to vector<16x64xf32>
    %c0_26 = arith.constant 0 : index
    %c0_27 = arith.constant 0 : index
    %35 = vector.load %arg4[%c0_26, %c0_27] : memref<1x320xf32, #tpu.memory_space<vmem>>, vector<1x320xf32>
    %36 = vector.shape_cast %35 : vector<1x320xf32> to vector<320xf32>
    %37 = vector.extract_strided_slice %36 {offsets = [256], sizes = [64], strides = [1]} : vector<320xf32> to vector<64xf32>
    %38 = vector.shape_cast %37 : vector<64xf32> to vector<1x64xf32>
    %39 = vector.broadcast %38 : vector<1x64xf32> to vector<16x64xf32>
    %40 = arith.addf %34, %39 : vector<16x64xf32>
    %cst_28 = arith.constant 0.000000e+00 : f32
    %41 = vector.broadcast %cst_28 : f32 to vector<16x64xf32>
    %42 = arith.maximumf %40, %41 : vector<16x64xf32>
    %cst_29 = arith.constant 0.000000e+00 : f32
    %43 = vector.broadcast %cst_29 : f32 to vector<16x64xf32>
    %44 = arith.select %27, %42, %43 : vector<16x64xf32>
    %45 = arith.truncf %44 : vector<16x64xf32> to vector<16x64xbf16>
    %c0_30 = arith.constant 0 : index
    %c1_31 = arith.constant 1 : index
    %c0_32 = arith.constant 0 : index
    %46 = vector.load %arg10[%c0_30, %c1_31, %c0_32] : memref<10x18x64xbf16, #tpu.memory_space<vmem>>, vector<1x16x64xbf16>
    %47 = vector.shape_cast %46 : vector<1x16x64xbf16> to vector<16x64xbf16>
    %48 = vector.shape_cast %45 : vector<16x64xbf16> to vector<1x16x64xbf16>
    tpu.vector_store %arg10[%c0_30, %c1_31, %c0_32], %48 {strides = array<i32>} : memref<10x18x64xbf16, #tpu.memory_space<vmem>>, vector<1x16x64xbf16>,
    %c8_i32_33 = arith.constant 8 : i32
    %49 = arith.addi %1, %c8_i32_33 : i32
    %c15_i32 = arith.constant 15 : i32
    %50 = arith.minsi %49, %c15_i32 : i32
    %c1_i32_34 = arith.constant 1 : i32
    %51 = arith.cmpi slt, %arg1, %c1_i32_34 : i32
    %c0_35 = arith.constant 0 : index
    %52 = arith.index_cast %50 : i32 to index
    %c0_36 = arith.constant 0 : index
    %c0_37 = arith.constant 0 : index
    %53 = vector.load %arg2[%c0_35, %52, %c0_36, %c0_37] : memref<1x16x16x64xbf16, #tpu.memory_space<vmem>>, vector<1x1x16x64xbf16>
    %54 = vector.shape_cast %53 : vector<1x1x16x64xbf16> to vector<1x16x64xbf16>
    %55 = vector.shape_cast %54 : vector<1x16x64xbf16> to vector<16x64xbf16>
    %c0_38 = arith.constant 0 : index
    %c0_39 = arith.constant 0 : index
    %56 = vector.load %arg3[%c0_38, %c0_39] : memref<64x320xbf16, #tpu.memory_space<vmem>>, vector<64x320xbf16>
    %cst_40 = arith.constant dense<0.000000e+00> : vector<16x320xf32>
    %57 = tpu.matmul %55, %56, %cst_40 {dimension_numbers = #tpu.dot_dimension_numbers<[1], [0], [0], [1], [0, 0, 1, 1], [], []>} : vector<16x64xbf16>, vector<64x320xbf16>, vector<16x320xf32> -> vector<16x320xf32>
    %58 = vector.extract_strided_slice %57 {offsets = [0, 256], sizes = [16, 64], strides = [1, 1]} : vector<16x320xf32> to vector<16x64xf32>
    %c0_41 = arith.constant 0 : index
    %c0_42 = arith.constant 0 : index
    %59 = vector.load %arg4[%c0_41, %c0_42] : memref<1x320xf32, #tpu.memory_space<vmem>>, vector<1x320xf32>
    %60 = vector.shape_cast %59 : vector<1x320xf32> to vector<320xf32>
    %61 = vector.extract_strided_slice %60 {offsets = [256], sizes = [64], strides = [1]} : vector<320xf32> to vector<64xf32>
    %62 = vector.shape_cast %61 : vector<64xf32> to vector<1x64xf32>
    %63 = vector.broadcast %62 : vector<1x64xf32> to vector<16x64xf32>
    %64 = arith.addf %58, %63 : vector<16x64xf32>
    %cst_43 = arith.constant 0.000000e+00 : f32
    %65 = vector.broadcast %cst_43 : f32 to vector<16x64xf32>
    %66 = arith.maximumf %64, %65 : vector<16x64xf32>
    %cst_44 = arith.constant 0.000000e+00 : f32
    %67 = vector.broadcast %cst_44 : f32 to vector<16x64xf32>
    %68 = arith.select %51, %66, %67 : vector<16x64xf32>
    %69 = arith.truncf %68 : vector<16x64xf32> to vector<16x64xbf16>
    %c9 = arith.constant 9 : index
    %c1_45 = arith.constant 1 : index
    %c0_46 = arith.constant 0 : index
    %70 = vector.load %arg10[%c9, %c1_45, %c0_46] : memref<10x18x64xbf16, #tpu.memory_space<vmem>>, vector<1x16x64xbf16>
    %71 = vector.shape_cast %70 : vector<1x16x64xbf16> to vector<16x64xbf16>
    %72 = vector.shape_cast %69 : vector<16x64xbf16> to vector<1x16x64xbf16>
    tpu.vector_store %arg10[%c9, %c1_45, %c0_46], %72 {strides = array<i32>} : memref<10x18x64xbf16, #tpu.memory_space<vmem>>, vector<1x16x64xbf16>,
    %c0_47 = arith.constant 0 : index
    %c0_48 = arith.constant 0 : index
    %c0_49 = arith.constant 0 : index
    %73 = vector.load %arg10[%c0_47, %c0_48, %c0_49] : memref<10x18x64xbf16, #tpu.memory_space<vmem>>, vector<8x16x64xbf16>
    %74 = vector.shape_cast %73 : vector<8x16x64xbf16> to vector<128x64xbf16>
    %c0_50 = arith.constant 0 : index
    %c0_51 = arith.constant 0 : index
    %75 = vector.load %arg11[%c0_50, %c0_51] : memref<128x576xbf16, #tpu.memory_space<vmem>>, vector<128x64xbf16>
    tpu.vector_store %arg11[%c0_50, %c0_51], %74 {strides = array<i32>} : memref<128x576xbf16, #tpu.memory_space<vmem>>, vector<128x64xbf16>,
    %c0_52 = arith.constant 0 : index
    %c1_53 = arith.constant 1 : index
    %c0_54 = arith.constant 0 : index
    %76 = vector.load %arg10[%c0_52, %c1_53, %c0_54] : memref<10x18x64xbf16, #tpu.memory_space<vmem>>, vector<8x16x64xbf16>
    %77 = vector.shape_cast %76 : vector<8x16x64xbf16> to vector<128x64xbf16>
    %c0_55 = arith.constant 0 : index
    %c64 = arith.constant 64 : index
    %78 = vector.load %arg11[%c0_55, %c64] : memref<128x576xbf16, #tpu.memory_space<vmem>>, vector<128x64xbf16>
    tpu.vector_store %arg11[%c0_55, %c64], %77 {strides = array<i32>} : memref<128x576xbf16, #tpu.memory_space<vmem>>, vector<128x64xbf16>,
    %c0_56 = arith.constant 0 : index
    %c2 = arith.constant 2 : index
    %c0_57 = arith.constant 0 : index
    %79 = vector.load %arg10[%c0_56, %c2, %c0_57] : memref<10x18x64xbf16, #tpu.memory_space<vmem>>, vector<8x16x64xbf16>
    %80 = vector.shape_cast %79 : vector<8x16x64xbf16> to vector<128x64xbf16>
    %c0_58 = arith.constant 0 : index
    %c128 = arith.constant 128 : index
    %81 = vector.load %arg11[%c0_58, %c128] : memref<128x576xbf16, #tpu.memory_space<vmem>>, vector<128x64xbf16>
    tpu.vector_store %arg11[%c0_58, %c128], %80 {strides = array<i32>} : memref<128x576xbf16, #tpu.memory_space<vmem>>, vector<128x64xbf16>,
    %c1_59 = arith.constant 1 : index
    %c0_60 = arith.constant 0 : index
    %c0_61 = arith.constant 0 : index
    %82 = vector.load %arg10[%c1_59, %c0_60, %c0_61] : memref<10x18x64xbf16, #tpu.memory_space<vmem>>, vector<8x16x64xbf16>
    %83 = vector.shape_cast %82 : vector<8x16x64xbf16> to vector<128x64xbf16>
    %c0_62 = arith.constant 0 : index
    %c192 = arith.constant 192 : index
    %84 = vector.load %arg11[%c0_62, %c192] : memref<128x576xbf16, #tpu.memory_space<vmem>>, vector<128x64xbf16>
    tpu.vector_store %arg11[%c0_62, %c192], %83 {strides = array<i32>} : memref<128x576xbf16, #tpu.memory_space<vmem>>, vector<128x64xbf16>,
    %c1_63 = arith.constant 1 : index
    %c1_64 = arith.constant 1 : index
    %c0_65 = arith.constant 0 : index
    %85 = vector.load %arg10[%c1_63, %c1_64, %c0_65] : memref<10x18x64xbf16, #tpu.memory_space<vmem>>, vector<8x16x64xbf16>
    %86 = vector.shape_cast %85 : vector<8x16x64xbf16> to vector<128x64xbf16>
    %c0_66 = arith.constant 0 : index
    %c256 = arith.constant 256 : index
    %87 = vector.load %arg11[%c0_66, %c256] : memref<128x576xbf16, #tpu.memory_space<vmem>>, vector<128x64xbf16>
    tpu.vector_store %arg11[%c0_66, %c256], %86 {strides = array<i32>} : memref<128x576xbf16, #tpu.memory_space<vmem>>, vector<128x64xbf16>,
    %c1_67 = arith.constant 1 : index
    %c2_68 = arith.constant 2 : index
    %c0_69 = arith.constant 0 : index
    %88 = vector.load %arg10[%c1_67, %c2_68, %c0_69] : memref<10x18x64xbf16, #tpu.memory_space<vmem>>, vector<8x16x64xbf16>
    %89 = vector.shape_cast %88 : vector<8x16x64xbf16> to vector<128x64xbf16>
    %c0_70 = arith.constant 0 : index
    %c320 = arith.constant 320 : index
    %90 = vector.load %arg11[%c0_70, %c320] : memref<128x576xbf16, #tpu.memory_space<vmem>>, vector<128x64xbf16>
    tpu.vector_store %arg11[%c0_70, %c320], %89 {strides = array<i32>} : memref<128x576xbf16, #tpu.memory_space<vmem>>, vector<128x64xbf16>,
    %c2_71 = arith.constant 2 : index
    %c0_72 = arith.constant 0 : index
    %c0_73 = arith.constant 0 : index
    %91 = vector.load %arg10[%c2_71, %c0_72, %c0_73] : memref<10x18x64xbf16, #tpu.memory_space<vmem>>, vector<8x16x64xbf16>
    %92 = vector.shape_cast %91 : vector<8x16x64xbf16> to vector<128x64xbf16>
    %c0_74 = arith.constant 0 : index
    %c384 = arith.constant 384 : index
    %93 = vector.load %arg11[%c0_74, %c384] : memref<128x576xbf16, #tpu.memory_space<vmem>>, vector<128x64xbf16>
    tpu.vector_store %arg11[%c0_74, %c384], %92 {strides = array<i32>} : memref<128x576xbf16, #tpu.memory_space<vmem>>, vector<128x64xbf16>,
    %c2_75 = arith.constant 2 : index
    %c1_76 = arith.constant 1 : index
    %c0_77 = arith.constant 0 : index
    %94 = vector.load %arg10[%c2_75, %c1_76, %c0_77] : memref<10x18x64xbf16, #tpu.memory_space<vmem>>, vector<8x16x64xbf16>
    %95 = vector.shape_cast %94 : vector<8x16x64xbf16> to vector<128x64xbf16>
    %c0_78 = arith.constant 0 : index
    %c448 = arith.constant 448 : index
    %96 = vector.load %arg11[%c0_78, %c448] : memref<128x576xbf16, #tpu.memory_space<vmem>>, vector<128x64xbf16>
    tpu.vector_store %arg11[%c0_78, %c448], %95 {strides = array<i32>} : memref<128x576xbf16, #tpu.memory_space<vmem>>, vector<128x64xbf16>,
    %c2_79 = arith.constant 2 : index
    %c2_80 = arith.constant 2 : index
    %c0_81 = arith.constant 0 : index
    %97 = vector.load %arg10[%c2_79, %c2_80, %c0_81] : memref<10x18x64xbf16, #tpu.memory_space<vmem>>, vector<8x16x64xbf16>
    %98 = vector.shape_cast %97 : vector<8x16x64xbf16> to vector<128x64xbf16>
    %c0_82 = arith.constant 0 : index
    %c512 = arith.constant 512 : index
    %99 = vector.load %arg11[%c0_82, %c512] : memref<128x576xbf16, #tpu.memory_space<vmem>>, vector<128x64xbf16>
    tpu.vector_store %arg11[%c0_82, %c512], %98 {strides = array<i32>} : memref<128x576xbf16, #tpu.memory_space<vmem>>, vector<128x64xbf16>,
    %c0_83 = arith.constant 0 : index
    %c0_84 = arith.constant 0 : index
    %100 = vector.load %arg11[%c0_83, %c0_84] : memref<128x576xbf16, #tpu.memory_space<vmem>>, vector<128x576xbf16>
    %c0_85 = arith.constant 0 : index
    %c0_86 = arith.constant 0 : index
    %101 = vector.load %arg5[%c0_85, %c0_86] : memref<576x64xbf16, #tpu.memory_space<vmem>>, vector<576x64xbf16>
    %cst_87 = arith.constant dense<0.000000e+00> : vector<128x64xf32>
    %102 = tpu.matmul %100, %101, %cst_87 {dimension_numbers = #tpu.dot_dimension_numbers<[1], [0], [0], [1], [0, 0, 1, 1], [], []>} : vector<128x576xbf16>, vector<576x64xbf16>, vector<128x64xf32> -> vector<128x64xf32>
    %c0_88 = arith.constant 0 : index
    %c0_89 = arith.constant 0 : index
    %103 = vector.load %arg6[%c0_88, %c0_89] : memref<1x64xf32, #tpu.memory_space<vmem>>, vector<1x64xf32>
    %104 = vector.shape_cast %103 : vector<1x64xf32> to vector<64xf32>
    %105 = vector.shape_cast %104 : vector<64xf32> to vector<1x64xf32>
    %106 = vector.broadcast %105 : vector<1x64xf32> to vector<128x64xf32>
    %107 = arith.addf %102, %106 : vector<128x64xf32>
    %cst_90 = arith.constant 0.000000e+00 : f32
    %108 = vector.broadcast %cst_90 : f32 to vector<128x64xf32>
    %109 = arith.maximumf %107, %108 : vector<128x64xf32>
    %110 = arith.truncf %109 : vector<128x64xf32> to vector<128x64xbf16>
    %c0_91 = arith.constant 0 : index
    %c0_92 = arith.constant 0 : index
    %111 = vector.load %arg7[%c0_91, %c0_92] : memref<64x256xbf16, #tpu.memory_space<vmem>>, vector<64x256xbf16>
    %cst_93 = arith.constant dense<0.000000e+00> : vector<128x256xf32>
    %112 = tpu.matmul %110, %111, %cst_93 {dimension_numbers = #tpu.dot_dimension_numbers<[1], [0], [0], [1], [0, 0, 1, 1], [], []>} : vector<128x64xbf16>, vector<64x256xbf16>, vector<128x256xf32> -> vector<128x256xf32>
    %c0_94 = arith.constant 0 : index
    %c0_95 = arith.constant 0 : index
    %113 = vector.load %arg8[%c0_94, %c0_95] : memref<1x256xf32, #tpu.memory_space<vmem>>, vector<1x256xf32>
    %114 = vector.shape_cast %113 : vector<1x256xf32> to vector<256xf32>
    %115 = vector.shape_cast %114 : vector<256xf32> to vector<1x256xf32>
    %116 = vector.broadcast %115 : vector<1x256xf32> to vector<128x256xf32>
    %117 = arith.addf %112, %116 : vector<128x256xf32>
    %cst_96 = arith.constant 0.000000e+00 : f32
    %118 = vector.broadcast %cst_96 : f32 to vector<128x256xf32>
    %119 = arith.maximumf %117, %118 : vector<128x256xf32>
    %c0_97 = arith.constant 0 : index
    %c0_98 = arith.constant 0 : index
    %c0_99 = arith.constant 0 : index
    %c0_100 = arith.constant 0 : index
    %120 = vector.load %arg9[%c0_97, %c0_98, %c0_99, %c0_100] : memref<1x8x16x256xf32, #tpu.memory_space<vmem>>, vector<1x8x16x256xf32>
    %121 = vector.shape_cast %119 : vector<128x256xf32> to vector<1x8x16x256xf32>
    %122 = arith.addf %120, %121 : vector<1x8x16x256xf32>
    %c0_101 = arith.constant 0 : index
    %c0_102 = arith.constant 0 : index
    %c0_103 = arith.constant 0 : index
    %c0_104 = arith.constant 0 : index
    %123 = vector.load %arg9[%c0_101, %c0_102, %c0_103, %c0_104] : memref<1x8x16x256xf32, #tpu.memory_space<vmem>>, vector<1x8x16x256xf32>
    tpu.vector_store %arg9[%c0_101, %c0_102, %c0_103, %c0_104], %122 {strides = array<i32>} : memref<1x8x16x256xf32, #tpu.memory_space<vmem>>, vector<1x8x16x256xf32>,
    return
  }
  func.func @transform_0(%arg0: i32, %arg1: i32) -> (i32, i32, i32, i32) {
    %c0_i32 = arith.constant 0 : i32
    %c0_i32_0 = arith.constant 0 : i32
    %c0_i32_1 = arith.constant 0 : i32
    %c0_i32_2 = arith.constant 0 : i32
    return %arg0, %c0_i32, %c0_i32_0, %c0_i32_1 : i32, i32, i32, i32
  }
  func.func @transform_1(%arg0: i32, %arg1: i32) -> (i32, i32) {
    %c0_i32 = arith.constant 0 : i32
    %c0_i32_0 = arith.constant 0 : i32
    %c0_i32_1 = arith.constant 0 : i32
    return %c0_i32, %c0_i32_0 : i32, i32
  }
  func.func @transform_2(%arg0: i32, %arg1: i32) -> (i32, i32) {
    %c0_i32 = arith.constant 0 : i32
    %c0_i32_0 = arith.constant 0 : i32
    %c0_i32_1 = arith.constant 0 : i32
    return %c0_i32, %c0_i32_0 : i32, i32
  }
  func.func @transform_3(%arg0: i32, %arg1: i32) -> (i32, i32) {
    %c0_i32 = arith.constant 0 : i32
    %c0_i32_0 = arith.constant 0 : i32
    %c0_i32_1 = arith.constant 0 : i32
    return %c0_i32, %c0_i32_0 : i32, i32
  }
  func.func @transform_4(%arg0: i32, %arg1: i32) -> (i32, i32) {
    %c0_i32 = arith.constant 0 : i32
    %c0_i32_0 = arith.constant 0 : i32
    %c0_i32_1 = arith.constant 0 : i32
    return %c0_i32, %c0_i32_0 : i32, i32
  }
  func.func @transform_5(%arg0: i32, %arg1: i32) -> (i32, i32) {
    %c0_i32 = arith.constant 0 : i32
    %c0_i32_0 = arith.constant 0 : i32
    %c0_i32_1 = arith.constant 0 : i32
    return %c0_i32, %c0_i32_0 : i32, i32
  }
  func.func @transform_6(%arg0: i32, %arg1: i32) -> (i32, i32) {
    %c0_i32 = arith.constant 0 : i32
    %c0_i32_0 = arith.constant 0 : i32
    %c0_i32_1 = arith.constant 0 : i32
    return %c0_i32, %c0_i32_0 : i32, i32
  }
  func.func @transform_7(%arg0: i32, %arg1: i32) -> (i32, i32, i32, i32) {
    %c0_i32 = arith.constant 0 : i32
    %c0_i32_0 = arith.constant 0 : i32
    %c0_i32_1 = arith.constant 0 : i32
    return %arg0, %arg1, %c0_i32, %c0_i32_0 : i32, i32, i32, i32
  }
}

</mosaic_0001>

<bundles_post_ra>
// kernel: tpu_custom_call.1
= control target key start
LH: loop header
LB: loop body
LE: loop exit
PB: predicated region body
PF: predicated region fallthrough
CT: control target
= control target key end

     0   :  { %12 = vsyncpa [#allocation5], 0  ;;  %s6420_s0 = inlined_call_operand.vmem [shape: bf16[2,16,16,64], index: 0, kind: input, shape index: {}]   ;;  %s6421_s1 = inlined_call_operand.vmem [shape: bf16[64,320], index: 1, kind: input, shape index: {}]   ;;  %s6422_s2 = inlined_call_operand.vmem [shape: f32[1,320], index: 2, kind: input, shape index: {}]   ;;  %s6423_s3 = inlined_call_operand.vmem [shape: bf16[576,64], index: 3, kind: input, shape index: {}]   ;;  %s6424_s4 = inlined_call_operand.vmem [shape: f32[1,64], index: 4, kind: input, shape index: {}]   ;;  %s6425_s5 = inlined_call_operand.vmem [shape: bf16[64,256], index: 5, kind: input, shape index: {}]   ;;  %s6426_s6 = inlined_call_operand.vmem [shape: f32[1,256], index: 6, kind: input, shape index: {}]   ;;  %s6427_s7 = inlined_call_operand.hbm [shape: f32[2,16,16,256], index: 7, kind: output, shape index: {}]  }
   0x1   :  { %14 = vsyncpa [#allocation5 + $0x1], 0  ;;  %s4730_s24 = smov 0   ;;  %s4732_s25 = smov 0  }
   0x2   :  { %s4734_s26 = smov 0   ;;  %s4736_s27 = smov 0  }
   0x3   :  { %s4738_s28 = smov 0   ;;  %s4740_s29 = smov 0  }
   0x4   :  { %s4742_s30 = smov 0   ;;  %s4744_s8 = smov 0  }
   0x5 LB: > { %s3831_s9 = sadd.s32 4294967295, %s4685_s8   ;;  %s3832_s10 = sadd.s32 4294967294, %s4685_s8   ;;  %s4685_s8 = sphi %s4744_s8, %s20_s8   ;;  %s4681_s30 = sphi %s4742_s30, %s6458_s30   ;;  %s4677_s29 = sphi %s4740_s29, %s6457_s29   ;;  %s4673_s28 = sphi %s4738_s28, %s6456_s28   ;;  %s4669_s27 = sphi %s4736_s27, %s6455_s27   ;;  %s4665_s26 = sphi %s4734_s26, %s6454_s26   ;;  %s4661_s25 = sphi %s4732_s25, %s6453_s25   ;;  %s4657_s24 = sphi %s4730_s24, %s6452_s24  }
   0x6   : > { %s29_s11 = sadd.s32 1, %s4677_s29  ;;  %s32_s12 = sadd.s32 1, %s4681_s30 }
   0x7   : > { %p30_p0 = scmp.ge.s32.totalorder %s29_s11, 2  ;;  %p203_p1 = scmp.ne.s32.totalorder %s4665_s26, %s4661_s25 }
   0x8   : > { %p204_p2 = scmp.eq.s32.totalorder %s3831_s9, 3  ;;  %p209_p5 = scmp.ne.s32.totalorder %s4661_s25, %s4657_s24 }
   0x9   : > { %s6460_s11 = smov (%p30_p0, %s29_s11), 0  ;;  %s6462_s12 = smov (!%p30_p0, %s32_s12), %s4681_s30 }
   0xa   : > { %6430 = sst [smem:[#allocation7_spill]] %s6460_s11  ;;  %s189_s13 = ssub.s32 %s4677_s29, %s6460_s11 }
   0xb   : > { %p4781_p3 = por %p204_p2, %p203_p1  ;;  %p34_p4 = scmp.ge.s32.totalorder %s6462_s12, 2 }
   0xc   : > { %p210_p6 = scmp.eq.s32.totalorder %s3832_s10, 3  ;;  %p3835_p7 = scmp.ge.s32.totalorder %s4685_s8, 1 }
   0xd   : > { %s6464_s12 = smov (%p34_p4, %s6462_s12), 0  ;;  %p254_p9 = scmp.lt.s32.totalorder %s4685_s8, 5 }
   0xe   : > { %6432 = sst [smem:[#allocation8_spill]] %s6464_s12  ;;  %p4790_p8 = por %p210_p6, %p209_p5 }
   0xf   : > { %s188_s16 = ssub.s32 %s4681_s30, %s6464_s12  ;;  %s193_s17 = sadd.s32 1, %s4665_s26 }
  0x10   : > { %s190_s18 = sor.u32 %s189_s13, %s188_s16  ;;  %p255_p10 = pnand %p3835_p7, %p254_p9 }
  0x11   : > { %p191_p11 = scmp.eq.s32.totalorder %s190_s18, 0  ;;  %p286_p12 = scmp.lt.s32.totalorder (!%p255_p10), %s4673_s28, 1 }
  0x12   : > { %258 = sbr.rel (%p255_p10) target bundleno = 920 (0x398), region = 48  ;;  %s3839_s21 = sshll.u32 (!%p255_p10), %s4669_s27, 3 }
  0x13   : > { %s4799_s19 = scalar_select %p191_p11, %s4665_s26, %s193_s17  }
  0x14   : > { %s4386_s17 = sshll.u32 (!%p255_p10), %s4669_s27, 6  ;;  %s3946_s22 = sadd.s32 (!%p255_p10), 4294967295, %s3839_s21 }
  0x15   : > { %p965_p13 = scmp.gt.s32.totalorder (!%p255_p10), %s3946_s22, 0  ;;  %p967_p0 = scmp.gt.s32.totalorder (!%p255_p10), %s4669_s27, 0 }
  0x16   : > { %p1073_p2 = scmp.lt.s32.totalorder (!%p255_p10), %s4669_s27, 1 }
  0x17   : > { %v3912_v0 = vld [vmem:[%s6421_s1 + $0x48] sm:$0xf]  ;;  %v4405_v1 = vld [vmem:[%s6421_s1 + $0x50] sm:$0xf0]  ;;  %v3900_v2 = vld [vmem:[%s6421_s1 + $0x30] sm:$0xf] }
  0x18   : > { %v3913_v3 = vor.u32 %v4405_v1, %v3912_v0  ;;  %v4402_v4 = vld [vmem:[%s6421_s1 + $0x38] sm:$0xf0]  ;;  %v4404_v6 = vld [vmem:[%s6421_s1 + $0x4c] sm:$0xf]  ;;  %v3914_v7 = vld [vmem:[%s6421_s1 + $0x54] sm:$0xf0] }
  0x19   : > { %v3901_v5 = vor.u32 %v4402_v4, %v3900_v2  ;;  %v3888_v8 = vld [vmem:[%s6421_s1 + $0x18] sm:$0xf]  ;;  %v4399_v9 = vld [vmem:[%s6421_s1 + $0x20] sm:$0xf0]  ;;  %s287_s13 = scalar_select %p286_p12, %s4673_s28, 1  ;;  %v3917_v10 = vor.u32 %v4404_v6, %v3914_v7  ;;  %vm441_vm0 = vcmask 523264  }
  0x1a   : > { %4504 = vmatpush.bf16.msra.mxu2 %v3913_v3  ;;  %4505 = vmatpush.bf16.msra.mxu3 %v3913_v3  ;;  %v4401_v11 = vld [vmem:[%s6421_s1 + $0x34] sm:$0xf]  ;;  %v3902_v12 = vld [vmem:[%s6421_s1 + $0x3c] sm:$0xf0]  ;;  %v3889_v13 = vor.u32 %v4399_v9, %v3888_v8  ;;  %v4396_v15 = vld [vmem:[%s6421_s1 + $0x8] sm:$0xf0] }
  0x1b   : > { %470 = vmatpush.bf16.msra.mxu0 %v3913_v3  ;;  %s4384_s20 = sshll.u32 %s287_s13, 7  ;;  %519 = vmatpush.bf16.msra.mxu1 %v3917_v10  ;;  %v3876_v14 = vld [vmem:[%s6421_s1] sm:$0xf]  ;;  %v3905_v16 = vor.u32 %v4401_v11, %v3902_v12  ;;  %v4398_v17 = vld [vmem:[%s6421_s1 + $0x1c] sm:$0xf]  ;;  %s6466_s22 = smov (!%p965_p13, %s3946_s22), 0 }
  0x1c   : > { %s4842_s16 = scalar_lea.vmem %s6420_s0, %s4384_s20  ;;  %v3890_v18 = vld [vmem:[%s6421_s1 + $0x24] sm:$0xf0]  ;;  %v3967_v19 = vld [vmem:[%s6421_s1 + $0x50] sm:$0xf]  ;;  %v4412_v20 = vld [vmem:[%s6421_s1 + $0x58] sm:$0xf0]  ;;  %v3877_v21 = vor.u32 %v4396_v15, %v3876_v14 }
  0x1d   : > { %s4858_s20 = scalar_lea.vmem %s4842_s16, %s4386_s17  ;;  %v3893_v22 = vor.u32 %v4398_v17, %v3890_v18  ;;  %v3968_v23 = vor.u32 %v4412_v20, %v3967_v19  ;;  %v4395_v24 = vld [vmem:[%s6421_s1 + $0x4] sm:$0xf]  ;;  %v3963_v25 = vld [vmem:[%s6421_s1 + $0x38] sm:$0xf]  ;;  %v3878_v29 = vld [vmem:[%s6421_s1 + $0xc] sm:$0xf0] }
  0x1e   : > { %4506 = vmatpush.bf16.msra.mxu2 %v3901_v5  ;;  %4507 = vmatpush.bf16.msra.mxu3 %v3901_v5  ;;  %v4411_v26 = vld [vmem:[%s6421_s1 + $0x40] sm:$0xf0]  ;;  %v4870_v27 = vld [vmem:[%s4858_s20 + $0x28] sm:$0xff]  ;;  %v4873_v28 = vld [vmem:[%s4858_s20 + $0x30] sm:$0xff]  ;;  %v3881_v31 = vor.u32 %v4395_v24, %v3878_v29  ;;  %s4407_s17 = sshll.u32 %s6466_s22, 3  ;;  %s283_s22 = sand.u32 1, %s4661_s25  }
  0x1f   : > { %471 = vmatpush.bf16.msra.mxu0 %v3901_v5  ;;  %520 = vmatpush.bf16.msra.mxu1 %v3905_v16  ;;  %v3964_v30 = vor.u32 %v4411_v26, %v3963_v25  ;;  %v3959_v32 = vld [vmem:[%s6421_s1 + $0x20] sm:$0xf]  ;;  %v4410_v33 = vld [vmem:[%s6421_s1 + $0x28] sm:$0xf0]  ;;  %v3955_v35 = vld [vmem:[%s6421_s1 + $0x8] sm:$0xf]  ;;  %s970_s23 = scalar_lea.vmem %s4842_s16, %s4407_s17 }
  0x20   : > { %v3960_v34 = vor.u32 %v4410_v33, %v3959_v32  ;;  %v4409_v36 = vld [vmem:[%s6421_s1 + $0x10] sm:$0xf0]  ;;  %v3920_v37 = vld [vmem:[%s6421_s1 + $0x50] sm:$0xf]  ;;  %v4406_v38 = vld [vmem:[%s6421_s1 + $0x58] sm:$0xf0] }
  0x21   : > { %v3956_v39 = vor.u32 %v4409_v36, %v3955_v35  ;;  %v3921_v40 = vor.u32 %v4406_v38, %v3920_v37  ;;  %v3908_v41 = vld [vmem:[%s6421_s1 + $0x38] sm:$0xf]  ;;  %v4403_v42 = vld [vmem:[%s6421_s1 + $0x40] sm:$0xf0]  ;;  %v3896_v45 = vld [vmem:[%s6421_s1 + $0x20] sm:$0xf] }
  0x22   : > { %4508 = vmatpush.bf16.msra.mxu2 %v3889_v13  ;;  %4509 = vmatpush.bf16.msra.mxu3 %v3889_v13  ;;  %v3909_v43 = vor.u32 %v4403_v42, %v3908_v41  ;;  %v4910_v44 = vld [vmem:[%s4858_s20 + $0x38] sm:$0xff]  ;;  %v4400_v46 = vld [vmem:[%s6421_s1 + $0x28] sm:$0xf0]  ;;  %v3884_v48 = vld [vmem:[%s6421_s1 + $0x8] sm:$0xf]  ;;  %s3836_s11 = sshll.u32 %s283_s22, 8 }
  0x23   : > { %472 = vmatpush.bf16.msra.mxu0 %v3889_v13  ;;  %521 = vmatpush.bf16.msra.mxu1 %v3893_v22  ;;  %v3897_v47 = vor.u32 %v4400_v46, %v3896_v45  ;;  %v4397_v49 = vld [vmem:[%s6421_s1 + $0x10] sm:$0xf0]  ;;  %v4387_v50 = vld [vmem:[%s4858_s20] sm:$0xff]  ;;  %v4388_v53 = vld [vmem:[%s4858_s20 + $0x8] sm:$0xff]  ;;  %vm661_vm1 = vcmask 516096   ;;  %vm905_vm7 = vcmask 519168  }
  0x24   : > { %v3885_v51 = vor.u32 %v4397_v49, %v3884_v48  ;;  %v4408_v52 = vld [vmem:[%s970_s23] sm:$0xff]  ;;  %v4389_v54 = vld [vmem:[%s4858_s20 + $0x10] sm:$0xff]  ;;  %v4390_v55 = vld [vmem:[%s4858_s20 + $0x18] sm:$0xff]  ;;  %vm662_vm2 = vsmask.f32 256  ;;  %s4687_s17 = smov 64  }
  0x25   : > { %v4391_v56 = vld [vmem:[%s4858_s20 + $0x20] sm:$0xff]  ;;  %s4967_s20 = scalar_lea.vmem [#allocation4], %s3836_s11  ;;  %vm4973_vm3 = vmand %vm661_vm1, %vm662_vm2  ;;  %vm694_vm4 = vsmask.f32 7938  ;;  %v696_v8 = vld [vmem:[#allocation2 + $0x8] sm:$0x1] }
  0x26   : > { %4510 = vmatpush.bf16.msra.mxu2 %v3877_v21  ;;  %4511 = vmatpush.bf16.msra.mxu3 %v3877_v21  ;;  %v4957_v57 = vld [vmem:[%s6422_s2] sm:$0x7]  ;;  %vm4990_vm5 = vmand %vm661_vm1, %vm694_vm4  ;;  %s1036_s18 = scalar_select %p967_p0, 1, 0  ;;  %v667_v29 = vld [vmem:[#allocation2 + $0xc] sm:$0x1] }
  0x27   : > { %473 = vmatpush.bf16.msra.mxu0 %v3877_v21  ;;  %522 = vmatpush.bf16.msra.mxu1 %v3881_v31  ;;  %v4963_v58 = vperm.slane %v4957_v57, 0  ;;  %v664_v63 = vld [vmem:[#allocation2] sm:$0x1]  ;;  %v4986_v6 = vperm.slane %v4957_v57, 1  ;;  %v697_v11 = vsel %vm4990_vm5, 0, %v696_v8  ;;  %vm5023_vm8 = vmand %vm905_vm7, %vm694_vm4  ;;  %s5084_s23 = sadd.s32 8, %s3839_s21 }
  0x28   : > { %v665_v1 = vsel %vm4973_vm3, 0, %v664_v63  ;;  %698 = vst [vmem:[#allocation2 + $0x8] sm:$0x1] %v697_v11  ;;  %v1027_v14 = vld [vmem:[%s6422_s2] sm:$0x7]  ;;  %v1037_v21 = vstv %s1036_s18  ;;  %p1071_p1 = scmp.lt.s32.totalorder %s5084_s23, 15 }
  0x29   : > { %3927 = vmatmul.msk.bf16.vlgmr.msra.gmra.mxu2 %vm441_vm0, %v4870_v27  ;;  %3928 = vmatmul.msk.bf16.vlgmr.msra.gmra.mxu3 %vm441_vm0, %v4873_v28  ;;  %666 = vst [vmem:[#allocation2] sm:$0x1] %v665_v1  ;;  %v1029_v19 = vrot.slane %v1027_v14, 2  ;;  %vm5011_vm6 = vcmp.eq.s32.totalorder %v1037_v21, 1  ;;  %vm742_vm9 = vsmask.f32 4368 }
  0x2a   : > { %4512 = vmatpush.bf16.msrb.mxu2 %v3917_v10  ;;  %1017 = vmatpush.bf16.msrb.mxu3 %v3968_v23  ;;  %vm5038_vm10 = vmor %vm662_vm2, %vm742_vm9  ;;  %v670_v63 = vld [vmem:[#allocation2 + $0x18] sm:$0x1]  ;;  %vm1233_vm11 = vsmask.f32 3328  ;;  %vm1234_vm12 = vsmask.f32 7440 }
  0x2b   : > { %3922 = vmatmul.msk.bf16.vlgmr.msra.gmra.mxu0 %vm441_vm0, %v4387_v50  ;;  %3930 = vmatmul.msk.bf16.vlgmr.msra.gmra.mxu1 %vm441_vm0, %v4387_v50  ;;  %v1030_v20 = vperm.slane %v1029_v19, 0  ;;  %vm5059_vm13 = vmor %vm1233_vm11, %vm1234_vm12  ;;  %s6468_s23 = smov (!%p1071_p1, %s5084_s23), 15  ;;  %vm1541_vm14 = vcmask 1042432   ;;  %vm1542_vm15 = vcmask 1046532   ;;  %vm1476_vm2 = vcmask 1043968   ;;  %s4380_s11 = sshll.u32 %s4673_s28, 6 }
  0x2c   : > { %s4413_s13 = sshll.u32 %s6468_s23, 3  ;;  %vm5147_vm1 = vmor %vm1541_vm14, %vm1542_vm15  ;;  %s3746_s18 = sshll.u32 %s4967_s20, 4  ;;  %s3747_s18 = int_to_ptr.vmem [resolvable:$true] %s3746_s18 }
  0x2d   : > { %s1076_s23 = scalar_lea.vmem %s4842_s16, %s4413_s13  ;;  %s4503_s16 = sshll.u32 %s4669_s27, 5 }
  0x2e   : > { %4513 = vmatpush.bf16.msrb.mxu2 %v3905_v16  ;;  %1018 = vmatpush.bf16.msrb.mxu3 %v3964_v30  ;;  %v668_v30 = vsel %vm4973_vm3, 0, %v667_v29  ;;  %s3731_s10 = scalar_lea.sflag [#allocation5], %s283_s22 }
  0x2f   : > { %669 = vst [vmem:[#allocation2 + $0xc] sm:$0x1] %v668_v30 }
  0x32   : > { %4514 = vmatpush.bf16.msrb.mxu2 %v3893_v22  ;;  %1019 = vmatpush.bf16.msrb.mxu3 %v3960_v34 }
  0x36   : > { %4515 = vmatpush.bf16.msrb.mxu2 %v3881_v31  ;;  %1020 = vmatpush.bf16.msrb.mxu3 %v3956_v39  ;;  %v4480_v39 = vld [vmem:[%s6423_s3 + $0xa8] sm:$0xff] }
  0x39   : > { %3929 = vmatmul.msk.bf16.gmra.mxu3 %vm441_vm0, %v4910_v44  ;;  %3935 = vmatmul.msk.bf16.vlgmr.msrb.gmra.mxu2 %vm441_vm0, %v4870_v27 }
  0x3a   : > { %568 = vmatpush.bf16.msra.mxu2 %v3921_v40  ;;  %v1063_v40 = vld [vmem:[#allocation2] sm:$0xf] }
  0x3b   : > { %3923 = vmatmul.msk.bf16.gmra.mxu0 %vm441_vm0, %v4388_v53  ;;  %3931 = vmatmul.msk.bf16.gmra.mxu1 %vm441_vm0, %v4388_v53 }
  0x3e   : > { %569 = vmatpush.bf16.msra.mxu2 %v3909_v43  ;;  %v699_v43 = vld [vmem:[#allocation2 + $0x14] sm:$0x1] }
  0x3f   : > { %v700_v46 = vsel %vm4990_vm5, 0, %v699_v43 }
  0x40   : > { %701 = vst [vmem:[#allocation2 + $0x14] sm:$0x1] %v700_v46 }
  0x42   : > { %570 = vmatpush.bf16.msra.mxu2 %v3897_v47 }
  0x46   : > { %571 = vmatpush.bf16.msra.mxu2 %v3885_v51 }
  0x49   : > { %3936 = vmatmul.msk.bf16.gmra.mxu2 %vm441_vm0, %v4873_v28  ;;  %3969 = vmatmul.msk.bf16.vlgmr.msrb.gmra.mxu3 %vm441_vm0, %v4408_v52 }
  0x4b   : > { %3924 = vmatmul.msk.bf16.gmra.mxu0 %vm441_vm0, %v4389_v54  ;;  %3932 = vmatmul.msk.bf16.gmra.mxu1 %vm441_vm0, %v4389_v54 }
  0x59   : > { %3937 = vmatmul.msk.bf16.gmra.mxu2 %vm441_vm0, %v4910_v44 }
  0x5b   : > { %3925 = vmatmul.msk.bf16.gmra.mxu0 %vm441_vm0, %v4390_v55  ;;  %3933 = vmatmul.msk.bf16.gmra.mxu1 %vm441_vm0, %v4390_v55 }
  0x69   : > { %3938 = vmatmul.msk.bf16.vlgmr.msra.gmra.mxu2 %vm441_vm0, %v4387_v50 }
  0x6b   : > { %3926 = vmatmul.msk.bf16.gmra.mxu0 %vm441_vm0, %v4391_v56  ;;  %3934 = vmatmul.msk.bf16.gmra.mxu1 %vm441_vm0, %v4391_v56 }
  0x79   : > { %3939 = vmatmul.msk.bf16.gmra.mxu2 %vm441_vm0, %v4388_v53 }
  0x89   : > { %3940 = vmatmul.msk.bf16.gmra.mxu2 %vm441_vm0, %v4389_v54 }
  0x99   : > { %3941 = vmatmul.msk.bf16.gmra.mxu2 %vm441_vm0, %v4390_v55 }
  0xa9   : > { %3942 = vmatmul.msk.bf16.gmra.mxu2 %vm441_vm0, %v4391_v56 }
  0xac   : > { %v500_v59 = vpop.f32.mrf.mxu2  ;;  %v505_v60 = vpop.f32.mrf.mxu3 }
  0xad   : > { %v501_v61 = vadd.f32 %v500_v59, %v4963_v58  ;;  %v506_v62 = vadd.f32 %v505_v60, %v4963_v58 }
  0xaf   : > { %633 = vst [vmem:[%s4967_s20 + $0xa0] sm:$0xff] %v501_v61 }
  0xb0   : > { %637 = vst [vmem:[%s4967_s20 + $0xc0] sm:$0xff] %v506_v62 }
  0xb4   : > { %v502_v2 = vpop.f32.mrf.mxu2  ;;  %v507_v3 = vpop.f32.mrf.mxu3 }
  0xb5   : > { %v503_v4 = vadd.f32 %v502_v2, %v4963_v58  ;;  %v508_v5 = vadd.f32 %v507_v3, %v4963_v58 }
  0xb7   : > { %635 = vst [vmem:[%s4967_s20 + $0xb0] sm:$0xff] %v503_v4  ;;  %v671_v4 = vsel %vm4973_vm3, 0, %v670_v63 }
  0xb8   : > { %639 = vst [vmem:[%s4967_s20 + $0xd0] sm:$0xff] %v508_v5 }
  0xb9   : > { %3943 = vmatmul.msk.bf16.gmra.mxu2 %vm441_vm0, %v4870_v27  ;;  %672 = vst [vmem:[#allocation2 + $0x18] sm:$0x1] %v671_v4 }
  0xbc   : > { %v510_v9 = vpop.f32.mrf.mxu3  ;;  %v549_v10 = vpop.f32.mrf.mxu2 }
  0xbd   : > { %v511_v12 = vadd.f32 %v510_v9, %v4963_v58  ;;  %v550_v13 = vadd.f32 %v549_v10, %v4986_v6 }
  0xbf   : > { %641 = vst [vmem:[%s4967_s20 + $0xe0] sm:$0xff] %v511_v12  ;;  %v5054_v12 = vperm.slane %v4957_v57, 2 }
  0xc0   : > { %634 = vst [vmem:[%s4967_s20 + $0xa8] sm:$0xff] %v550_v13  ;;  %v702_v13 = vld [vmem:[#allocation2 + $0x20] sm:$0x1] }
  0xc4   : > { %v512_v15 = vpop.f32.mrf.mxu3  ;;  %v551_v16 = vpop.f32.mrf.mxu2 }
  0xc5   : > { %v513_v17 = vadd.f32 %v512_v15, %v4963_v58  ;;  %v552_v18 = vadd.f32 %v551_v16, %v4986_v6  ;;  %v703_v15 = vsel %vm4990_vm5, 0, %v702_v13 }
  0xc6   : > { %704 = vst [vmem:[#allocation2 + $0x20] sm:$0x1] %v703_v15 }
  0xc7   : > { %643 = vst [vmem:[%s4967_s20 + $0xf0] sm:$0xff] %v513_v17 }
  0xc8   : > { %636 = vst [vmem:[%s4967_s20 + $0xb8] sm:$0xff] %v552_v18 }
  0xc9   : > { %3944 = vmatmul.msk.bf16.gmra.mxu2 %vm441_vm0, %v4873_v28 }
  0xcc   : > { %v554_v22 = vpop.f32.mrf.mxu2  ;;  %v1022_v23 = vpop.f32.mrf.mxu3 }
  0xcd   : > { %v555_v24 = vadd.f32 %v554_v22, %v4986_v6  ;;  %v1032_v25 = vadd.f32 %v1030_v20, %v1022_v23 }
  0xcf   : > { %638 = vst [vmem:[%s4967_s20 + $0xc8] sm:$0xff] %v555_v24  ;;  %v1034_v27 = vmax.f32 %v1032_v25, 0.0 }
  0xd1   : > { %v1039_v28 = vsel %vm5011_vm6, %v1034_v27, 0.0 }
  0xd2   : > { %v1041_v31 = vpack.c.bf16 %v1039_v28, %v1039_v28 }
  0xd4   : > { %v1044_v32 = vshrl.u32 %v1041_v31, 16  ;;  %v1047_v33 = vshll.u32 %v1041_v31, 16  ;;  %v556_v34 = vpop.f32.mrf.mxu2  ;;  %v1024_v35 = vpop.f32.mrf.mxu3 }
  0xd5   : > { %v557_v36 = vadd.f32 %v556_v34, %v4986_v6  ;;  %v1033_v37 = vadd.f32 %v1030_v20, %v1024_v35 }
  0xd6   : > { %v1046_v38 = vrot.slane %v1044_v32, 7  ;;  %v673_v32 = vld [vmem:[#allocation2 + $0x24] sm:$0x1] }
  0xd7   : > { %640 = vst [vmem:[%s4967_s20 + $0xd8] sm:$0xff] %v557_v36  ;;  %v1035_v41 = vmax.f32 %v1033_v37, 0.0  ;;  %v674_v34 = vsel %vm4973_vm3, 0, %v673_v32 }
  0xd8   : > { %v1049_v42 = vor.u32 %v1047_v33, %v1046_v38  ;;  %v1050_v53 = vrot.slane %v1046_v38, 4  ;;  %675 = vst [vmem:[#allocation2 + $0x24] sm:$0x1] %v674_v34 }
  0xd9   : > { %v1040_v45 = vsel %vm5011_vm6, %v1035_v41, 0.0  ;;  %3945 = vmatmul.msk.bf16.gmra.mxu2 %vm441_vm0, %v4910_v44  ;;  %v1067_v44 = vld [vmem:[#allocation2 + $0x8] sm:$0x1]  ;;  %v907_v41 = vld [vmem:[#allocation2 + $0xc] sm:$0xf] }
  0xda   : > { %v1064_v47 = vsel %vm5023_vm8, %v1049_v42, %v1063_v40  ;;  %v1042_v48 = vpack.c.bf16 %v1040_v45, %v1040_v45  ;;  %v705_v45 = vld [vmem:[#allocation2 + $0x2c] sm:$0x1] }
  0xdb   : > { %1065 = vst [vmem:[#allocation2] sm:$0xf] %v1064_v47 }
  0xdc   : > { %v1052_v49 = vshrl.u32 %v1042_v48, 16  ;;  %v1055_v50 = vshll.u32 %v1042_v48, 16  ;;  %v559_v51 = vpop.f32.mrf.mxu2  ;;  %v706_v48 = vsel %vm4990_vm5, 0, %v705_v45 }
  0xdd   : > { %v560_v52 = vadd.f32 %v559_v51, %v4986_v6  ;;  %707 = vst [vmem:[#allocation2 + $0x2c] sm:$0x1] %v706_v48 }
  0xde   : > { %v1054_v54 = vrot.slane %v1052_v49, 7 }
  0xdf   : > { %642 = vst [vmem:[%s4967_s20 + $0xe8] sm:$0xff] %v560_v52 }
  0xe0   : > { %v1057_v56 = vor.u32 %v1055_v50, %v1054_v54  ;;  %v1059_v59 = vrot.slane %v1054_v54, 4  ;;  %v912_v54 = vld [vmem:[#allocation2 + $0x14] sm:$0x1] }
  0xe2   : > { %v1058_v60 = vsel %vm5038_vm10, %v1050_v53, %v1057_v56  ;;  %v1068_v61 = vsel %vm4973_vm3, %v1059_v59, %v1067_v44  ;;  %v1209_v62 = vld [vmem:[#allocation2] sm:$0xf] }
  0xe3   : > { %v1177_v1 = vld [vmem:[#allocation2] sm:$0xf]  ;;  %1066 = vst.msk [vmem:[#allocation2 + $0x4] sm:$0xf] %vm905_vm7, %v1058_v60  ;;  %v1237_v2 = vshrl.u32 %v1209_v62, 16  ;;  %v1240_v3 = vshll.u32 %v1209_v62, 16 }
  0xe4   : > { %1069 = vst [vmem:[#allocation2 + $0x8] sm:$0x1] %v1068_v61  ;;  %v561_v5 = vpop.f32.mrf.mxu2 }
  0xe5   : > { %v562_v8 = vadd.f32 %v561_v5, %v4986_v6  ;;  %v1239_v9 = vrot.slane %v1237_v2, 4  ;;  %v1242_v10 = vrot.slane %v1240_v3, 5  ;;  %1193 = vst.msk [vmem:[#allocation3] sm:$0xf] %vm905_vm7, %v1177_v1 }
  0xe7   : > { %644 = vst [vmem:[%s4967_s20 + $0xf8] sm:$0xff] %v562_v8  ;;  %v1243_v11 = vor.u32 %v1242_v10, %v1239_v9  ;;  %v676_v8 = vld [vmem:[#allocation2 + $0x30] sm:$0x1] }
  0xe8   : > { %v677_v13 = vsel %vm4973_vm3, 0, %v676_v8 }
  0xe9   : > { %v1244_v14 = vrot.slane %v1243_v11, 4  ;;  %678 = vst [vmem:[#allocation2 + $0x30] sm:$0x1] %v677_v13 }
  0xea   : > { %v1210_v16 = vld [vmem:[#allocation2 + $0x4] sm:$0xf] }
  0xeb   : > { %v1178_v17 = vld [vmem:[#allocation2 + $0x4] sm:$0xf]  ;;  %v1246_v18 = vshll.u32 %v1210_v16, 16  ;;  %v1250_v19 = vshrl.u32 %v1210_v16, 16  ;;  %v1211_v20 = vld [vmem:[#allocation2 + $0x8] sm:$0x1] }
  0xec   : > { %1194 = vst.msk [vmem:[#allocation3 + $0x14] sm:$0xf] %vm905_vm7, %v1178_v17  ;;  %v573_v21 = vpop.f32.mrf.mxu2  ;;  %v1256_v25 = vshll.u32 %v1211_v20, 16  ;;  %v4418_v17 = vld [vmem:[%s6421_s1 + $0x58] sm:$0xf0] }
  0xed   : > { %v574_v57 = vadd.f32 %v573_v21, %v5054_v12  ;;  %v1248_v23 = vrot.slane %v1246_v18, 5  ;;  %v1252_v24 = vrot.slane %v1250_v19, 4  ;;  %v915_v18 = vld [vmem:[#allocation2 + $0x18] sm:$0xf] }
  0xee   : > { %v1258_v31 = vrot.slane %v1256_v25, 5  ;;  %v3986_v25 = vld [vmem:[%s6421_s1 + $0x38] sm:$0xf] }
  0xef   : > { %v645_v26 = vmax.f32 %v574_v57, 0.0  ;;  %v1249_v27 = vsel %vm5059_vm13, %v1244_v14, %v1248_v23  ;;  %v1253_v29 = vor.u32 %v1252_v24, %v1248_v23  ;;  %v3990_v14 = vld [vmem:[%s6421_s1 + $0x50] sm:$0xf]  ;;  %v708_v24 = vld [vmem:[#allocation2 + $0x38] sm:$0x1] }
  0xf0   : > { %1428 = vrot.lane.b32.xlu0 %v1249_v27, %s4687_s17  ;;  %v3991_v19 = vor.u32 %v4418_v17, %v3990_v14 }
  0xf1   : > { %v726_v30 = vpack.c.bf16 %v645_v26, %v645_v26  ;;  %v1254_v28 = vrot.slane %v1253_v29, 4 }
  0xf2   : > { %1123 = vmatpush.bf16.msra.mxu3 %v3991_v19 }
  0xf3   : > { %v745_v33 = vshrl.u32 %v726_v30, 16  ;;  %v748_v37 = vshll.u32 %v726_v30, 16  ;;  %v1259_v40 = vsel %vm5059_vm13, %v1254_v28, %v1258_v31  ;;  %v709_v30 = vsel %vm4990_vm5, 0, %v708_v24  ;;  %v4417_v28 = vld [vmem:[%s6421_s1 + $0x40] sm:$0xf0] }
  0xf4   : > { %v575_v35 = vpop.f32.mrf.mxu2  ;;  %710 = vst [vmem:[#allocation2 + $0x38] sm:$0x1] %v709_v30 }
  0xf5   : > { %v747_v36 = vrot.slane %v745_v33, 7  ;;  %v576_v38 = vadd.f32 %v575_v35, %v5054_v12  ;;  %v3987_v33 = vor.u32 %v4417_v28, %v3986_v25 }
  0xf7   : > { %v750_v42 = vor.u32 %v748_v37, %v747_v36  ;;  %v646_v43 = vmax.f32 %v576_v38, 0.0  ;;  %v751_v44 = vrot.slane %v747_v36, 4  ;;  %1124 = vmatpush.bf16.msra.mxu3 %v3987_v33 }
  0xf8   : > { %1430 = vrot.lane.b32.xlu0 %v1259_v40, %s4687_s17  ;;  %v3982_v40 = vld [vmem:[%s6421_s1 + $0x20] sm:$0xf] }
  0xf9   : > { %v908_v46 = vsel %vm5023_vm8, %v750_v42, %v907_v41  ;;  %v727_v47 = vpack.c.bf16 %v646_v43, %v646_v43 }
  0xfa   : > { %909 = vst [vmem:[#allocation2 + $0xc] sm:$0xf] %v908_v46  ;;  %v4416_v46 = vld [vmem:[%s6421_s1 + $0x28] sm:$0xf0] }
  0xfb   : > { %v753_v49 = vshrl.u32 %v727_v47, 16  ;;  %v756_v52 = vshll.u32 %v727_v47, 16  ;;  %v919_v47 = vld [vmem:[#allocation2 + $0x20] sm:$0x1] }
  0xfc   : > { %v578_v50 = vpop.f32.mrf.mxu2 }
  0xfd   : > { %v755_v51 = vrot.slane %v753_v49, 7  ;;  %v579_v53 = vadd.f32 %v578_v50, %v5054_v12  ;;  %v3983_v50 = vor.u32 %v4416_v46, %v3982_v40 }
  0xff   : > { %v758_v56 = vor.u32 %v756_v52, %v755_v51  ;;  %v760_v59 = vrot.slane %v755_v51, 4  ;;  %v647_v60 = vmax.f32 %v579_v53, 0.0  ;;  %1125 = vmatpush.bf16.msra.mxu3 %v3983_v50 }
 0x101   : > { %v759_v61 = vsel %vm5038_vm10, %v751_v44, %v758_v56  ;;  %v913_v62 = vsel %vm4973_vm3, %v760_v59, %v912_v54  ;;  %v728_v63 = vpack.c.bf16 %v647_v60, %v647_v60  ;;  %v1212_v1 = vld [vmem:[#allocation2 + $0xc] sm:$0xf]  ;;  %v3978_v59 = vld [vmem:[%s6421_s1 + $0x8] sm:$0xf]  ;;  %v4415_v60 = vld [vmem:[%s6421_s1 + $0x10] sm:$0xf0] }
 0x102   : > { %911 = vst.msk [vmem:[#allocation2 + $0x10] sm:$0xf] %vm905_vm7, %v759_v61  ;;  %v1261_v2 = vshrl.u32 %v1212_v1, 16  ;;  %v1264_v3 = vshll.u32 %v1212_v1, 16  ;;  %v1179_v20 = vld [vmem:[#allocation2 + $0xc] sm:$0xf] }
 0x103   : > { %914 = vst [vmem:[#allocation2 + $0x14] sm:$0x1] %v913_v62  ;;  %v762_v4 = vshrl.u32 %v728_v63, 16  ;;  %v765_v5 = vshll.u32 %v728_v63, 16 }
 0x104   : > { %v580_v9 = vpop.f32.mrf.mxu2  ;;  %v1263_v10 = vrot.slane %v1261_v2, 4  ;;  %v1266_v11 = vrot.slane %v1264_v3, 5  ;;  %1195 = vst.msk [vmem:[#allocation3 + $0x28] sm:$0xf] %vm905_vm7, %v1179_v20  ;;  %v3979_v2 = vor.u32 %v4415_v60, %v3978_v59 }
 0x105   : > { %v764_v15 = vrot.slane %v762_v4, 7  ;;  %v581_v16 = vadd.f32 %v580_v9, %v5054_v12 }
 0x106   : > { %v1267_v23 = vor.u32 %v1266_v11, %v1263_v10  ;;  %1126 = vmatpush.bf16.msra.mxu3 %v3979_v2 }
 0x107   : > { %v767_v21 = vor.u32 %v765_v5, %v764_v15  ;;  %v648_v57 = vmax.f32 %v581_v16, 0.0  ;;  %v768_v52 = vrot.slane %v764_v15, 4  ;;  %v679_v15 = vld [vmem:[#allocation2 + $0x3c] sm:$0x1]  ;;  %v4414_v16 = vld [vmem:[%s1076_s23] sm:$0xff] }
 0x108   : > { %v1268_v36 = vrot.slane %v1267_v23, 4  ;;  %v680_v19 = vsel %vm4973_vm3, 0, %v679_v15  ;;  %s5503_s23 = scalar_select %p1073_p2, 1, 0 }
 0x109   : > { %v916_v26 = vsel %vm5023_vm8, %v767_v21, %v915_v18  ;;  %v729_v27 = vpack.c.bf16 %v648_v57, %v648_v57  ;;  %v1213_v29 = vld [vmem:[#allocation2 + $0x10] sm:$0xf]  ;;  %v922_v57 = vld [vmem:[#allocation2 + $0x24] sm:$0xf]  ;;  %681 = vst [vmem:[#allocation2 + $0x3c] sm:$0x1] %v680_v19  ;;  %3992 = vmatmul.msk.bf16.vlgmr.msra.gmra.mxu3 %vm441_vm0, %v4414_v16 }
 0x10a   : > { %917 = vst [vmem:[#allocation2 + $0x18] sm:$0xf] %v916_v26  ;;  %v1270_v31 = vshll.u32 %v1213_v29, 16  ;;  %v1274_v32 = vshrl.u32 %v1213_v29, 16  ;;  %v1214_v45 = vld [vmem:[#allocation2 + $0x14] sm:$0x1] }
 0x10b   : > { %v770_v34 = vshrl.u32 %v729_v27, 16  ;;  %v773_v42 = vshll.u32 %v729_v27, 16  ;;  %v1180_v51 = vld [vmem:[#allocation2 + $0x10] sm:$0xf]  ;;  %v1280_v56 = vshll.u32 %v1214_v45, 16 }
 0x10c   : > { %v583_v35 = vpop.f32.mrf.mxu2  ;;  %v1272_v37 = vrot.slane %v1270_v31, 5  ;;  %v1276_v38 = vrot.slane %v1274_v32, 4  ;;  %1196 = vst.msk [vmem:[#allocation3 + $0x3c] sm:$0xf] %vm905_vm7, %v1180_v51 }
 0x10d   : > { %v772_v41 = vrot.slane %v770_v34, 7  ;;  %v584_v43 = vadd.f32 %v583_v35, %v5054_v12  ;;  %v1282_v11 = vrot.slane %v1280_v56, 5 }
 0x10e   : > { %v1273_v48 = vsel %vm5059_vm13, %v1268_v36, %v1272_v37  ;;  %v1277_v49 = vor.u32 %v1276_v38, %v1272_v37 }
 0x10f   : > { %v775_v53 = vor.u32 %v773_v42, %v772_v41  ;;  %v777_v54 = vrot.slane %v772_v41, 4  ;;  %v649_v44 = vmax.f32 %v584_v43, 0.0  ;;  %1432 = vrot.lane.b32.xlu1 %v1273_v48, %s4687_s17  ;;  %v711_v41 = vld [vmem:[#allocation2 + $0x44] sm:$0x1] }
 0x110   : > { %v1278_v3 = vrot.slane %v1277_v49, 4  ;;  %v712_v56 = vsel %vm4990_vm5, 0, %v711_v41 }
 0x111   : > { %v776_v61 = vsel %vm5038_vm10, %v768_v52, %v775_v53  ;;  %v920_v62 = vsel %vm4973_vm3, %v777_v54, %v919_v47  ;;  %v730_v63 = vpack.c.bf16 %v649_v44, %v649_v44  ;;  %v1215_v1 = vld [vmem:[#allocation2 + $0x18] sm:$0xf]  ;;  %v926_v54 = vld [vmem:[#allocation2 + $0x2c] sm:$0x1]  ;;  %713 = vst [vmem:[#allocation2 + $0x44] sm:$0x1] %v712_v56 }
 0x112   : > { %918 = vst.msk [vmem:[#allocation2 + $0x1c] sm:$0xf] %vm905_vm7, %v776_v61  ;;  %v1285_v4 = vshrl.u32 %v1215_v1, 16  ;;  %v1288_v5 = vshll.u32 %v1215_v1, 16  ;;  %v1181_v20 = vld [vmem:[#allocation2 + $0x18] sm:$0xf]  ;;  %v1283_v23 = vsel %vm5059_vm13, %v1278_v3, %v1282_v11 }
 0x113   : > { %921 = vst [vmem:[#allocation2 + $0x20] sm:$0x1] %v920_v62  ;;  %v779_v8 = vshrl.u32 %v730_v63, 16  ;;  %v782_v9 = vshll.u32 %v730_v63, 16  ;;  %v2457_v21 = vld [vmem:[#allocation2 + $0x18] sm:$0xe] }
 0x114   : > { %v585_v10 = vpop.f32.mrf.mxu2  ;;  %v1287_v13 = vrot.slane %v1285_v4, 4  ;;  %v1290_v14 = vrot.slane %v1288_v5, 5  ;;  %1197 = vst.msk [vmem:[#allocation3 + $0x50] sm:$0xf] %vm905_vm7, %v1181_v20  ;;  %v4009_v27 = vrot.slane %v2457_v21, 9 }
 0x115   : > { %v781_v17 = vrot.slane %v779_v8, 7  ;;  %v586_v18 = vadd.f32 %v585_v10, %v5054_v12 }
 0x116   : > { %v1291_v26 = vor.u32 %v1290_v14, %v1287_v13  ;;  %v682_v14 = vld [vmem:[#allocation2 + $0x48] sm:$0x1] }
 0x117   : > { %v784_v24 = vor.u32 %v782_v9, %v781_v17  ;;  %v650_v25 = vmax.f32 %v586_v18, 0.0  ;;  %1434 = vrot.lane.b32.xlu1 %v1283_v23, %s4687_s17  ;;  %v785_v53 = vrot.slane %v781_v17, 4  ;;  %v683_v19 = vsel %vm4973_vm3, 0, %v682_v14  ;;  %v936_v14 = vld [vmem:[#allocation2 + $0x3c] sm:$0xf] }
 0x118   : > { %v1292_v38 = vrot.slane %v1291_v26, 4  ;;  %684 = vst [vmem:[#allocation2 + $0x48] sm:$0x1] %v683_v19 }
 0x119   : > { %v2458_v29 = vld [vmem:[#allocation2 + $0x1c] sm:$0xf]  ;;  %v923_v30 = vsel %vm5023_vm8, %v784_v24, %v922_v57  ;;  %v731_v28 = vpack.c.bf16 %v650_v25, %v650_v25  ;;  %v929_v57 = vld [vmem:[#allocation2 + $0x30] sm:$0xf] }
 0x11a   : > { %v1216_v31 = vld [vmem:[#allocation2 + $0x1c] sm:$0xf]  ;;  %v2459_v32 = vld [vmem:[#allocation2 + $0x20] sm:$0x1]  ;;  %v2507_v33 = vrot.slane %v2458_v29, 5 }
 0x11b   : > { %924 = vst [vmem:[#allocation2 + $0x24] sm:$0xf] %v923_v30  ;;  %v1294_v34 = vshll.u32 %v1216_v31, 16  ;;  %v2510_v36 = vrot.slane %v2459_v32, 5  ;;  %v787_v37 = vshrl.u32 %v731_v28, 16  ;;  %v1298_v40 = vshrl.u32 %v1216_v31, 16 }
 0x11c   : > { %v2508_v42 = vsel %vm5147_vm1, %v4009_v27, %v2507_v33  ;;  %v2509_v43 = vrot.slane %v2507_v33, 4  ;;  %v790_v45 = vshll.u32 %v731_v28, 16  ;;  %v588_v46 = vpop.f32.mrf.mxu2  ;;  %v1217_v51 = vld [vmem:[#allocation2 + $0x20] sm:$0x1]  ;;  %v1182_v5 = vld [vmem:[#allocation2 + $0x1c] sm:$0xf] }
 0x11d   : > { %v1296_v47 = vrot.slane %v1294_v34, 5  ;;  %2577 = vst.msk [vmem:[#allocation3 + $0x10] sm:$0xf] %vm905_vm7, %v2508_v42  ;;  %v789_v48 = vrot.slane %v787_v37, 7  ;;  %v589_v49 = vadd.f32 %v588_v46, %v5054_v12  ;;  %v1300_v50 = vrot.slane %v1298_v40, 4 }
 0x11e   : > { %v2511_v52 = vsel %vm5147_vm1, %v2509_v43, %v2510_v36  ;;  %v1304_v63 = vshll.u32 %v1217_v51, 16  ;;  %1198 = vst.msk [vmem:[#allocation3 + $0x64] sm:$0xf] %vm905_vm7, %v1182_v5  ;;  %v714_v28 = vld [vmem:[#allocation2 + $0x50] sm:$0x1] }
 0x11f   : > { %v1297_v44 = vsel %vm5059_vm13, %v1292_v38, %v1296_v47  ;;  %2578 = vst.msk [vmem:[#allocation3 + $0x24] sm:$0xf] %vm905_vm7, %v2511_v52  ;;  %v792_v59 = vor.u32 %v790_v45, %v789_v48  ;;  %v794_v60 = vrot.slane %v789_v48, 4  ;;  %v651_v61 = vmax.f32 %v589_v49, 0.0 }
 0x120   : > { %1436 = vrot.lane.b32.xlu2 %v1297_v44, %s4687_s17  ;;  %v1301_v62 = vor.u32 %v1300_v50, %v1296_v47  ;;  %v1306_v16 = vrot.slane %v1304_v63, 5  ;;  %v715_v33 = vsel %vm4990_vm5, 0, %v714_v28  ;;  %v933_v47 = vld [vmem:[#allocation2 + $0x38] sm:$0x1] }
 0x121   : > { %v793_v1 = vsel %vm5038_vm10, %v785_v53, %v792_v59  ;;  %v927_v2 = vsel %vm4973_vm3, %v794_v60, %v926_v54  ;;  %v732_v3 = vpack.c.bf16 %v651_v61, %v651_v61  ;;  %716 = vst [vmem:[#allocation2 + $0x50] sm:$0x1] %v715_v33 }
 0x122   : > { %v1218_v4 = vld [vmem:[#allocation2 + $0x24] sm:$0xf]  ;;  %925 = vst.msk [vmem:[#allocation2 + $0x28] sm:$0xf] %vm905_vm7, %v793_v1  ;;  %v1302_v8 = vrot.slane %v1301_v62, 4 }
 0x123   : > { %v1309_v9 = vshrl.u32 %v1218_v4, 16  ;;  %v1312_v10 = vshll.u32 %v1218_v4, 16  ;;  %928 = vst [vmem:[#allocation2 + $0x2c] sm:$0x1] %v927_v2  ;;  %v796_v11 = vshrl.u32 %v732_v3, 16  ;;  %v799_v13 = vshll.u32 %v732_v3, 16 }
 0x124   : > { %v590_v15 = vpop.f32.mrf.mxu2  ;;  %v1307_v23 = vsel %vm5059_vm13, %v1302_v8, %v1306_v16  ;;  %v685_v4 = vld [vmem:[#allocation2 + $0x54] sm:$0x1]  ;;  %v1183_v19 = vld [vmem:[#allocation2 + $0x24] sm:$0xf] }
 0x125   : > { %v1311_v17 = vrot.slane %v1309_v9, 4  ;;  %v1314_v18 = vrot.slane %v1312_v10, 5  ;;  %v798_v20 = vrot.slane %v796_v11, 7  ;;  %v591_v21 = vadd.f32 %v590_v15, %v5054_v12  ;;  %v4466_v15 = vld [vmem:[%s6423_s3 + $0x38] sm:$0xff]  ;;  %1199 = vst.msk [vmem:[#allocation3 + $0x78] sm:$0xf] %vm905_vm7, %v1183_v19 }
 0x126   : > { %v686_v10 = vsel %vm4973_vm3, 0, %v685_v4  ;;  %3157 = vmatpush.bf16.msrb.mxu3 %v4466_v15 }
 0x127   : > { %v801_v24 = vor.u32 %v799_v13, %v798_v20  ;;  %v652_v25 = vmax.f32 %v591_v21, 0.0  ;;  %v1315_v26 = vor.u32 %v1314_v18, %v1311_v17  ;;  %v802_v50 = vrot.slane %v798_v20, 4  ;;  %687 = vst [vmem:[#allocation2 + $0x54] sm:$0x1] %v686_v10  ;;  %v4462_v10 = vld [vmem:[%s6423_s3 + $0x18] sm:$0xff] }
 0x128   : > { %1438 = vrot.lane.b32.xlu2 %v1307_v23, %s4687_s17 }
 0x129   : > { %v930_v27 = vsel %vm5023_vm8, %v801_v24, %v929_v57  ;;  %v733_v29 = vpack.c.bf16 %v652_v25, %v652_v25  ;;  %v1219_v30 = vld [vmem:[#allocation2 + $0x28] sm:$0xf]  ;;  %v1316_v38 = vrot.slane %v1315_v26, 4  ;;  %v717_v24 = vld [vmem:[#allocation2 + $0x5c] sm:$0x1] }
 0x12a   : > { %931 = vst [vmem:[#allocation2 + $0x30] sm:$0xf] %v930_v27  ;;  %v1318_v31 = vshll.u32 %v1219_v30, 16  ;;  %v1322_v32 = vshrl.u32 %v1219_v30, 16  ;;  %v1220_v36 = vld [vmem:[#allocation2 + $0x2c] sm:$0x1] }
 0x12b   : > { %v804_v34 = vshrl.u32 %v733_v29, 16  ;;  %v1328_v42 = vshll.u32 %v1220_v36, 16  ;;  %v807_v45 = vshll.u32 %v733_v29, 16  ;;  %v718_v27 = vsel %vm4990_vm5, 0, %v717_v24  ;;  %v4465_v36 = vld [vmem:[%s6423_s3 + $0x30] sm:$0xff] }
 0x12c   : > { %v593_v37 = vpop.f32.mrf.mxu2  ;;  %v1320_v40 = vrot.slane %v1318_v31, 5  ;;  %v1324_v41 = vrot.slane %v1322_v32, 4  ;;  %719 = vst [vmem:[#allocation2 + $0x5c] sm:$0x1] %v718_v27  ;;  %3158 = vmatpush.bf16.msrb.mxu3 %v4465_v36  ;;  %v4460_v36 = vld [vmem:[%s6423_s3 + $0x8] sm:$0xff] }
 0x12d   : > { %v806_v43 = vrot.slane %v804_v34, 7  ;;  %v594_v46 = vadd.f32 %v593_v37, %v5054_v12  ;;  %v1330_v44 = vrot.slane %v1328_v42, 5 }
 0x12e   : > { %v1321_v48 = vsel %vm5059_vm13, %v1316_v38, %v1320_v40  ;;  %v1325_v49 = vor.u32 %v1324_v41, %v1320_v40  ;;  %v940_v41 = vld [vmem:[#allocation2 + $0x44] sm:$0x1] }
 0x12f   : > { %v809_v51 = vor.u32 %v807_v45, %v806_v43  ;;  %v811_v52 = vrot.slane %v806_v43, 4  ;;  %v653_v53 = vmax.f32 %v594_v46, 0.0  ;;  %1440 = vrot.lane.b32.xlu0 %v1321_v48, %s4687_s17  ;;  %v4464_v45 = vld [vmem:[%s6423_s3 + $0x28] sm:$0xff] }
 0x130   : > { %v1326_v54 = vrot.slane %v1325_v49, 4  ;;  %3159 = vmatpush.bf16.msrb.mxu3 %v4464_v45 }
 0x131   : > { %v810_v56 = vsel %vm5038_vm10, %v802_v50, %v809_v51  ;;  %v934_v59 = vsel %vm4973_vm3, %v811_v52, %v933_v47  ;;  %v734_v60 = vpack.c.bf16 %v653_v53, %v653_v53  ;;  %v1221_v61 = vld [vmem:[#allocation2 + $0x30] sm:$0xf] }
 0x132   : > { %932 = vst.msk [vmem:[#allocation2 + $0x34] sm:$0xf] %vm905_vm7, %v810_v56  ;;  %v1331_v62 = vsel %vm5059_vm13, %v1326_v54, %v1330_v44  ;;  %v1333_v63 = vshrl.u32 %v1221_v61, 16  ;;  %v1336_v1 = vshll.u32 %v1221_v61, 16  ;;  %v1185_v16 = vld [vmem:[#allocation2 + $0x30] sm:$0xf] }
 0x133   : > { %935 = vst [vmem:[#allocation2 + $0x38] sm:$0x1] %v934_v59  ;;  %v813_v2 = vshrl.u32 %v734_v60, 16  ;;  %v816_v3 = vshll.u32 %v734_v60, 16  ;;  %1442 = vrot.lane.b32.xlu1 %v1331_v62, %s4687_s17  ;;  %v1184_v61 = vld [vmem:[#allocation2 + $0x28] sm:$0xf] }
 0x134   : > { %v595_v5 = vpop.f32.mrf.mxu2  ;;  %v1335_v8 = vrot.slane %v1333_v63, 4  ;;  %v1338_v9 = vrot.slane %v1336_v1, 5  ;;  %1201 = vst.msk [vmem:[#allocation3 + $0xa0] sm:$0xf] %vm905_vm7, %v1185_v16  ;;  %v4463_v1 = vld [vmem:[%s6423_s3 + $0x20] sm:$0xff] }
 0x135   : > { %v815_v11 = vrot.slane %v813_v2, 7  ;;  %v596_v13 = vadd.f32 %v595_v5, %v5054_v12  ;;  %1200 = vst.msk [vmem:[#allocation3 + $0x8c] sm:$0xf] %vm905_vm7, %v1184_v61  ;;  %3160 = vmatpush.bf16.msrb.mxu3 %v4463_v1  ;;  %v950_v1 = vld [vmem:[#allocation2 + $0x54] sm:$0xf] }
 0x136   : > { %v1339_v20 = vor.u32 %v1338_v9, %v1335_v8  ;;  %v943_v9 = vld [vmem:[#allocation2 + $0x48] sm:$0xf] }
 0x137   : > { %v818_v17 = vor.u32 %v816_v3, %v815_v11  ;;  %v654_v18 = vmax.f32 %v596_v13, 0.0  ;;  %v819_v46 = vrot.slane %v815_v11, 4 }
 0x138   : > { %v1340_v31 = vrot.slane %v1339_v20, 4  ;;  %v4461_v20 = vld [vmem:[%s6423_s3 + $0x10] sm:$0xff] }
 0x139   : > { %v937_v21 = vsel %vm5023_vm8, %v818_v17, %v936_v14  ;;  %v735_v57 = vpack.c.bf16 %v654_v18, %v654_v18  ;;  %v1222_v23 = vld [vmem:[#allocation2 + $0x34] sm:$0xf]  ;;  %3161 = vmatpush.bf16.msrb.mxu3 %v4462_v10  ;;  %v2180_v10 = vld [vmem:[#allocation2 + $0x24] sm:$0xf] }
 0x13a   : > { %938 = vst [vmem:[#allocation2 + $0x3c] sm:$0xf] %v937_v21  ;;  %v1342_v25 = vshll.u32 %v1222_v23, 16  ;;  %v1346_v26 = vshrl.u32 %v1222_v23, 16  ;;  %v1223_v30 = vld [vmem:[#allocation2 + $0x38] sm:$0x1] }
 0x13b   : > { %v821_v29 = vshrl.u32 %v735_v57, 16  ;;  %v1352_v34 = vshll.u32 %v1223_v30, 16  ;;  %v824_v38 = vshll.u32 %v735_v57, 16 }
 0x13c   : > { %v598_v28 = vpop.f32.mrf.mxu2  ;;  %v1344_v32 = vrot.slane %v1342_v25, 5  ;;  %v1348_v33 = vrot.slane %v1346_v26, 4 }
 0x13d   : > { %v823_v37 = vrot.slane %v821_v29, 7  ;;  %v599_v40 = vadd.f32 %v598_v28, %v5054_v12  ;;  %v1354_v51 = vrot.slane %v1352_v34, 5  ;;  %3162 = vmatpush.bf16.msrb.mxu3 %v4461_v20 }
 0x13e   : > { %v1345_v42 = vsel %vm5059_vm13, %v1340_v31, %v1344_v32  ;;  %v1349_v43 = vor.u32 %v1348_v33, %v1344_v32  ;;  %v1186_v31 = vld [vmem:[#allocation2 + $0x34] sm:$0xf]  ;;  %v947_v32 = vld [vmem:[#allocation2 + $0x50] sm:$0x1] }
 0x13f   : > { %v826_v47 = vor.u32 %v824_v38, %v823_v37  ;;  %v828_v48 = vrot.slane %v823_v37, 4  ;;  %v655_v49 = vmax.f32 %v599_v40, 0.0  ;;  %1444 = vrot.lane.b32.xlu2 %v1345_v42, %s4687_s17  ;;  %1202 = vst.msk [vmem:[#allocation3 + $0xb4] sm:$0xf] %vm905_vm7, %v1186_v31 }
 0x140   : > { %v1350_v50 = vrot.slane %v1349_v43, 4 }
 0x141   : > { %v827_v52 = vsel %vm5038_vm10, %v819_v46, %v826_v47  ;;  %v941_v53 = vsel %vm4973_vm3, %v828_v48, %v940_v41  ;;  %v736_v54 = vpack.c.bf16 %v655_v49, %v655_v49  ;;  %v1224_v44 = vld [vmem:[#allocation2 + $0x3c] sm:$0xf]  ;;  %3163 = vmatpush.bf16.msrb.mxu3 %v4460_v36 }
 0x142   : > { %939 = vst.msk [vmem:[#allocation2 + $0x40] sm:$0xf] %vm905_vm7, %v827_v52  ;;  %v1355_v56 = vsel %vm5059_vm13, %v1350_v50, %v1354_v51  ;;  %v1357_v59 = vshrl.u32 %v1224_v44, 16  ;;  %v1360_v60 = vshll.u32 %v1224_v44, 16  ;;  %v954_v36 = vld [vmem:[#allocation2 + $0x5c] sm:$0x1] }
 0x143   : > { %942 = vst [vmem:[#allocation2 + $0x44] sm:$0x1] %v941_v53  ;;  %v830_v62 = vshrl.u32 %v736_v54, 16  ;;  %v833_v63 = vshll.u32 %v736_v54, 16  ;;  %1446 = vrot.lane.b32.xlu0 %v1355_v56, %s4687_s17  ;;  %v4459_v53 = vld [vmem:[%s6423_s3] sm:$0xff] }
 0x144   : > { %v600_v2 = vpop.f32.mrf.mxu2  ;;  %v1359_v3 = vrot.slane %v1357_v59, 4  ;;  %v1362_v4 = vrot.slane %v1360_v60, 5 }
 0x145   : > { %v832_v5 = vrot.slane %v830_v62, 7  ;;  %v601_v8 = vadd.f32 %v600_v2, %v5054_v12  ;;  %v2177_v2 = vld [vmem:[#allocation2 + $0x18] sm:$0xf]  ;;  %3164 = vmatpush.bf16.msrb.mxu3 %v4459_v53  ;;  %v5271_v53 = vld [vmem:[#allocation2 + $0xc] sm:$0xe] }
 0x146   : > { %v1363_v14 = vor.u32 %v1362_v4, %v1359_v3  ;;  %v1187_v3 = vld [vmem:[#allocation2 + $0x3c] sm:$0xf] }
 0x147   : > { %v835_v11 = vor.u32 %v833_v63, %v832_v5  ;;  %v656_v13 = vmax.f32 %v601_v8, 0.0  ;;  %v836_v38 = vrot.slane %v832_v5, 4  ;;  %v5255_v63 = vld [vmem:[#allocation2 + $0x10] sm:$0xf]  ;;  %v2178_v8 = vld [vmem:[#allocation2 + $0x1c] sm:$0xf] }
 0x148   : > { %v1364_v24 = vrot.slane %v1363_v14, 4  ;;  %1203 = vst.msk [vmem:[#allocation3 + $0xc8] sm:$0xf] %vm905_vm7, %v1187_v3  ;;  %v2211_v20 = vshll.u32 %v2178_v8, 16 }
 0x149   : > { %v944_v15 = vsel %vm5023_vm8, %v835_v11, %v943_v9  ;;  %v737_v16 = vpack.c.bf16 %v656_v13, %v656_v13  ;;  %v1225_v17 = vld [vmem:[#allocation2 + $0x40] sm:$0xf] }
 0x14a   : > { %945 = vst [vmem:[#allocation2 + $0x48] sm:$0xf] %v944_v15  ;;  %v1366_v18 = vshll.u32 %v1225_v17, 16  ;;  %v1370_v19 = vshrl.u32 %v1225_v17, 16  ;;  %v1226_v57 = vld [vmem:[#allocation2 + $0x44] sm:$0x1] }
 0x14b   : > { %v838_v21 = vshrl.u32 %v737_v16, 16  ;;  %v1376_v27 = vshll.u32 %v1226_v57, 16  ;;  %v841_v30 = vshll.u32 %v737_v16, 16  ;;  %v1188_v37 = vld [vmem:[#allocation2 + $0x40] sm:$0xf]  ;;  %v2202_v15 = vshrl.u32 %v2177_v2, 16 }
 0x14c   : > { %v603_v23 = vpop.f32.mrf.mxu2  ;;  %v1368_v25 = vrot.slane %v1366_v18, 5  ;;  %v1372_v26 = vrot.slane %v1370_v19, 4  ;;  %1204 = vst.msk [vmem:[#allocation3 + $0xdc] sm:$0xf] %vm905_vm7, %v1188_v37  ;;  %v2205_v16 = vshll.u32 %v2177_v2, 16 }
 0x14d   : > { %v840_v29 = vrot.slane %v838_v21, 7  ;;  %v604_v28 = vadd.f32 %v603_v23, %v5054_v12  ;;  %v1378_v45 = vrot.slane %v1376_v27, 5  ;;  %v5260_v17 = vld [vmem:[#allocation2 + $0x20] sm:$0x1]  ;;  %v2026_v21 = vrot.slane %v5255_v63, 5 }
 0x14e   : > { %v1369_v33 = vsel %vm5059_vm13, %v1364_v24, %v1368_v25  ;;  %v1373_v34 = vor.u32 %v1372_v26, %v1368_v25  ;;  %v2215_v24 = vshrl.u32 %v2178_v8, 16  ;;  %v2226_v25 = vshrl.u32 %v2180_v10, 16 }
 0x14f   : > { %v843_v40 = vor.u32 %v841_v30, %v840_v29  ;;  %v845_v41 = vrot.slane %v840_v29, 4  ;;  %v657_v42 = vmax.f32 %v604_v28, 0.0  ;;  %1448 = vrot.lane.b32.xlu1 %v1369_v33, %s4687_s17  ;;  %v2229_v26 = vshll.u32 %v2180_v10, 16  ;;  %v4494_v10 = vld [vmem:[%s6423_s3 + $0x118] sm:$0xff] }
 0x150   : > { %v1374_v43 = vrot.slane %v1373_v34, 4  ;;  %v2204_v33 = vrot.slane %v2202_v15, 4  ;;  %v2207_v34 = vrot.slane %v2205_v16, 5  ;;  %v5297_v16 = vld [vmem:[#allocation2 + $0x28] sm:$0xf]  ;;  %3357 = vmatpush.bf16.msra.mxu3 %v4494_v10 }
 0x151   : > { %v844_v46 = vsel %vm5038_vm10, %v836_v38, %v843_v40  ;;  %v948_v47 = vsel %vm4973_vm3, %v845_v41, %v947_v32  ;;  %v738_v48 = vpack.c.bf16 %v657_v42, %v657_v42  ;;  %v1227_v49 = vld [vmem:[#allocation2 + $0x48] sm:$0xf]  ;;  %v5265_v40 = vrot.slane %v2211_v20, 5  ;;  %v5268_v42 = vld [vmem:[#allocation2 + $0x1c] sm:$0xf] }
 0x152   : > { %946 = vst.msk [vmem:[#allocation2 + $0x4c] sm:$0xf] %vm905_vm7, %v844_v46  ;;  %v1379_v50 = vsel %vm5059_vm13, %v1374_v43, %v1378_v45  ;;  %v1381_v51 = vshrl.u32 %v1227_v49, 16  ;;  %v1384_v52 = vshll.u32 %v1227_v49, 16  ;;  %v2221_v41 = vshll.u32 %v5260_v17, 16 }
 0x153   : > { %949 = vst [vmem:[#allocation2 + $0x50] sm:$0x1] %v948_v47  ;;  %v847_v54 = vshrl.u32 %v738_v48, 16  ;;  %v850_v44 = vshll.u32 %v738_v48, 16  ;;  %1450 = vrot.lane.b32.xlu2 %v1379_v50, %s4687_s17  ;;  %v2217_v47 = vrot.slane %v2215_v24, 4 }
 0x154   : > { %v605_v56 = vpop.f32.mrf.mxu2  ;;  %v1383_v59 = vrot.slane %v1381_v51, 4  ;;  %v1386_v60 = vrot.slane %v1384_v52, 5  ;;  %v1189_v48 = vld [vmem:[#allocation2 + $0x48] sm:$0xf]  ;;  %v2228_v51 = vrot.slane %v2226_v25, 4  ;;  %v2231_v52 = vrot.slane %v2229_v26, 5 }
 0x155   : > { %v849_v61 = vrot.slane %v847_v54, 7  ;;  %v606_v62 = vadd.f32 %v605_v56, %v5054_v12  ;;  %1205 = vst.msk [vmem:[#allocation3 + $0xf0] sm:$0xf] %vm905_vm7, %v1189_v48  ;;  %v2218_v8 = vor.u32 %v2217_v47, %v5265_v40  ;;  %v5309_v25 = vrot.slane %v2221_v41, 5 }
 0x156   : > { %v1387_v9 = vor.u32 %v1386_v60, %v1383_v59  ;;  %v5278_v59 = vld [vmem:[#allocation2 + $0x14] sm:$0x1]  ;;  %v2033_v60 = vrot.slane %v5268_v42, 5  ;;  %v2232_v17 = vor.u32 %v2231_v52, %v2228_v51  ;;  %v1494_v52 = vld [vmem:[#allocation2 + $0x4] sm:$0xf] }
 0x157   : > { %v852_v4 = vor.u32 %v850_v44, %v849_v61  ;;  %v658_v5 = vmax.f32 %v606_v62, 0.0  ;;  %v853_v43 = vrot.slane %v849_v61, 4  ;;  %v5307_v24 = vrot.slane %v2218_v8, 4  ;;  %v1493_v8 = vld [vmem:[#allocation2] sm:$0xe] }
 0x158   : > { %v1388_v27 = vrot.slane %v1387_v9, 4  ;;  %v4490_v9 = vld [vmem:[%s6423_s3 + $0xf8] sm:$0xff] }
 0x159   : > { %v951_v11 = vsel %vm5023_vm8, %v852_v4, %v950_v1  ;;  %v739_v13 = vpack.c.bf16 %v658_v5, %v658_v5  ;;  %v1228_v14 = vld [vmem:[#allocation2 + $0x4c] sm:$0xf]  ;;  %v2208_v1 = vor.u32 %v2207_v34, %v2204_v33  ;;  %v5284_v4 = vld [vmem:[#allocation2 + $0x28] sm:$0xf]  ;;  %v5286_v5 = vld [vmem:[#allocation2 + $0x18] sm:$0xe]  ;;  %3304 = vmatpush.bf16.msrb.mxu2 %v4490_v9 }
 0x15a   : > { %952 = vst [vmem:[#allocation2 + $0x54] sm:$0xf] %v951_v11  ;;  %v1390_v18 = vshll.u32 %v1228_v14, 16  ;;  %v1394_v19 = vshrl.u32 %v1228_v14, 16  ;;  %v1229_v23 = vld [vmem:[#allocation2 + $0x50] sm:$0x1] }
 0x15b   : > { %v855_v57 = vshrl.u32 %v739_v13, 16  ;;  %v1400_v28 = vshll.u32 %v1229_v23, 16  ;;  %v858_v32 = vshll.u32 %v739_v13, 16  ;;  %v2146_v11 = vld [vmem:[#allocation2 + $0x1c] sm:$0xf]  ;;  %v2209_v20 = vrot.slane %v2208_v1, 4 }
 0x15c   : > { %v1392_v29 = vrot.slane %v1390_v18, 5  ;;  %v1396_v30 = vrot.slane %v1394_v19, 4  ;;  %v4001_v18 = vrot.slane %v5271_v53, 9  ;;  %v2029_v19 = vrot.slane %v5278_v59, 5  ;;  %2162 = vst.msk [vmem:[#allocation3 + $0x20] sm:$0xf] %vm905_vm7, %v2146_v11 }
 0x15d   : > { %v857_v31 = vrot.slane %v855_v57, 7  ;;  %v1402_v50 = vrot.slane %v1400_v28, 5  ;;  %v5304_v57 = vrot.slane %v2026_v21, 4  ;;  %v1728_v23 = vld [vmem:[#allocation2 + $0xc] sm:$0xf]  ;;  %v2235_v26 = vshll.u32 %v5284_v4, 16 }
 0x15e   : > { %v1393_v37 = vsel %vm5059_vm13, %v1388_v27, %v1392_v29  ;;  %v1397_v38 = vor.u32 %v1396_v30, %v1392_v29  ;;  %v4002_v27 = vrot.slane %v5286_v5, 9  ;;  %v2145_v29 = vld [vmem:[#allocation2 + $0x18] sm:$0xf]  ;;  %v2514_v30 = vrot.slane %v5297_v16, 5  ;;  %v1729_v33 = vld [vmem:[#allocation2 + $0x10] sm:$0xf] }
 0x15f   : > { %v860_v45 = vor.u32 %v858_v32, %v857_v31  ;;  %v862_v46 = vrot.slane %v857_v31, 4  ;;  %1452 = vrot.lane.b32.xlu0 %v1393_v37, %s4687_s17  ;;  %v5314_v31 = vld [vmem:[#allocation2 + $0x20] sm:$0x1]  ;;  %v5318_v32 = vrot.slane %v2033_v60, 4  ;;  %2161 = vst.msk [vmem:[#allocation3 + $0xc] sm:$0xf] %vm905_vm7, %v2145_v29  ;;  %v2214_v34 = vsel %vm5059_vm13, %v2209_v20, %v5265_v40 }
 0x160   : > { %v1398_v49 = vrot.slane %v1397_v38, 4  ;;  %v5324_v37 = vrot.slane %v2232_v17, 4  ;;  %v5326_v38 = vld [vmem:[#allocation2 + $0x2c] sm:$0x1]  ;;  %v1753_v41 = vshrl.u32 %v1728_v23, 16  ;;  %v2239_v48 = vshrl.u32 %v5284_v4, 16 }
 0x161   : > { %v861_v54 = vsel %vm5038_vm10, %v853_v43, %v860_v45  ;;  %v955_v44 = vsel %vm4973_vm3, %v862_v46, %v954_v36  ;;  %v1230_v56 = vld [vmem:[#allocation2 + $0x54] sm:$0xf]  ;;  %v5333_v40 = vrot.slane %v2235_v26, 5  ;;  %v1762_v51 = vshll.u32 %v1729_v33, 16  ;;  %v5407_v53 = vld [vmem:[#allocation2 + $0x2c] sm:$0x1] }
 0x162   : > { %953 = vst.msk [vmem:[#allocation2 + $0x58] sm:$0xf] %vm905_vm7, %v861_v54  ;;  %v1429_v61 = vpop.permute.xlu0 %1428  ;;  %v1403_v62 = vsel %vm5059_vm13, %v1398_v49, %v1402_v50  ;;  %v1405_v2 = vshrl.u32 %v1230_v56, 16  ;;  %v1408_v3 = vshll.u32 %v1230_v56, 16  ;;  %v1191_v15 = vld [vmem:[#allocation2 + $0x54] sm:$0xf] }
 0x163   : > { %956 = vst [vmem:[#allocation2 + $0x5c] sm:$0x1] %v955_v44  ;;  %1454 = vrot.lane.b32.xlu1 %v1403_v62, %s4687_s17  ;;  %v5329_v49 = vld [vmem:[#allocation2 + $0x30] sm:$0xf]  ;;  %v1756_v50 = vshll.u32 %v1728_v23, 16  ;;  %v2245_v1 = vshll.u32 %v5326_v38, 16 }
 0x164   : > { %1477 = vst.msk [vmem:[#allocation3] sm:$0xf] %vm1476_vm2, %v1429_v61  ;;  %v1407_v13 = vrot.slane %v1405_v2, 4  ;;  %v1410_v14 = vrot.slane %v1408_v3, 5  ;;  %v1495_v62 = vld [vmem:[#allocation2 + $0x8] sm:$0x1] }
 0x165   : > { %1207 = vst.msk [vmem:[#allocation3 + $0x118] sm:$0xf] %vm905_vm7, %v1191_v15  ;;  %v2036_v2 = vrot.slane %v5314_v31, 5  ;;  %v1766_v3 = vshrl.u32 %v1729_v33, 16  ;;  %v1755_v4 = vrot.slane %v1753_v41, 4  ;;  %v5339_v11 = vrot.slane %v2239_v48, 4 }
 0x166   : > { %v1411_v28 = vor.u32 %v1410_v14, %v1407_v13  ;;  %v1758_v13 = vrot.slane %v1756_v50, 5  ;;  %v1730_v14 = vld [vmem:[#allocation2 + $0x14] sm:$0x1]  ;;  %v5341_v15 = vld [vmem:[#allocation2 + $0x10] sm:$0xf]  ;;  %v2250_v17 = vshrl.u32 %v5329_v49, 16 }
 0x167   : > { %v4489_v20 = vld [vmem:[%s6423_s3 + $0xf0] sm:$0xff]  ;;  %v1764_v23 = vrot.slane %v1762_v51, 5  ;;  %v1546_v26 = vrot.slane %v1494_v52, 5  ;;  %v1549_v29 = vrot.slane %v1495_v62, 5  ;;  %v3993_v38 = vrot.slane %v1493_v8, 9  ;;  %v4487_v16 = vld [vmem:[%s6423_s3 + $0xe0] sm:$0xff] }
 0x168   : > { %v1412_v54 = vrot.slane %v1411_v28, 4  ;;  %3305 = vmatpush.bf16.msrb.mxu2 %v4489_v20  ;;  %v2253_v51 = vshll.u32 %v5329_v49, 16  ;;  %v1731_v8 = vld [vmem:[#allocation2 + $0x18] sm:$0xf] }
 0x169   : > { %v1231_v36 = vld [vmem:[#allocation2 + $0x58] sm:$0xf] }
 0x16a   : > { %v1431_v43 = vpop.permute.xlu0 %1430  ;;  %v1414_v45 = vshll.u32 %v1231_v36, 16  ;;  %v1418_v46 = vshrl.u32 %v1231_v36, 16  ;;  %v1232_v47 = vld [vmem:[#allocation2 + $0x5c] sm:$0x1]  ;;  %v1759_v36 = vor.u32 %v1758_v13, %v1755_v4  ;;  %v1496_v4 = vld [vmem:[#allocation2 + $0xc] sm:$0xe] }
 0x16b   : > { %1478 = vst.msk [vmem:[#allocation3 + $0x14] sm:$0xf] %vm1476_vm2, %v1431_v43  ;;  %2393 = vrot.lane.b32.xlu1 %v2214_v34, %s4687_s17  ;;  %v1424_v61 = vshll.u32 %v1232_v47, 16  ;;  %v1633_v34 = vld [vmem:[#allocation2 + $0x10] sm:$0xf]  ;;  %v1548_v43 = vrot.slane %v1546_v26, 4 }
 0x16c   : > { %v1416_v44 = vrot.slane %v1414_v45, 5  ;;  %v1420_v56 = vrot.slane %v1418_v46, 4  ;;  %v4019_v41 = vld [vmem:[#allocation3] sm:$0xf]  ;;  %v1768_v45 = vrot.slane %v1766_v3, 4  ;;  %v1772_v46 = vshll.u32 %v1730_v14, 16 }
 0x16d   : > { %v1426_v33 = vrot.slane %v1424_v61, 5  ;;  %v1553_v47 = vrot.slane %v5341_v15, 5  ;;  %v1760_v52 = vrot.slane %v1759_v36, 4  ;;  %v2148_v61 = vld [vmem:[#allocation2 + $0x28] sm:$0xf]  ;;  %v1550_v62 = vsel %vm5147_vm1, %v1548_v43, %v1549_v29 }
 0x16e   : > { %v1417_v9 = vsel %vm5059_vm13, %v1412_v54, %v1416_v44  ;;  %v1421_v10 = vor.u32 %v1420_v56, %v1416_v44  ;;  %v1547_v54 = vsel %vm5147_vm1, %v3993_v38, %v1546_v26  ;;  %v1498_v44 = vld [vmem:[#allocation2 + $0x14] sm:$0x1]  ;;  %v1769_v3 = vor.u32 %v1768_v45, %v1764_v23  ;;  %2164 = vst.msk [vmem:[#allocation3 + $0x48] sm:$0xf] %vm905_vm7, %v2148_v61  ;;  %v5373_v36 = vld [vmem:[#allocation2 + $0x28] sm:$0xf] }
 0x16f   : > { %1456 = vrot.lane.b32.xlu2 %v1417_v9, %s4687_s17  ;;  %1616 = vst.msk [vmem:[#allocation3 + $0x4] sm:$0xf] %vm905_vm7, %v1547_v54  ;;  %v1765_v49 = vsel %vm5059_vm13, %v1760_v52, %v1764_v23  ;;  %v1774_v9 = vrot.slane %v1772_v46, 5  ;;  %v1777_v13 = vshrl.u32 %v1731_v8, 16  ;;  %v1780_v14 = vshll.u32 %v1731_v8, 16 }
 0x170   : > { %v1422_v28 = vrot.slane %v1421_v10, 4  ;;  %v1555_v10 = vrot.slane %v1553_v47, 4  ;;  %1960 = vst.msk [vmem:[#allocation3 + $0x8] sm:$0xf] %vm905_vm7, %v1765_v49  ;;  %v1770_v15 = vrot.slane %v1769_v3, 4  ;;  %v1556_v20 = vrot.slane %v1498_v44, 5 }
 0x171   : > { %v2224_v26 = vsel %vm5059_vm13, %v5307_v24, %v5309_v25  ;;  %v2242_v23 = vor.u32 %v5339_v11, %v5333_v40  ;;  %v5369_v29 = vrot.slane %v2245_v1, 5  ;;  %1617 = vst.msk [vmem:[#allocation3 + $0x18] sm:$0xf] %vm905_vm7, %v1550_v62  ;;  %v1779_v38 = vrot.slane %v1777_v13, 4  ;;  %v1632_v25 = vld [vmem:[#allocation2 + $0xc] sm:$0xf] }
 0x172   : > { %v1427_v48 = vsel %vm5059_vm13, %v1422_v28, %v1426_v33  ;;  %v4421_v50 = vld [vmem:[#allocation3 + $0x10] sm:$0xf0]  ;;  %v2184_v28 = vld [vmem:[#allocation2 + $0x34] sm:$0xf]  ;;  %v3994_v33 = vrot.slane %v1496_v4, 9  ;;  %v1775_v43 = vsel %vm5059_vm13, %v1770_v15, %v1774_v9  ;;  %v1557_v24 = vsel %vm5147_vm1, %v1555_v10, %v1556_v20 }
 0x173   : > { %1458 = vrot.lane.b32.xlu0 %v1427_v48, %s4687_s17  ;;  %1666 = vrot.lane.b32.xlu1 %v1633_v34, %s4687_s17  ;;  %v4020_v56 = vor.u32 %v4421_v50, %v4019_v41  ;;  %v2186_v34 = vld [vmem:[#allocation2 + $0x3c] sm:$0xf]  ;;  %v1782_v41 = vrot.slane %v1780_v14, 5  ;;  %v2252_v1 = vrot.slane %v2250_v17, 4  ;;  %v2255_v11 = vrot.slane %v2253_v51, 5 }
 0x174   : > { %v2185_v45 = vld [vmem:[#allocation2 + $0x38] sm:$0x1]  ;;  %1961 = vst.msk [vmem:[#allocation3 + $0x1c] sm:$0xf] %vm905_vm7, %v1775_v43  ;;  %v1554_v46 = vsel %vm5147_vm1, %v3994_v33, %v1553_v47  ;;  %v2259_v50 = vshll.u32 %v2184_v28, 16  ;;  %v2263_v52 = vshrl.u32 %v2184_v28, 16  ;;  %v2238_v17 = vsel %vm5059_vm13, %v5324_v37, %v5333_v40 }
 0x175   : > { %3165 = vmatmul.bf16.vlgmr.msrb.gmra.mxu3 %v4020_v56  ;;  %v1783_v54 = vor.u32 %v1782_v41, %v1779_v38  ;;  %1619 = vst.msk [vmem:[#allocation3 + $0x40] sm:$0xf] %vm905_vm7, %v1557_v24  ;;  %v1499_v44 = vld [vmem:[#allocation2 + $0x18] sm:$0xe]  ;;  %v2274_v51 = vshrl.u32 %v2186_v34, 16  ;;  %v2277_v56 = vshll.u32 %v2186_v34, 16  ;;  %v2027_v37 = vsel %vm5147_vm1, %v4001_v18, %v2026_v21 }
 0x176   : > { %v1732_v61 = vld [vmem:[#allocation2 + $0x1c] sm:$0xf]  ;;  %v5390_v47 = vrot.slane %v2242_v23, 4  ;;  %v5392_v62 = vld [vmem:[#allocation2 + $0x24] sm:$0xe]  ;;  %v2040_v3 = vrot.slane %v5373_v36, 5  ;;  %v2256_v40 = vor.u32 %v2255_v11, %v2252_v1 }
 0x177   : > { %2395 = vrot.lane.b32.xlu2 %v2224_v26, %s4687_s17  ;;  %v1786_v4 = vshll.u32 %v1732_v61, 16  ;;  %v1790_v49 = vshrl.u32 %v1732_v61, 16  ;;  %1618 = vst.msk [vmem:[#allocation3 + $0x2c] sm:$0xf] %vm905_vm7, %v1554_v46  ;;  %v2269_v8 = vshll.u32 %v2185_v45, 16  ;;  %v3995_v13 = vrot.slane %v1499_v44, 9 }
 0x178   : > { %v1733_v9 = vld [vmem:[#allocation2 + $0x20] sm:$0x1]  ;;  %v1500_v10 = vld [vmem:[#allocation2 + $0x1c] sm:$0xf]  ;;  %v5402_v14 = vld [vmem:[#allocation2 + $0x34] sm:$0xf] }
 0x179   : > { %v1784_v15 = vrot.slane %v1783_v54, 4  ;;  %v1788_v20 = vrot.slane %v1786_v4, 5  ;;  %v1792_v26 = vrot.slane %v1790_v49, 4  ;;  %v1560_v23 = vrot.slane %v1500_v10, 5  ;;  %v5414_v24 = vld [vmem:[#allocation2 + $0x40] sm:$0xf] }
 0x17a   : > { %v1437_v48 = vpop.permute.xlu2 %1436  ;;  %v5404_v28 = vrot.slane %v2259_v50, 5  ;;  %v2265_v33 = vrot.slane %v2263_v52, 4  ;;  %v2276_v63 = vrot.slane %v2274_v51, 4  ;;  %v2279_v34 = vrot.slane %v2277_v56, 5  ;;  %v4488_v51 = vld [vmem:[%s6423_s3 + $0xe8] sm:$0xff]  ;;  %v4481_v36 = vld [vmem:[%s6423_s3 + $0xb0] sm:$0xff] }
 0x17b   : > { %1481 = vst.msk [vmem:[#allocation3 + $0x50] sm:$0xf] %vm1476_vm2, %v1437_v48  ;;  %1664 = vrot.lane.b32.xlu0 %v1632_v25, %s4687_s17  ;;  %2397 = vrot.lane.b32.xlu1 %v2238_v17, %s4687_s17  ;;  %v1789_v21 = vsel %vm5059_vm13, %v1784_v15, %v1788_v20  ;;  %v1793_v18 = vor.u32 %v1792_v26, %v1788_v20  ;;  %v1796_v38 = vshll.u32 %v1733_v9, 16  ;;  %v2521_v43 = vrot.slane %v5402_v14, 5  ;;  %v1635_v25 = vld [vmem:[#allocation2 + $0x1c] sm:$0xf] }
 0x17c   : > { %v1561_v41 = vsel %vm5147_vm1, %v3995_v13, %v1560_v23  ;;  %v4003_v1 = vrot.slane %v5392_v62, 9  ;;  %1962 = vst.msk [vmem:[#allocation3 + $0x30] sm:$0xf] %vm905_vm7, %v1789_v21  ;;  %v5418_v46 = vrot.slane %v2256_v40, 4  ;;  %v5420_v48 = vrot.slane %v2269_v8, 5  ;;  %3306 = vmatpush.bf16.msrb.mxu2 %v4488_v51 }
 0x17d   : > { %v5424_v50 = vrot.slane %v2040_v3, 4  ;;  %v1794_v52 = vrot.slane %v1793_v18, 4  ;;  %1620 = vst.msk [vmem:[#allocation3 + $0x54] sm:$0xf] %vm905_vm7, %v1561_v41  ;;  %v2030_v54 = vsel %vm5147_vm1, %v5304_v57, %v2029_v19  ;;  %v2266_v44 = vor.u32 %v2265_v33, %v5404_v28  ;;  %v2187_v17 = vld [vmem:[#allocation2 + $0x40] sm:$0xf] }
 0x17e   : > { %v2043_v56 = vrot.slane %v5407_v53, 5  ;;  %v5438_v61 = vld [vmem:[#allocation2 + $0x30] sm:$0xe]  ;;  %v5440_v4 = vld [vmem:[#allocation2 + $0x34] sm:$0xf]  ;;  %v2528_v49 = vrot.slane %v5414_v24, 5  ;;  %v2280_v59 = vor.u32 %v2279_v34, %v2276_v63  ;;  %v2248_v15 = vsel %vm5059_vm13, %v5390_v47, %v5369_v29 }
 0x17f   : > { %2080 = vrot.lane.b32.xlu2 %v2027_v37, %s4687_s17  ;;  %v1798_v19 = vrot.slane %v1796_v38, 5  ;;  %v1501_v57 = vld [vmem:[#allocation2 + $0x20] sm:$0x1]  ;;  %v4493_v37 = vld [vmem:[%s6423_s3 + $0x110] sm:$0xff]  ;;  %v5449_v40 = vld [vmem:[#allocation2 + $0x44] sm:$0x1]  ;;  %v608_v38 = vpop.f32.mrf.mxu2  ;;  %v2041_v7 = vsel %vm5147_vm1, %v4003_v1, %v2040_v3 }
 0x180   : > { %v2147_v8 = vld [vmem:[#allocation2 + $0x24] sm:$0xf]  ;;  %v1562_v10 = vrot.slane %v1560_v23, 4  ;;  %v2283_v20 = vshll.u32 %v2187_v17, 16  ;;  %v2287_v26 = vshrl.u32 %v2187_v17, 16  ;;  %v5458_v34 = vrot.slane %v2266_v44, 4  ;;  %3358 = vmatpush.bf16.msra.mxu3 %v4493_v37  ;;  %3307 = vmatpush.bf16.msrb.mxu2 %v4487_v16 }
 0x181   : > { %v1433_v45 = vpop.permute.xlu1 %1432  ;;  %v1734_v9 = vld [vmem:[#allocation2 + $0x24] sm:$0xf]  ;;  %v1190_v33 = vld [vmem:[#allocation2 + $0x4c] sm:$0xf]  ;;  %2163 = vst.msk [vmem:[#allocation3 + $0x34] sm:$0xf] %vm905_vm7, %v2147_v8  ;;  %v1799_v63 = vsel %vm5059_vm13, %v1794_v52, %v1798_v19  ;;  %v609_v52 = vadd.f32 %v608_v38, %v5054_v12  ;;  %v2262_v8 = vsel %vm5059_vm13, %v5418_v46, %v5404_v28  ;;  %v2044_v3 = vsel %vm5147_vm1, %v5424_v50, %v2043_v56 }
 0x182   : > { %v1439_v11 = vpop.permute.xlu2 %1438  ;;  %1479 = vst.msk [vmem:[#allocation3 + $0x28] sm:$0xf] %vm1476_vm2, %v1433_v45  ;;  %v2460_v13 = vld [vmem:[#allocation2 + $0x24] sm:$0xe]  ;;  %v1801_v23 = vshrl.u32 %v1734_v9, 16  ;;  %v1804_v21 = vshll.u32 %v1734_v9, 16 }
 0x183   : > { %1482 = vst.msk [vmem:[#allocation3 + $0x64] sm:$0xf] %vm1476_vm2, %v1439_v11  ;;  %2082 = vrot.lane.b32.xlu0 %v2030_v54, %s4687_s17  ;;  %1670 = vrot.lane.b32.xlu1 %v1635_v25, %s4687_s17  ;;  %v1563_v18 = vrot.slane %v1501_v57, 5  ;;  %v5463_v29 = vrot.slane %v2528_v49, 4  ;;  %v5466_v47 = vrot.slane %v2280_v59, 4  ;;  %v4004_v25 = vrot.slane %v5438_v61, 9 }
 0x184   : > { %1206 = vst.msk [vmem:[#allocation3 + $0x104] sm:$0xf] %vm905_vm7, %v1190_v33  ;;  %v688_v41 = vld [vmem:[#allocation2 + $0x60] sm:$0x1]  ;;  %v2047_v11 = vrot.slane %v5440_v4, 5  ;;  %v1803_v44 = vrot.slane %v1801_v23, 4 }
 0x185   : > { %v1634_v45 = vld [vmem:[#allocation2 + $0x18] sm:$0xf]  ;;  %v689_v54 = vsel %vm4973_vm3, 0, %v688_v41  ;;  %1963 = vst.msk [vmem:[#allocation3 + $0x44] sm:$0xf] %vm905_vm7, %v1799_v63  ;;  %v1564_v17 = vsel %vm5147_vm1, %v1562_v10, %v1563_v18  ;;  %v5477_v59 = vrot.slane %v2283_v20, 5 }
 0x186   : > { %v2289_v19 = vrot.slane %v2287_v26, 4  ;;  %v2293_v57 = vshll.u32 %v5449_v40, 16  ;;  %690 = vst [vmem:[#allocation2 + $0x60] sm:$0x1] %v689_v54  ;;  %v1806_v37 = vrot.slane %v1804_v21, 5  ;;  %v659_v9 = vmax.f32 %v609_v52, 0.0 }
 0x187   : > { %2399 = vrot.lane.b32.xlu2 %v2248_v15, %s4687_s17  ;;  %v5485_v15 = vld [vmem:[#allocation2 + $0x48] sm:$0xf]  ;;  %v4010_v10 = vrot.slane %v2460_v13, 9  ;;  %v2034_v40 = vsel %vm5147_vm1, %v4002_v27, %v2033_v60  ;;  %1621 = vst.msk [vmem:[#allocation3 + $0x68] sm:$0xf] %vm905_vm7, %v1564_v17  ;;  %v5498_v13 = vrot.slane %v2047_v11, 4  ;;  %v610_v54 = vpop.f32.mrf.mxu2 }
 0x188   : > { %v1735_v20 = vld [vmem:[#allocation2 + $0x28] sm:$0xf]  ;;  %v1807_v26 = vor.u32 %v1806_v37, %v1803_v44  ;;  %v2462_v28 = vld [vmem:[#allocation2 + $0x2c] sm:$0x1]  ;;  %v740_v46 = vpack.c.bf16 %v659_v9, %v659_v9  ;;  %v2298_v23 = vshrl.u32 %v5485_v15, 16  ;;  %v2516_v60 = vrot.slane %v2514_v30, 4 }
 0x189   : > { %v1435_v51 = vpop.permute.xlu1 %1434  ;;  %v1810_v33 = vshll.u32 %v1735_v20, 16  ;;  %v1814_v63 = vshrl.u32 %v1735_v20, 16  ;;  %v2515_v42 = vsel %vm5147_vm1, %v4010_v10, %v2514_v30  ;;  %v2517_v5 = vrot.slane %v2462_v28, 5  ;;  %v5511_v18 = vld [vmem:[#allocation2 + $0x38] sm:$0x1] }
 0x18a   : > { %1480 = vst.msk [vmem:[#allocation3 + $0x3c] sm:$0xf] %vm1476_vm2, %v1435_v51  ;;  %v864_v27 = vshrl.u32 %v740_v46, 16  ;;  %v867_v21 = vshll.u32 %v740_v46, 16  ;;  %v1808_v38 = vrot.slane %v1807_v26, 4  ;;  %v2290_v52 = vor.u32 %v2289_v19, %v5477_v59 }
 0x18b   : > { %1668 = vrot.lane.b32.xlu0 %v1634_v45, %s4687_s17  ;;  %2401 = vrot.lane.b32.xlu1 %v2262_v8, %s4687_s17  ;;  %v5513_v41 = vrot.slane %v1810_v33, 5  ;;  %2579 = vst.msk [vmem:[#allocation3 + $0x38] sm:$0xf] %vm905_vm7, %v2515_v42  ;;  %v4039_v45 = vld [vmem:[#allocation3 + $0x28] sm:$0xf]  ;;  %v2518_v30 = vsel %vm5147_vm1, %v2516_v60, %v2517_v5  ;;  %v5523_v17 = vrot.slane %v1814_v63, 4  ;;  %v611_v8 = vadd.f32 %v610_v54, %v5054_v12 }
 0x18c   : > { %v720_v44 = vld [vmem:[#allocation2 + $0x68] sm:$0x1]  ;;  %v5525_v37 = vrot.slane %v864_v27, 7  ;;  %2580 = vst.msk [vmem:[#allocation3 + $0x4c] sm:$0xf] %vm905_vm7, %v2518_v30  ;;  %v2301_v46 = vshll.u32 %v5485_v15, 16 }
 0x18d   : > { %v1637_v51 = vld [vmem:[#allocation2 + $0x28] sm:$0xf]  ;;  %v721_v9 = vsel %vm4990_vm5, 0, %v720_v44  ;;  %v1813_v19 = vsel %vm5059_vm13, %v1808_v38, %v5513_v41  ;;  %v1736_v10 = vld [vmem:[#allocation2 + $0x2c] sm:$0x1]  ;;  %v660_v33 = vmax.f32 %v611_v8, 0.0  ;;  %v2272_v44 = vsel %vm5059_vm13, %v5458_v34, %v5420_v48 }
 0x18e   : > { %v957_v26 = vld [vmem:[#allocation2 + $0x60] sm:$0xf]  ;;  %722 = vst [vmem:[#allocation2 + $0x68] sm:$0x1] %v721_v9  ;;  %v869_v28 = vor.u32 %v867_v21, %v5525_v37  ;;  %v5542_v63 = vld [vmem:[#allocation2 + $0x28] sm:$0xf] }
 0x18f   : > { %2084 = vrot.lane.b32.xlu2 %v2034_v40, %s4687_s17  ;;  %v2037_v40 = vsel %vm5147_vm1, %v5318_v32, %v2036_v2  ;;  %1964 = vst.msk [vmem:[#allocation3 + $0x58] sm:$0xf] %vm905_vm7, %v1813_v19  ;;  %v5546_v31 = vrot.slane %v2290_v52, 4  ;;  %v5548_v32 = vrot.slane %v2293_v57, 5  ;;  %v5550_v2 = vrot.slane %v2298_v23, 4  ;;  %v4474_v27 = vld [vmem:[%s6423_s3 + $0x78] sm:$0xff] }
 0x190   : > { %v2050_v42 = vrot.slane %v5511_v18, 5  ;;  %v5553_v60 = vld [vmem:[#allocation2 + $0x3c] sm:$0xe]  ;;  %v958_v15 = vsel %vm5023_vm8, %v869_v28, %v957_v26  ;;  %v741_v5 = vpack.c.bf16 %v660_v33, %v660_v33  ;;  %v2149_v21 = vld [vmem:[#allocation2 + $0x30] sm:$0xf]  ;;  %v1817_v52 = vor.u32 %v5523_v17, %v5513_v41  ;;  %3206 = vmatpush.bf16.msrb.mxu0 %v4474_v27 }
 0x191   : > { %v4426_v20 = vld [vmem:[#allocation3 + $0x38] sm:$0xf0]  ;;  %v1737_v38 = vld [vmem:[#allocation2 + $0x30] sm:$0xf]  ;;  %959 = vst [vmem:[#allocation2 + $0x60] sm:$0xf] %v958_v15  ;;  %v2286_v41 = vsel %vm5059_vm13, %v5466_v47, %v5477_v59 }
 0x192   : > { %v4040_v12 = vor.u32 %v4426_v20, %v4039_v45  ;;  %v1820_v45 = vshll.u32 %v1736_v10, 16  ;;  %v1825_v57 = vshrl.u32 %v1737_v38, 16  ;;  %v1828_v23 = vshll.u32 %v1737_v38, 16  ;;  %v4482_v8 = vld [vmem:[%s6423_s3 + $0xb8] sm:$0xff]  ;;  %v691_v9 = vld [vmem:[#allocation2 + $0x6c] sm:$0x1] }
 0x193   : > { %2086 = vrot.lane.b32.xlu0 %v2037_v40, %s4687_s17  ;;  %1674 = vrot.lane.b32.xlu1 %v1637_v51, %s4687_s17  ;;  %v1567_v54 = vrot.slane %v5542_v63, 5  ;;  %v5567_v16 = vrot.slane %v2301_v46, 5  ;;  %v872_v30 = vshrl.u32 %v741_v5, 16  ;;  %v875_v51 = vshll.u32 %v741_v5, 16  ;;  %v1504_v19 = vld [vmem:[#allocation2 + $0x2c] sm:$0x1] }
 0x194   : > { %3170 = vmatmul.bf16.gmra.mxu3 %v4040_v12  ;;  %v692_v48 = vsel %vm4973_vm3, 0, %v691_v9  ;;  %v1133_v34 = vld [vmem:[%s6422_s2] sm:$0x7]  ;;  %v4005_v17 = vrot.slane %v5553_v60, 9  ;;  %2165 = vst.msk [vmem:[#allocation3 + $0x5c] sm:$0xf] %vm905_vm7, %v2149_v21  ;;  %3255 = vmatpush.bf16.msrb.mxu1 %v4482_v8  ;;  %v1128_v21 = vpop.f32.mrf.mxu3  ;;  %v2296_v63 = vsel %vm5059_vm13, %v5546_v31, %v5548_v32 }
 0x195   : > { %v1636_v10 = vld [vmem:[#allocation2 + $0x24] sm:$0xf]  ;;  %v870_v40 = vrot.slane %v5525_v37, 4  ;;  %v874_v20 = vrot.slane %v872_v30, 7  ;;  %693 = vst [vmem:[#allocation2 + $0x6c] sm:$0x1] %v692_v48 }
 0x196   : > { %v1135_v26 = vrot.slane %v1133_v34, 2  ;;  %v1822_v47 = vrot.slane %v1820_v45, 5  ;;  %v5585_v12 = vld [vmem:[#allocation2 + $0x4c] sm:$0xf]  ;;  %v961_v28 = vld [vmem:[#allocation2 + $0x68] sm:$0x1] }
 0x197   : > { %2403 = vrot.lane.b32.xlu2 %v2272_v44, %s4687_s17  ;;  %v1827_v46 = vrot.slane %v1825_v57, 4  ;;  %v1830_v33 = vrot.slane %v1828_v23, 5  ;;  %v1818_v15 = vrot.slane %v1817_v52, 4  ;;  %v1569_v5 = vrot.slane %v1567_v54, 4  ;;  %v2150_v30 = vld [vmem:[#allocation2 + $0x34] sm:$0xf] }
 0x198   : > { %v877_v27 = vor.u32 %v875_v51, %v874_v20  ;;  %v879_v37 = vrot.slane %v874_v20, 4  ;;  %v1136_v38 = vperm.slane %v1135_v26, 0  ;;  %v1143_v44 = vstv %s5503_s23  ;;  %v4473_v45 = vld [vmem:[%s6423_s3 + $0x70] sm:$0xff]  ;;  %2166 = vst.msk [vmem:[#allocation3 + $0x70] sm:$0xf] %vm905_vm7, %v2150_v30  ;;  %3256 = vmatpush.bf16.msrb.mxu1 %v4481_v36  ;;  %v4472_v31 = vld [vmem:[%s6423_s3 + $0x68] sm:$0xff]  ;;  %s3743_s23 = sadd.s32 %s4503_s16, %s4380_s11 }
 0x199   : > { %v1445_v59 = vpop.permute.xlu2 %1444  ;;  %v723_v57 = vld [vmem:[#allocation2 + $0x74] sm:$0x1]  ;;  %v1831_v23 = vor.u32 %v1830_v33, %v1827_v46  ;;  %v1570_v52 = vrot.slane %v1504_v19, 5  ;;  %vm5608_vm4 = vcmp.eq.s32.totalorder %v1143_v44, 1  ;;  %3207 = vmatpush.bf16.msrb.mxu0 %v4473_v45  ;;  %v2463_v26 = vld [vmem:[#allocation2 + $0x30] sm:$0xe]  ;;  %v2304_v30 = vor.u32 %v5567_v16, %v5550_v2 }
 0x19a   : > { %1485 = vst.msk [vmem:[#allocation3 + $0xa0] sm:$0xf] %vm1476_vm2, %v1445_v59  ;;  %v878_v51 = vsel %vm5038_vm10, %v870_v40, %v877_v27  ;;  %v962_v8 = vsel %vm4973_vm3, %v879_v37, %v961_v28  ;;  %v1138_v9 = vadd.f32 %v1136_v38, %v1128_v21  ;;  %v724_v48 = vsel %vm4990_vm5, 0, %v723_v57  ;;  %v5605_v34 = vld [vmem:[#allocation2 + $0x34] sm:$0xf]  ;;  %v4484_v60 = vld [vmem:[%s6423_s3 + $0xc8] sm:$0xff] }
 0x19b   : > { %1672 = vrot.lane.b32.xlu0 %v1636_v10, %s4687_s17  ;;  %2405 = vrot.lane.b32.xlu1 %v2286_v41, %s4687_s17  ;;  %v5603_v41 = vld [vmem:[#allocation2 + $0x40] sm:$0xf]  ;;  %v4431_v10 = vld [vmem:[#allocation3 + $0x60] sm:$0xf0]  ;;  %960 = vst.msk [vmem:[#allocation2 + $0x64] sm:$0xf] %vm905_vm7, %v878_v51  ;;  %v1823_v40 = vsel %vm5059_vm13, %v1818_v15, %v1822_v47  ;;  %v1571_v46 = vsel %vm5147_vm1, %v1569_v5, %v1570_v52 }
 0x19c   : > { %v1834_v19 = vshll.u32 %v5605_v34, 16  ;;  %v2307_v59 = vshll.u32 %v5585_v12, 16  ;;  %963 = vst [vmem:[#allocation2 + $0x68] sm:$0x1] %v962_v8  ;;  %v1140_v28 = vmax.f32 %v1138_v9, 0.0  ;;  %v2054_v47 = vrot.slane %v5603_v41, 5  ;;  %v1130_v57 = vpop.f32.mrf.mxu3  ;;  %3257 = vmatpush.bf16.msrb.mxu1 %v4480_v39 }
 0x19d   : > { %v1502_v33 = vld [vmem:[#allocation2 + $0x24] sm:$0xe]  ;;  %725 = vst [vmem:[#allocation2 + $0x74] sm:$0x1] %v724_v48  ;;  %v1832_v62 = vrot.slane %v1831_v23, 4  ;;  %v2311_v5 = vshrl.u32 %v5585_v12, 16  ;;  %v1139_v8 = vadd.f32 %v1136_v38, %v1130_v57  ;;  %3208 = vmatpush.bf16.msrb.mxu0 %v4472_v31 }
 0x19e   : > { %v5629_v15 = vrot.slane %v1834_v19, 5  ;;  %v1639_v1 = vld [vmem:[#allocation2 + $0x34] sm:$0xf]  ;;  %v1145_v27 = vsel %vm5608_vm4, %v1140_v28, 0.0  ;;  %1965 = vst.msk [vmem:[#allocation3 + $0x6c] sm:$0xf] %vm905_vm7, %v1823_v40  ;;  %v2055_v24 = vsel %vm5147_vm1, %v4005_v17, %v2054_v47 }
 0x19f   : > { %2088 = vrot.lane.b32.xlu2 %v2041_v7, %s4687_s17  ;;  %v5639_v37 = vld [vmem:[#allocation2 + $0x54] sm:$0xf]  ;;  %v4059_v44 = vld [vmem:[#allocation3 + $0x50] sm:$0xf]  ;;  %v1147_v53 = vpack.c.bf16 %v1145_v27, %v1145_v27  ;;  %1623 = vst.msk [vmem:[#allocation3 + $0x90] sm:$0xf] %vm905_vm7, %v1571_v46 }
 0x1a0   : > { %v1837_v50 = vsel %vm5059_vm13, %v1832_v62, %v5629_v15  ;;  %v2465_v56 = vld [vmem:[#allocation2 + $0x38] sm:$0x1]  ;;  %v4060_v12 = vor.u32 %v4431_v10, %v4059_v44  ;;  %v5649_v45 = vrot.slane %v2307_v59, 5  ;;  %v3996_v2 = vrot.slane %v1502_v33, 9  ;;  %v5659_v10 = vld [vmem:[#allocation2 + $0x44] sm:$0x1] }
 0x1a1   : > { %v1441_v21 = vpop.permute.xlu0 %1440  ;;  %v4486_v23 = vld [vmem:[%s6423_s3 + $0xd8] sm:$0xff]  ;;  %v2523_v16 = vrot.slane %v2521_v43, 4  ;;  %v1150_v52 = vshrl.u32 %v1147_v53, 16  ;;  %v1153_v51 = vshll.u32 %v1147_v53, 16  ;;  %1966 = vst.msk [vmem:[#allocation3 + $0x80] sm:$0xf] %vm905_vm7, %v1837_v50 }
 0x1a2   : > { %1483 = vst.msk [vmem:[#allocation3 + $0x78] sm:$0xf] %vm1476_vm2, %v1441_v21  ;;  %v4011_v9 = vrot.slane %v2463_v26, 9  ;;  %v2313_v48 = vrot.slane %v2311_v5, 4  ;;  %3308 = vmatpush.bf16.msrb.mxu2 %v4486_v23  ;;  %v4492_v19 = vld [vmem:[%s6423_s3 + $0x108] sm:$0xff]  ;;  %v1838_v40 = vshrl.u32 %v5605_v34, 16  ;;  %v1568_v38 = vsel %vm5147_vm1, %v3996_v2, %v1567_v54 }
 0x1a3   : > { %2090 = vrot.lane.b32.xlu0 %v2044_v3, %s4687_s17  ;;  %1678 = vrot.lane.b32.xlu1 %v1639_v1, %s4687_s17  ;;  %v2151_v7 = vld [vmem:[#allocation2 + $0x3c] sm:$0xf]  ;;  %v2524_v59 = vrot.slane %v2465_v56, 5  ;;  %v5669_v26 = vrot.slane %v1150_v52, 7  ;;  %v2322_v46 = vshrl.u32 %v5639_v37, 16  ;;  %v1141_v33 = vmax.f32 %v1139_v8, 0.0 }
 0x1a4   : > { %3175 = vmatmul.bf16.gmra.mxu3 %v4060_v12  ;;  %2167 = vst.msk [vmem:[#allocation3 + $0x84] sm:$0xf] %vm905_vm7, %v2151_v7  ;;  %v2522_v34 = vsel %vm5147_vm1, %v4011_v9, %v2521_v43  ;;  %v1170_v54 = vld [vmem:[#allocation2 + $0x6c] sm:$0xf]  ;;  %v1740_v36 = vld [vmem:[#allocation2 + $0x3c] sm:$0xf]  ;;  %v2314_v20 = vor.u32 %v2313_v48, %v5649_v45 }
 0x1a5   : > { %v1443_v28 = vpop.permute.xlu1 %1442  ;;  %3359 = vmatpush.bf16.msra.mxu3 %v4492_v19  ;;  %v2525_v62 = vsel %vm5147_vm1, %v2523_v16, %v2524_v59  ;;  %v2305_v3 = vrot.slane %v2304_v30, 4  ;;  %v1155_v14 = vor.u32 %v1153_v51, %v5669_v26  ;;  %v2325_v43 = vshll.u32 %v5639_v37, 16  ;;  %1622 = vst.msk [vmem:[#allocation3 + $0x7c] sm:$0xf] %vm905_vm7, %v1568_v38  ;;  %v1638_v32 = vld [vmem:[#allocation2 + $0x30] sm:$0xf] }
 0x1a6   : > { %1484 = vst.msk [vmem:[#allocation3 + $0x8c] sm:$0xf] %vm1476_vm2, %v1443_v28  ;;  %v1146_v1 = vsel %vm5608_vm4, %v1141_v33, 0.0  ;;  %v5693_v5 = vld [vmem:[#allocation2 + $0x50] sm:$0x1]  ;;  %v1849_v21 = vshrl.u32 %v1740_v36, 16 }
 0x1a7   : > { %2407 = vrot.lane.b32.xlu2 %v2296_v63, %s4687_s17  ;;  %v1148_v27 = vpack.c.bf16 %v1146_v1, %v1146_v1  ;;  %2581 = vst.msk [vmem:[#allocation3 + $0x60] sm:$0xf] %vm905_vm7, %v2522_v34  ;;  %v1840_v44 = vrot.slane %v1838_v40, 4  ;;  %v1171_v37 = vsel %vm5023_vm8, %v1155_v14, %v1170_v54  ;;  %v5699_v30 = vld [vmem:[#allocation2 + $0x58] sm:$0xf]  ;;  %v2057_v53 = vrot.slane %v5659_v10, 5 }
 0x1a8   : > { %v1852_v50 = vshll.u32 %v1740_v36, 16  ;;  %2582 = vst.msk [vmem:[#allocation3 + $0x74] sm:$0xf] %vm905_vm7, %v2525_v62  ;;  %v2310_v56 = vsel %vm5059_vm13, %v2305_v3, %v5649_v45  ;;  %v2324_v12 = vrot.slane %v2322_v46, 4  ;;  %v2327_v2 = vrot.slane %v2325_v43, 5  ;;  %s4381_s27 = sshll.u32 %s3743_s23, 3 }
 0x1a9   : > { %1172 = vst [vmem:[#allocation2 + $0x6c] sm:$0xf] %v1171_v37  ;;  %v1158_v57 = vshrl.u32 %v1148_v27, 16  ;;  %v1161_v23 = vshll.u32 %v1148_v27, 16  ;;  %v2152_v16 = vld [vmem:[#allocation2 + $0x40] sm:$0xf]  ;;  %v1841_v45 = vor.u32 %v1840_v44, %v5629_v15  ;;  %v2048_v15 = vsel %vm5147_vm1, %v4004_v25, %v2047_v11  ;;  %s3745_s13 = scalar_lea.hbm %s6427_s7, %s4381_s27 }
 0x1aa   : > { %v1851_v52 = vrot.slane %v1849_v21, 4  ;;  %v1739_v51 = vld [vmem:[#allocation2 + $0x38] sm:$0x1]  ;;  %v1156_v8 = vrot.slane %v5669_v26, 4  ;;  %2168 = vst.msk [vmem:[#allocation3 + $0x98] sm:$0xf] %vm905_vm7, %v2152_v16  ;;  %v2328_v36 = vor.u32 %v2327_v2, %v2324_v12 }
 0x1ab   : > { %1676 = vrot.lane.b32.xlu0 %v1638_v32, %s4687_s17  ;;  %2409 = vrot.lane.b32.xlu1 %v2310_v56, %s4687_s17  ;;  %v1160_v9 = vrot.slane %v1158_v57, 7  ;;  %v5714_v48 = vld [vmem:[#allocation2 + $0x34] sm:$0xf]  ;;  %v5716_v40 = vrot.slane %v2314_v20, 4  ;;  %v2317_v7 = vshll.u32 %v5693_v5, 16  ;;  %v2331_v38 = vshll.u32 %v5699_v30, 16 }
 0x1ac   : > { %v1174_v59 = vld [vmem:[#allocation2 + $0x74] sm:$0x1]  ;;  %v1854_v28 = vrot.slane %v1852_v50, 5  ;;  %v5720_v46 = vld [vmem:[#allocation2 + $0x4c] sm:$0xf]  ;;  %v2335_v26 = vshrl.u32 %v5699_v30, 16  ;;  %v2051_v5 = vsel %vm5147_vm1, %v5498_v13, %v2050_v42 }
 0x1ad   : > { %v1451_v19 = vpop.permute.xlu2 %1450  ;;  %v1163_v33 = vor.u32 %v1161_v23, %v1160_v9  ;;  %v1165_v34 = vrot.slane %v1160_v9, 4  ;;  %v2195_v63 = vld [vmem:[#allocation2 + $0x60] sm:$0xf]  ;;  %v4436_v54 = vld [vmem:[#allocation3 + $0x88] sm:$0xf0]  ;;  %v1844_v14 = vshll.u32 %v1739_v51, 16 }
 0x1ae   : > { %1488 = vst.msk [vmem:[#allocation3 + $0xdc] sm:$0xf] %vm1476_vm2, %v1451_v19  ;;  %v1741_v62 = vld [vmem:[#allocation2 + $0x40] sm:$0xf]  ;;  %v1855_v3 = vor.u32 %v1854_v28, %v1851_v52  ;;  %v1574_v43 = vrot.slane %v5714_v48, 5  ;;  %v1842_v31 = vrot.slane %v1841_v45, 4 }
 0x1af   : > { %2092 = vrot.lane.b32.xlu2 %v2048_v15, %s4687_s17  ;;  %v1641_v4 = vld [vmem:[#allocation2 + $0x40] sm:$0xf]  ;;  %v1164_v61 = vsel %vm5038_vm10, %v1156_v8, %v1163_v33  ;;  %v1175_v25 = vsel %vm4973_vm3, %v1165_v34, %v1174_v59  ;;  %v5736_v11 = vld [vmem:[#allocation2 + $0x5c] sm:$0x1]  ;;  %v1858_v1 = vshll.u32 %v1741_v62, 16  ;;  %v2346_v21 = vshrl.u32 %v2195_v63, 16 }
 0x1b0   : > { %v1507_v32 = vld [vmem:[#allocation2 + $0x38] sm:$0x1]  ;;  %v4079_v27 = vld [vmem:[#allocation3 + $0x78] sm:$0xf]  ;;  %1173 = vst.msk [vmem:[#allocation2 + $0x70] sm:$0xf] %vm905_vm7, %v1164_v61 }
 0x1b1   : > { %v2349_v55 = vshll.u32 %v2195_v63, 16  ;;  %v4080_v44 = vor.u32 %v4436_v54, %v4079_v27  ;;  %1176 = vst [vmem:[#allocation2 + $0x74] sm:$0x1] %v1175_v25  ;;  %v1856_v0 = vrot.slane %v1855_v3, 4  ;;  %v5744_v37 = vrot.slane %v1858_v1, 5  ;;  %v4471_v13 = vld [vmem:[%s6423_s3 + $0x60] sm:$0xff] }
 0x1b2   : > { %v1862_v20 = vshrl.u32 %v1741_v62, 16  ;;  %v2535_v30 = vrot.slane %v5720_v46, 5  ;;  %v2319_v18 = vrot.slane %v2317_v7, 5  ;;  %v2329_v50 = vrot.slane %v2328_v36, 4  ;;  %v4485_v42 = vld [vmem:[%s6423_s3 + $0xd0] sm:$0xff]  ;;  %v4479_v23 = vld [vmem:[%s6423_s3 + $0xa0] sm:$0xff]  ;;  %3209 = vmatpush.bf16.msrb.mxu0 %v4471_v13 }
 0x1b3   : > { %2094 = vrot.lane.b32.xlu0 %v2051_v5, %s4687_s17  ;;  %1682 = vrot.lane.b32.xlu1 %v1641_v4, %s4687_s17  ;;  %v1576_v56 = vrot.slane %v1574_v43, 4  ;;  %v2333_v12 = vrot.slane %v2331_v38, 5  ;;  %v2341_v57 = vshll.u32 %v5736_v11, 16  ;;  %v1192_v39 = vld [vmem:[#allocation2 + $0x58] sm:$0xf]  ;;  %v1861_v2 = vsel %vm5059_vm13, %v1856_v0, %v5744_v37  ;;  %s3748_s9 = sshll.u32 %s3745_s13, 4  ;;  %s3749_s9 = int_to_ptr.hbm [resolvable:$true] %s3748_s9 }
 0x1b4   : > { %3180 = vmatmul.bf16.gmra.mxu3 %v4080_v44  ;;  %v1846_v16 = vrot.slane %v1844_v14, 5  ;;  %v2466_v52 = vld [vmem:[#allocation2 + $0x3c] sm:$0xe]  ;;  %v2320_v8 = vsel %vm5059_vm13, %v5716_v40, %v2319_v18  ;;  %v2337_v9 = vrot.slane %v2335_v26, 4  ;;  %3309 = vmatpush.bf16.msrb.mxu2 %v4485_v42  ;;  %1208 = vst.msk [vmem:[#allocation3 + $0x12c] sm:$0xf] %vm905_vm7, %v1192_v39 }
 0x1b5   : > { %v1447_v51 = vpop.permute.xlu0 %1446  ;;  %v1577_v45 = vrot.slane %v1507_v32, 5  ;;  %v1505_v19 = vld [vmem:[#allocation2 + $0x30] sm:$0xe]  ;;  %v2348_v7 = vrot.slane %v2346_v21, 4  ;;  %v2351_v38 = vrot.slane %v2349_v55, 5  ;;  %3258 = vmatpush.bf16.msrb.mxu1 %v4479_v23  ;;  %v1864_v28 = vrot.slane %v1862_v20, 4 }
 0x1b6   : > { %1486 = vst.msk [vmem:[#allocation3 + $0xb4] sm:$0xf] %vm1476_vm2, %v1447_v51  ;;  %v1847_v59 = vsel %vm5059_vm13, %v1842_v31, %v1846_v16  ;;  %v5772_v15 = vld [vmem:[#allocation2 + $0x64] sm:$0xf]  ;;  %v5774_v40 = vld [vmem:[#allocation2 + $0x4c] sm:$0xf]  ;;  %v2334_v63 = vsel %vm5059_vm13, %v2329_v50, %v2333_v12  ;;  %v2338_v62 = vor.u32 %v2337_v9, %v2333_v12 }
 0x1b7   : > { %2411 = vrot.lane.b32.xlu2 %v2320_v8, %s4687_s17  ;;  %1968 = vst.msk [vmem:[#allocation3 + $0xa8] sm:$0xf] %vm905_vm7, %v1861_v2  ;;  %v2153_v26 = vld [vmem:[#allocation2 + $0x48] sm:$0xf]  ;;  %v1578_v33 = vsel %vm5147_vm1, %v1576_v56, %v1577_v45  ;;  %v1640_v34 = vld [vmem:[#allocation2 + $0x3c] sm:$0xf]  ;;  %v2352_v61 = vor.u32 %v2351_v38, %v2348_v7  ;;  %v1865_v31 = vor.u32 %v1864_v28, %v5744_v37 }
 0x1b8   : > { %2169 = vst.msk [vmem:[#allocation3 + $0xac] sm:$0xf] %vm905_vm7, %v2153_v26  ;;  %v1743_v54 = vld [vmem:[#allocation2 + $0x48] sm:$0xf]  ;;  %v2468_v36 = vld [vmem:[#allocation2 + $0x44] sm:$0x1]  ;;  %3310 = vmatpush.bf16.msrb.mxu2 %v4484_v60 }
 0x1b9   : > { %1967 = vst.msk [vmem:[#allocation3 + $0x94] sm:$0xf] %vm905_vm7, %v1847_v59  ;;  %v1873_v3 = vshrl.u32 %v1743_v54, 16  ;;  %v1876_v14 = vshll.u32 %v1743_v54, 16  ;;  %v3997_v4 = vrot.slane %v1505_v19, 9  ;;  %v2355_v25 = vshll.u32 %v5772_v15, 16 }
 0x1ba   : > { %v2154_v11 = vld [vmem:[#allocation2 + $0x4c] sm:$0xf]  ;;  %1625 = vst.msk [vmem:[#allocation3 + $0xb8] sm:$0xf] %vm905_vm7, %v1578_v33  ;;  %v4012_v1 = vrot.slane %v2466_v52, 9  ;;  %v5788_v32 = vrot.slane %v2535_v30, 4 }
 0x1bb   : > { %1680 = vrot.lane.b32.xlu0 %v1640_v34, %s4687_s17  ;;  %2413 = vrot.lane.b32.xlu1 %v2334_v63, %s4687_s17  ;;  %v4470_v5 = vld [vmem:[%s6423_s3 + $0x58] sm:$0xff]  ;;  %v1875_v27 = vrot.slane %v1873_v3, 4  ;;  %v1575_v21 = vsel %vm5147_vm1, %v3997_v4, %v1574_v43  ;;  %v2531_v55 = vrot.slane %v2468_v36, 5  ;;  %v2056_v44 = vrot.slane %v2054_v47, 4  ;;  %2170 = vst.msk [vmem:[#allocation3 + $0xc0] sm:$0xf] %vm905_vm7, %v2154_v11 }
 0x1bc   : > { %v5801_v0 = vrot.slane %v2341_v57, 5  ;;  %v2061_v37 = vrot.slane %v5774_v40, 5  ;;  %v2529_v20 = vsel %vm5147_vm1, %v4012_v1, %v2528_v49  ;;  %v5809_v18 = vrot.slane %v2338_v62, 4  ;;  %3210 = vmatpush.bf16.msrb.mxu0 %v4470_v5  ;;  %v5812_v43 = vld [vmem:[#allocation2 + $0x4c] sm:$0xf]  ;;  %v4478_v56 = vld [vmem:[%s6423_s3 + $0x98] sm:$0xff] }
 0x1bd   : > { %v2359_v48 = vshrl.u32 %v5772_v15, 16  ;;  %v1878_v50 = vrot.slane %v1876_v14, 5  ;;  %v2532_v13 = vsel %vm5147_vm1, %v5463_v29, %v2531_v55  ;;  %v5823_v49 = vrot.slane %v2352_v61, 4  ;;  %1624 = vst.msk [vmem:[#allocation3 + $0xa4] sm:$0xf] %vm905_vm7, %v1575_v21  ;;  %3259 = vmatpush.bf16.msrb.mxu1 %v4478_v56  ;;  %v4491_v62 = vld [vmem:[%s6423_s3 + $0x100] sm:$0xff] }
 0x1be   : > { %v5825_v42 = vrot.slane %v2355_v25, 5  ;;  %v1866_v12 = vrot.slane %v1865_v31, 4  ;;  %v4099_v29 = vld [vmem:[#allocation3 + $0xa0] sm:$0xf]  ;;  %v4441_v41 = vld [vmem:[#allocation3 + $0xb0] sm:$0xf0]  ;;  %v2058_v7 = vsel %vm5147_vm1, %v2056_v44, %v2057_v53  ;;  %v2344_v31 = vsel %vm5059_vm13, %v5809_v18, %v5801_v0  ;;  %3360 = vmatpush.bf16.msra.mxu3 %v4491_v62 }
 0x1bf   : > { %2096 = vrot.lane.b32.xlu2 %v2055_v24, %s4687_s17  ;;  %v1879_v17 = vor.u32 %v1878_v50, %v1875_v27  ;;  %v1882_v47 = vshll.u32 %v5812_v43, 16  ;;  %2583 = vst.msk [vmem:[#allocation3 + $0x88] sm:$0xf] %vm905_vm7, %v2529_v20  ;;  %v1643_v57 = vld [vmem:[#allocation2 + $0x4c] sm:$0xf]  ;;  %v4100_v38 = vor.u32 %v4441_v41, %v4099_v29  ;;  %v5853_v15 = vrot.slane %v2359_v48, 4 }
 0x1c0   : > { %v5837_v23 = vld [vmem:[#allocation2 + $0x6c] sm:$0xf]  ;;  %2584 = vst.msk [vmem:[#allocation3 + $0x9c] sm:$0xf] %vm905_vm7, %v2532_v13  ;;  %v1742_v39 = vld [vmem:[#allocation2 + $0x44] sm:$0x1]  ;;  %v2358_v13 = vsel %vm5059_vm13, %v5823_v49, %v5825_v42 }
 0x1c1   : > { %v1509_v2 = vld [vmem:[#allocation2 + $0x40] sm:$0xf]  ;;  %v1449_v16 = vpop.permute.xlu1 %1448  ;;  %v1880_v52 = vrot.slane %v1879_v17, 4  ;;  %v5840_v51 = vrot.slane %v1882_v47, 5  ;;  %v1868_v8 = vshll.u32 %v1742_v39, 16  ;;  %v2370_v4 = vshrl.u32 %v5837_v23, 16 }
 0x1c2   : > { %v1510_v9 = vld [vmem:[#allocation2 + $0x44] sm:$0x1]  ;;  %v1581_v45 = vrot.slane %v1509_v2, 5  ;;  %v5842_v19 = vld [vmem:[#allocation2 + $0x58] sm:$0xf]  ;;  %v1886_v61 = vshrl.u32 %v5812_v43, 16  ;;  %v2362_v41 = vor.u32 %v5853_v15, %v5825_v42 }
 0x1c3   : > { %1487 = vst.msk [vmem:[#allocation3 + $0xc8] sm:$0xf] %vm1476_vm2, %v1449_v16  ;;  %v5849_v59 = vld [vmem:[#allocation2 + $0x48] sm:$0xe]  ;;  %v5851_v28 = vld [vmem:[#allocation2 + $0x50] sm:$0x1]  ;;  %2098 = vrot.lane.b32.xlu0 %v2058_v7, %s4687_s17  ;;  %1686 = vrot.lane.b32.xlu1 %v1643_v57, %s4687_s17  ;;  %v1885_v10 = vsel %vm5059_vm13, %v1880_v52, %v5840_v51 }
 0x1c4   : > { %v1584_v26 = vrot.slane %v1510_v9, 5  ;;  %v1508_v33 = vld [vmem:[#allocation2 + $0x3c] sm:$0xe]  ;;  %v2469_v34 = vld [vmem:[#allocation2 + $0x48] sm:$0xe]  ;;  %v1870_v53 = vrot.slane %v1868_v8, 5  ;;  %3185 = vmatmul.bf16.gmra.mxu3 %v4100_v38 }
 0x1c5   : > { %v5857_v63 = vld [vmem:[#allocation2 + $0x68] sm:$0x1]  ;;  %v1583_v54 = vrot.slane %v1581_v45, 4  ;;  %v3998_v36 = vrot.slane %v1508_v33, 9  ;;  %v4483_v3 = vld [vmem:[%s6423_s3 + $0xc0] sm:$0xff]  ;;  %v2542_v44 = vrot.slane %v5842_v19, 5 }
 0x1c6   : > { %1970 = vst.msk [vmem:[#allocation3 + $0xd0] sm:$0xf] %vm905_vm7, %v1885_v10  ;;  %v2155_v14 = vld [vmem:[#allocation2 + $0x54] sm:$0xf]  ;;  %v1871_v25 = vsel %vm5059_vm13, %v1866_v12, %v1870_v53  ;;  %3311 = vmatpush.bf16.msrb.mxu2 %v4483_v3  ;;  %v2471_v55 = vld [vmem:[#allocation2 + $0x50] sm:$0x1] }
 0x1c7   : > { %2171 = vst.msk [vmem:[#allocation3 + $0xd4] sm:$0xf] %vm905_vm7, %v2155_v14  ;;  %v1585_v11 = vsel %vm5147_vm1, %v1583_v54, %v1584_v26  ;;  %v1746_v1 = vld [vmem:[#allocation2 + $0x54] sm:$0xf]  ;;  %v1582_v21 = vsel %vm5147_vm1, %v3998_v36, %v1581_v45  ;;  %2415 = vrot.lane.b32.xlu2 %v2344_v31, %s4687_s17  ;;  %v4006_v20 = vrot.slane %v5849_v59, 9  ;;  %v2064_v48 = vrot.slane %v5851_v28, 5 }
 0x1c8   : > { %1969 = vst.msk [vmem:[#allocation3 + $0xbc] sm:$0xf] %vm905_vm7, %v1871_v25  ;;  %v1897_v5 = vshrl.u32 %v1746_v1, 16  ;;  %v1900_v27 = vshll.u32 %v1746_v1, 16  ;;  %v2373_v0 = vshll.u32 %v5837_v23, 16  ;;  %v4469_v18 = vld [vmem:[%s6423_s3 + $0x50] sm:$0xff] }
 0x1c9   : > { %v4477_v43 = vld [vmem:[%s6423_s3 + $0x90] sm:$0xff]  ;;  %v1642_v50 = vld [vmem:[#allocation2 + $0x48] sm:$0xf]  ;;  %v2365_v24 = vshll.u32 %v5857_v63, 16  ;;  %1627 = vst.msk [vmem:[#allocation3 + $0xe0] sm:$0xf] %vm905_vm7, %v1585_v11  ;;  %v1457_v29 = vpop.permute.xlu2 %1456  ;;  %3211 = vmatpush.bf16.msrb.mxu0 %v4469_v18  ;;  %v2062_v33 = vsel %vm5147_vm1, %v4006_v20, %v2061_v37 }
 0x1ca   : > { %v1899_v56 = vrot.slane %v1897_v5, 4  ;;  %v4013_v12 = vrot.slane %v2469_v34, 9  ;;  %3260 = vmatpush.bf16.msrb.mxu1 %v4477_v43  ;;  %v1902_v60 = vrot.slane %v1900_v27, 5  ;;  %1626 = vst.msk [vmem:[#allocation3 + $0xcc] sm:$0xf] %vm905_vm7, %v1582_v21  ;;  %v2538_v17 = vrot.slane %v2471_v55, 5 }
 0x1cb   : > { %v1888_v47 = vrot.slane %v1886_v61, 4  ;;  %1491 = vst.msk [vmem:[#allocation3 + $0x118] sm:$0xf] %vm1476_vm2, %v1457_v29  ;;  %v2063_v49 = vrot.slane %v2061_v37, 4  ;;  %v5906_v57 = vld [vmem:[#allocation2 + $0x70] sm:$0xf]  ;;  %1684 = vrot.lane.b32.xlu0 %v1642_v50, %s4687_s17  ;;  %2417 = vrot.lane.b32.xlu1 %v2358_v13, %s4687_s17 }
 0x1cc   : > { %v2372_v23 = vrot.slane %v2370_v4, 4  ;;  %v2536_v42 = vsel %vm5147_vm1, %v4013_v12, %v2535_v30  ;;  %v2472_v39 = vld [vmem:[#allocation2 + $0x54] sm:$0xe]  ;;  %v2375_v2 = vrot.slane %v2373_v0, 5  ;;  %v2156_v16 = vld [vmem:[#allocation2 + $0x58] sm:$0xf]  ;;  %v1903_v8 = vor.u32 %v1902_v60, %v1899_v56 }
 0x1cd   : > { %v1747_v52 = vld [vmem:[#allocation2 + $0x58] sm:$0xf]  ;;  %v2539_v9 = vsel %vm5147_vm1, %v5788_v32, %v2538_v17  ;;  %v1889_v45 = vor.u32 %v1888_v47, %v5840_v51  ;;  %2172 = vst.msk [vmem:[#allocation3 + $0xe8] sm:$0xf] %vm905_vm7, %v2156_v16  ;;  %v1745_v30 = vld [vmem:[#allocation2 + $0x50] sm:$0x1]  ;;  %v2065_v5 = vsel %vm5147_vm1, %v2063_v49, %v2064_v48 }
 0x1ce   : > { %v1906_v46 = vshll.u32 %v1747_v52, 16  ;;  %v1910_v7 = vshrl.u32 %v1747_v52, 16  ;;  %v2363_v38 = vrot.slane %v2362_v41, 4  ;;  %v2367_v59 = vrot.slane %v2365_v24, 5  ;;  %2585 = vst.msk [vmem:[#allocation3 + $0xb0] sm:$0xf] %vm905_vm7, %v2536_v42 }
 0x1cf   : > { %v1890_v15 = vrot.slane %v1889_v45, 4  ;;  %v1892_v26 = vshll.u32 %v1745_v30, 16  ;;  %v1904_v34 = vrot.slane %v1903_v8, 4  ;;  %2586 = vst.msk [vmem:[#allocation3 + $0xc4] sm:$0xf] %vm905_vm7, %v2539_v9  ;;  %2100 = vrot.lane.b32.xlu2 %v2062_v33, %s4687_s17  ;;  %v2379_v10 = vshll.u32 %v5906_v57, 16 }
 0x1d0   : > { %v1908_v32 = vrot.slane %v1906_v46, 5  ;;  %v1512_v51 = vld [vmem:[#allocation2 + $0x4c] sm:$0xf]  ;;  %v4119_v63 = vld [vmem:[#allocation3 + $0xc8] sm:$0xf]  ;;  %v1912_v36 = vrot.slane %v1910_v7, 4  ;;  %v2376_v40 = vor.u32 %v2375_v2, %v2372_v23  ;;  %v2368_v43 = vsel %vm5059_vm13, %v2363_v38, %v2367_v59 }
 0x1d1   : > { %v4468_v53 = vld [vmem:[%s6423_s3 + $0x48] sm:$0xff]  ;;  %v1894_v54 = vrot.slane %v1892_v26, 5  ;;  %v1513_v62 = vld [vmem:[#allocation2 + $0x50] sm:$0x1]  ;;  %v1588_v3 = vrot.slane %v1512_v51, 5  ;;  %v4014_v14 = vrot.slane %v2472_v39, 9  ;;  %v1453_v4 = vpop.permute.xlu0 %1452  ;;  %v2396_v61 = vpop.permute.xlu2 %2395 }
 0x1d2   : > { %v1909_v37 = vsel %vm5059_vm13, %v1904_v34, %v1908_v32  ;;  %v4446_v25 = vld [vmem:[#allocation3 + $0xd8] sm:$0xf0]  ;;  %3212 = vmatpush.bf16.msrb.mxu0 %v4468_v53  ;;  %v1511_v1 = vld [vmem:[#allocation2 + $0x48] sm:$0xe]  ;;  %v2544_v31 = vrot.slane %v2542_v44, 4  ;;  %v2383_v28 = vshrl.u32 %v5906_v57, 16  ;;  %v1913_v18 = vor.u32 %v1912_v36, %v1908_v32 }
 0x1d3   : > { %1972 = vst.msk [vmem:[#allocation3 + $0xf8] sm:$0xf] %vm905_vm7, %v1909_v37  ;;  %v1895_v11 = vsel %vm5059_vm13, %v1890_v15, %v1894_v54  ;;  %v1645_v27 = vld [vmem:[#allocation2 + $0x58] sm:$0xf]  ;;  %v4120_v21 = vor.u32 %v4446_v25, %v4119_v63  ;;  %v4476_v55 = vld [vmem:[%s6423_s3 + $0x88] sm:$0xff]  ;;  %v2543_v20 = vsel %vm5147_vm1, %v4014_v14, %v2542_v44  ;;  %2102 = vrot.lane.b32.xlu0 %v2065_v5, %s4687_s17  ;;  %v1590_v48 = vrot.slane %v1588_v3, 4 }
 0x1d4   : > { %1489 = vst.msk [vmem:[#allocation3 + $0xf0] sm:$0xf] %vm1476_vm2, %v1453_v4  ;;  %1690 = vrot.lane.b32.xlu1 %v1645_v27, %s4687_s17  ;;  %v1591_v0 = vrot.slane %v1513_v62, 5  ;;  %v2377_v50 = vrot.slane %v2376_v40, 4  ;;  %v2381_v19 = vrot.slane %v2379_v10, 5  ;;  %3261 = vmatpush.bf16.msrb.mxu1 %v4476_v55  ;;  %v4467_v44 = vld [vmem:[%s6423_s3 + $0x40] sm:$0xff] }
 0x1d5   : > { %2442 = vst.msk [vmem:[#allocation3 + $0x20] sm:$0xf] %vm1476_vm2, %v2396_v61  ;;  %3190 = vmatmul.bf16.gmra.mxu3 %v4120_v21  ;;  %v3999_v13 = vrot.slane %v1511_v1, 9  ;;  %v1455_v24 = vpop.permute.xlu1 %1454  ;;  %v1995_v56 = vld [vmem:[#allocation2 + $0x58] sm:$0xf]  ;;  %v2385_v49 = vrot.slane %v2383_v28, 4 }
 0x1d6   : > { %1971 = vst.msk [vmem:[#allocation3 + $0xe4] sm:$0xf] %vm905_vm7, %v1895_v11  ;;  %v1592_v12 = vsel %vm5147_vm1, %v1590_v48, %v1591_v0  ;;  %v2474_v29 = vld [vmem:[#allocation2 + $0x5c] sm:$0x1]  ;;  %3213 = vmatpush.bf16.msrb.mxu0 %v4467_v44  ;;  %v1994_v47 = vld [vmem:[#allocation2 + $0x54] sm:$0xe]  ;;  %v2382_v42 = vsel %vm5059_vm13, %v2377_v50, %v2381_v19 }
 0x1d7   : > { %2587 = vst.msk [vmem:[#allocation3 + $0xd8] sm:$0xf] %vm905_vm7, %v2543_v20  ;;  %v1589_v41 = vsel %vm5147_vm1, %v3999_v13, %v1588_v3  ;;  %v2545_v60 = vrot.slane %v2474_v29, 5  ;;  %v1748_v17 = vld [vmem:[#allocation2 + $0x5c] sm:$0x1]  ;;  %2419 = vrot.lane.b32.xlu2 %v2368_v43, %s4687_s17  ;;  %v1914_v57 = vrot.slane %v1913_v18, 4  ;;  %v2386_v34 = vor.u32 %v2385_v49, %v2381_v19 }
 0x1d8   : > { %1490 = vst.msk [vmem:[#allocation3 + $0x104] sm:$0xf] %vm1476_vm2, %v1455_v24  ;;  %v1916_v23 = vshll.u32 %v1748_v17, 16  ;;  %v1515_v2 = vld [vmem:[#allocation2 + $0x58] sm:$0xf]  ;;  %v2068_v7 = vrot.slane %v1995_v56, 5 }
 0x1d9   : > { %1629 = vst.msk [vmem:[#allocation3 + $0x108] sm:$0xf] %vm905_vm7, %v1592_v12  ;;  %v2546_v39 = vsel %vm5147_vm1, %v2544_v31, %v2545_v60  ;;  %v1516_v16 = vld [vmem:[#allocation2 + $0x5c] sm:$0x1]  ;;  %v2081_v52 = vpop.permute.xlu2 %2080  ;;  %v2200_v8 = vld [vmem:[#allocation2 + $0x74] sm:$0x1] }
 0x1da   : > { %1628 = vst.msk [vmem:[#allocation3 + $0xf4] sm:$0xf] %vm905_vm7, %v1589_v41  ;;  %v1918_v9 = vrot.slane %v1916_v23, 5  ;;  %v1595_v45 = vrot.slane %v1515_v2, 5  ;;  %v1644_v46 = vld [vmem:[#allocation2 + $0x54] sm:$0xf] }
 0x1db   : > { %2588 = vst.msk [vmem:[#allocation3 + $0xec] sm:$0xf] %vm905_vm7, %v2546_v39  ;;  %v4475_v30 = vld [vmem:[%s6423_s3 + $0x80] sm:$0xff]  ;;  %1688 = vrot.lane.b32.xlu0 %v1644_v46, %s4687_s17  ;;  %v1598_v15 = vrot.slane %v1516_v16, 5  ;;  %v1514_v26 = vld [vmem:[#allocation2 + $0x54] sm:$0xe] }
 0x1dc   : > { %2128 = vst.msk [vmem:[#allocation3 + $0x8] sm:$0xf] %vm1476_vm2, %v2081_v52  ;;  %2421 = vrot.lane.b32.xlu1 %v2382_v42, %s4687_s17  ;;  %v1919_v38 = vsel %vm5059_vm13, %v1914_v57, %v1918_v9  ;;  %v1597_v59 = vrot.slane %v1595_v45, 4  ;;  %v4007_v33 = vrot.slane %v1994_v47, 9  ;;  %v2389_v32 = vshll.u32 %v2200_v8, 16  ;;  %3262 = vmatpush.bf16.msrb.mxu1 %v4475_v30  ;;  %s4611_s23 = scalar_lea.hbm %s6427_s7, 1024 }
 0x1dd   : > { %1973 = vst.msk [vmem:[#allocation3 + $0x10c] sm:$0xf] %vm905_vm7, %v1919_v38  ;;  %v4000_v51 = vrot.slane %v1514_v26, 9  ;;  %v2394_v63 = vpop.permute.xlu1 %2393  ;;  %v1996_v10 = vld [vmem:[#allocation2 + $0x5c] sm:$0x1]  ;;  %v2070_v36 = vrot.slane %v2068_v7, 4 }
 0x1de   : > { %v1599_v53 = vsel %vm5147_vm1, %v1597_v59, %v1598_v15  ;;  %2441 = vst.msk [vmem:[#allocation3 + $0xc] sm:$0xf] %vm1476_vm2, %v2394_v63  ;;  %v2069_v54 = vsel %vm5147_vm1, %v4007_v33, %v2068_v7  ;;  %v2071_v62 = vrot.slane %v1996_v10, 5  ;;  %v2387_v3 = vrot.slane %v2386_v34, 4  ;;  %v4139_v61 = vld [vmem:[#allocation3 + $0xf0] sm:$0xf] }
 0x1df   : > { %v1596_v40 = vsel %vm5147_vm1, %v4000_v51, %v1595_v45  ;;  %2104 = vrot.lane.b32.xlu2 %v2069_v54, %s4687_s17  ;;  %v4451_v37 = vld [vmem:[#allocation3 + $0x100] sm:$0xf0]  ;;  %1631 = vst.msk [vmem:[#allocation3 + $0x130] sm:$0xf] %vm905_vm7, %v1599_v53  ;;  %v2391_v14 = vrot.slane %v2389_v32, 5 }
 0x1e0   : > { %1630 = vst.msk [vmem:[#allocation3 + $0x11c] sm:$0xf] %vm905_vm7, %v1596_v40  ;;  %v2072_v25 = vsel %vm5147_vm1, %v2070_v36, %v2071_v62  ;;  %v1647_v11 = vld [vmem:[#allocation2 + $0x64] sm:$0xf]  ;;  %v4140_v1 = vor.u32 %v4451_v37, %v4139_v61  ;;  %v4029_v55 = vld [vmem:[#allocation3 + $0x1c] sm:$0xf0]  ;;  %v475_v61 = vpop.f32.mrf.mxu0 }
 0x1e1   : > { %v2400_v4 = vpop.permute.xlu2 %2399  ;;  %v2392_v31 = vsel %vm5059_vm13, %v2387_v3, %v2391_v14  ;;  %v1997_v28 = vld [vmem:[#allocation2 + $0x60] sm:$0xe]  ;;  %v1998_v48 = vld [vmem:[#allocation2 + $0x64] sm:$0xf]  ;;  %v1999_v19 = vld [vmem:[#allocation2 + $0x68] sm:$0x1] }
 0x1e2   : > { %2444 = vst.msk [vmem:[#allocation3 + $0x48] sm:$0xf] %vm1476_vm2, %v2400_v4  ;;  %v1646_v18 = vld [vmem:[#allocation2 + $0x60] sm:$0xf]  ;;  %v4008_v43 = vrot.slane %v1997_v28, 9  ;;  %v2075_v50 = vrot.slane %v1998_v48, 5 }
 0x1e3   : > { %2106 = vrot.lane.b32.xlu0 %v2072_v25, %s4687_s17  ;;  %v2078_v12 = vrot.slane %v1999_v19, 5  ;;  %v4159_v60 = vld [vmem:[#allocation3 + $0x118] sm:$0xf]  ;;  %v4502_v9 = vld [vmem:[%s6425_s5 + $0x34] sm:$0xf0]  ;;  %v476_v25 = vadd.f32 %v475_v61, %v4963_v58 }
 0x1e4   : > { %1694 = vrot.lane.b32.xlu1 %v1647_v11, %s4687_s17  ;;  %v2076_v24 = vsel %vm5147_vm1, %v4008_v43, %v2075_v50  ;;  %v2077_v56 = vrot.slane %v2075_v50, 4  ;;  %v4355_v8 = vld [vmem:[%s6425_s5 + $0x30] sm:$0xf]  ;;  %v4501_v46 = vld [vmem:[%s6425_s5 + $0x34] sm:$0xf] }
 0x1e5   : > { %3195 = vmatmul.bf16.gmra.mxu3 %v4140_v1  ;;  %v1459_v5 = vpop.permute.xlu0 %1458  ;;  %v1667_v27 = vpop.permute.xlu1 %1666  ;;  %v4420_v21 = vld [vmem:[#allocation3 + $0xc] sm:$0xf]  ;;  %v4356_v45 = vor.u32 %v4502_v9, %v4355_v8  ;;  %v4357_v7 = vld [vmem:[%s6425_s5 + $0x38] sm:$0xf0]  ;;  %v4027_v26 = vld [vmem:[#allocation3 + $0x8] sm:$0xf]  ;;  %613 = vst [vmem:[%s4967_s20] sm:$0xff] %v476_v25 }
 0x1e6   : > { %1492 = vst.msk [vmem:[#allocation3 + $0x12c] sm:$0xf] %vm1476_vm2, %v1459_v5  ;;  %v4032_v20 = vor.u32 %v4420_v21, %v4029_v55  ;;  %v2079_v17 = vsel %vm5147_vm1, %v2077_v56, %v2078_v12  ;;  %v4360_v38 = vor.u32 %v4501_v46, %v4357_v7  ;;  %v4423_v32 = vld [vmem:[#allocation3 + $0x20] sm:$0xf0]  ;;  %v4035_v63 = vld [vmem:[#allocation3 + $0x10] sm:$0xf]  ;;  %v524_v1 = vpop.f32.mrf.mxu1 }
 0x1e7   : > { %1713 = vst.msk [vmem:[#allocation3 + $0x18] sm:$0xf] %vm1476_vm2, %v1667_v27  ;;  %2423 = vrot.lane.b32.xlu2 %v2392_v31, %s4687_s17  ;;  %3508 = vmatpush.bf16.msra.mxu0 %v4356_v45  ;;  %v4036_v10 = vor.u32 %v4423_v32, %v4035_v63  ;;  %v525_v31 = vadd.f32 %v524_v1, %v4986_v6  ;;  %v4428_v48 = vld [vmem:[#allocation3 + $0x48] sm:$0xf0]  ;;  %v4055_v19 = vld [vmem:[#allocation3 + $0x38] sm:$0xf] }
 0x1e8   : > { %3312 = vmatmul.bf16.vlgmr.msrb.gmra.mxu2 %v4032_v20  ;;  %3557 = vmatpush.bf16.msra.mxu1 %v4360_v38  ;;  %v2158_v43 = vld [vmem:[#allocation2 + $0x64] sm:$0xf]  ;;  %v2157_v38 = vld [vmem:[#allocation2 + $0x60] sm:$0xf] }
 0x1e9   : > { %v2085_v0 = vpop.permute.xlu2 %2084  ;;  %v4049_v16 = vld [vmem:[#allocation3 + $0x44] sm:$0xf0]  ;;  %614 = vst [vmem:[%s4967_s20 + $0x8] sm:$0xff] %v525_v31 }
 0x1ea   : > { %2130 = vst.msk [vmem:[#allocation3 + $0x30] sm:$0xf] %vm1476_vm2, %v2085_v0  ;;  %v477_v0 = vpop.f32.mrf.mxu0  ;;  %v1749_v25 = vld [vmem:[#allocation2 + $0x60] sm:$0xf] }
 0x1eb   : > { %1692 = vrot.lane.b32.xlu0 %v1646_v18, %s4687_s17  ;;  %v478_v18 = vadd.f32 %v477_v0, %v4963_v58  ;;  %2174 = vst.msk [vmem:[#allocation3 + $0x110] sm:$0xf] %vm905_vm7, %v2158_v43  ;;  %v1921_v1 = vshrl.u32 %v1749_v25, 16  ;;  %v1924_v31 = vshll.u32 %v1749_v25, 16  ;;  %v4341_v25 = vld [vmem:[%s6425_s5 + $0x18] sm:$0xf0] }
 0x1ec   : > { %2173 = vst.msk [vmem:[#allocation3 + $0xfc] sm:$0xf] %vm905_vm7, %v2157_v38 }
 0x1ed   : > { %v1665_v44 = vpop.permute.xlu0 %1664  ;;  %v2398_v13 = vpop.permute.xlu1 %2397  ;;  %v4456_v29 = vld [vmem:[#allocation3 + $0x128] sm:$0xf0]  ;;  %615 = vst [vmem:[%s4967_s20 + $0x10] sm:$0xff] %v478_v18 }
 0x1ee   : > { %1712 = vst.msk [vmem:[#allocation3 + $0x4] sm:$0xf] %vm1476_vm2, %v1665_v44  ;;  %v4160_v47 = vor.u32 %v4456_v29, %v4159_v60  ;;  %v4021_v42 = vld [vmem:[#allocation3 + $0x14] sm:$0xf0]  ;;  %v4056_v44 = vor.u32 %v4428_v48, %v4055_v19 }
 0x1ef   : > { %2443 = vst.msk [vmem:[#allocation3 + $0x34] sm:$0xf] %vm1476_vm2, %v2398_v13  ;;  %2108 = vrot.lane.b32.xlu2 %v2076_v24, %s4687_s17  ;;  %v526_v13 = vpop.f32.mrf.mxu1 }
 0x1f0   : > { %v527_v24 = vadd.f32 %v526_v13, %v4986_v6 }
 0x1f1   : > { %v2404_v41 = vpop.permute.xlu2 %2403  ;;  %v4047_v21 = vld [vmem:[#allocation3 + $0x30] sm:$0xf] }
 0x1f2   : > { %2446 = vst.msk [vmem:[#allocation3 + $0x70] sm:$0xf] %vm1476_vm2, %v2404_v41 }
 0x1f3   : > { %2110 = vrot.lane.b32.xlu0 %v2079_v17, %s4687_s17  ;;  %616 = vst [vmem:[%s4967_s20 + $0x18] sm:$0xff] %v527_v24  ;;  %s4605_s17 = sshra.s32 %s3749_s9, 4  ;;  %s4606_s17 = int_to_ptr.hbm [resolvable:$true] %s4605_s17 }
 0x1f4   : > { %s4607_s21 = scalar_lea.hbm %s4606_s17, 256  ;;  %p4612_p7 = scmp.lt.s32.totalorder %s4606_s17, %s6427_s7 }
 0x1f5   : > { %3200 = vmatmul.bf16.gmra.mxu3 %v4160_v47  ;;  %v2083_v49 = vpop.permute.xlu0 %2082  ;;  %v1671_v57 = vpop.permute.xlu1 %1670  ;;  %v4419_v23 = vld [vmem:[#allocation3 + $0x4] sm:$0xf]  ;;  %p4608_p4 = scmp.ne.s32.totalorder %s4606_s17, %s4607_s21  ;;  %p4613_p9 = scmp.lt.s32.totalorder %s4611_s23, %s4607_s21 }
 0x1f6   : > { %2129 = vst.msk [vmem:[#allocation3 + $0x1c] sm:$0xf] %vm1476_vm2, %v2083_v49  ;;  %v4024_v39 = vor.u32 %v4419_v23, %v4021_v42  ;;  %v4425_v2 = vld [vmem:[#allocation3 + $0x34] sm:$0xf]  ;;  %v4347_v23 = vld [vmem:[%s6425_s5 + $0x20] sm:$0xf] }
 0x1f7   : > { %1715 = vst.msk [vmem:[#allocation3 + $0x40] sm:$0xf] %vm1476_vm2, %v1671_v57  ;;  %v4052_v52 = vor.u32 %v4425_v2, %v4049_v16  ;;  %v4500_v42 = vld [vmem:[%s6425_s5 + $0x24] sm:$0xf0]  ;;  %v4499_v2 = vld [vmem:[%s6425_s5 + $0x24] sm:$0xf]  ;;  %p4609_p5 = pnand %p4608_p4, %p4781_p3  ;;  %p4614_p10 = por %p4613_p9, %p4612_p7 }
 0x1f8   : > { %3214 = vmatmul.bf16.vlgmr.msrb.gmra.mxu0 %v4024_v39  ;;  %v6031_v53 = vpop.f32.mrf.mxu3  ;;  %v4348_v39 = vor.u32 %v4500_v42, %v4347_v23  ;;  %v4349_v16 = vld [vmem:[%s6425_s5 + $0x28] sm:$0xf0]  ;;  %v4095_v23 = vld [vmem:[#allocation3 + $0x88] sm:$0xf] }
 0x1f9   : > { %3317 = vmatmul.bf16.gmra.mxu2 %v4052_v52  ;;  %v2089_v30 = vpop.permute.xlu2 %2088  ;;  %v4069_v14 = vld [vmem:[#allocation3 + $0x6c] sm:$0xf0]  ;;  %v4352_v8 = vor.u32 %v4499_v2, %v4349_v16  ;;  %p4610_p6 = pneg %p4609_p5 }
 0x1fa   : > { %2132 = vst.msk [vmem:[#allocation3 + $0x58] sm:$0xf] %vm1476_vm2, %v2089_v30  ;;  %3509 = vmatpush.bf16.msra.mxu0 %v4348_v39 }
 0x1fb   : > { %3558 = vmatpush.bf16.msra.mxu1 %v4352_v8  ;;  %v1751_v8 = vld [vmem:[#allocation2 + $0x68] sm:$0x1]  ;;  %p4615_p11 = pnand %p4614_p10, %p4610_p6 }
 0x1fc   : > { %v1940_v38 = vshll.u32 %v1751_v8, 16 }
 0x1fd   : > { %v1669_v59 = vpop.permute.xlu0 %1668  ;;  %v2402_v15 = vpop.permute.xlu1 %2401  ;;  %v4422_v33 = vld [vmem:[#allocation3 + $0x18] sm:$0xf0] }
 0x1fe   : > { %1714 = vst.msk [vmem:[#allocation3 + $0x2c] sm:$0xf] %vm1476_vm2, %v1669_v59  ;;  %v4028_v34 = vor.u32 %v4422_v33, %v4027_v26  ;;  %v4041_v37 = vld [vmem:[#allocation3 + $0x3c] sm:$0xf0]  ;;  %v2160_v26 = vld [vmem:[#allocation2 + $0x70] sm:$0xf] }
 0x1ff   : > { %2445 = vst.msk [vmem:[#allocation3 + $0x5c] sm:$0xf] %vm1476_vm2, %v2402_v15  ;;  %v4433_v15 = vld [vmem:[#allocation3 + $0x70] sm:$0xf0] }
 0x200   : > { %3263 = vmatmul.bf16.vlgmr.msrb.gmra.mxu1 %v4028_v34  ;;  %v6042_v28 = vpop.f32.mrf.mxu3  ;;  %v4075_v34 = vld [vmem:[#allocation3 + $0x60] sm:$0xf]  ;;  %2176 = vst.msk [vmem:[#allocation3 + $0x138] sm:$0xf] %vm905_vm7, %v2160_v26 }
 0x201   : > { %v2408_v51 = vpop.permute.xlu2 %2407  ;;  %v4067_v46 = vld [vmem:[#allocation3 + $0x58] sm:$0xf]  ;;  %v4076_v32 = vor.u32 %v4433_v15, %v4075_v34 }
 0x202   : > { %2448 = vst.msk [vmem:[#allocation3 + $0x98] sm:$0xf] %vm1476_vm2, %v2408_v51  ;;  %v6077_v51 = vpop.f32.mrf.mxu0 }
 0x205   : > { %4321 = vmatmul.msk.bf16.vlgmr.msra.gmra.mxu3 %vm441_vm0, %v4036_v10  ;;  %v2087_v54 = vpop.permute.xlu0 %2086  ;;  %v1675_v36 = vpop.permute.xlu1 %1674  ;;  %v4424_v40 = vld [vmem:[#allocation3 + $0x2c] sm:$0xf] }
 0x206   : > { %2131 = vst.msk [vmem:[#allocation3 + $0x44] sm:$0xf] %vm1476_vm2, %v2087_v54  ;;  %v4044_v62 = vor.u32 %v4424_v40, %v4041_v37  ;;  %v4430_v3 = vld [vmem:[#allocation3 + $0x5c] sm:$0xf] }
 0x207   : > { %1717 = vst.msk [vmem:[#allocation3 + $0x68] sm:$0xf] %vm1476_vm2, %v1675_v36  ;;  %v4072_v4 = vor.u32 %v4430_v3, %v4069_v14 }
 0x208   : > { %3219 = vmatmul.bf16.gmra.mxu0 %v4044_v62 }
 0x209   : > { %3322 = vmatmul.bf16.gmra.mxu2 %v4072_v4  ;;  %v2093_v11 = vpop.permute.xlu2 %2092  ;;  %v4089_v47 = vld [vmem:[#allocation3 + $0x94] sm:$0xf0]  ;;  %v2476_v4 = vld [vmem:[#allocation2 + $0x64] sm:$0xf] }
 0x20a   : > { %2134 = vst.msk [vmem:[#allocation3 + $0x80] sm:$0xf] %vm1476_vm2, %v2093_v11  ;;  %v1750_v11 = vld [vmem:[#allocation2 + $0x64] sm:$0xf]  ;;  %v6087_v13 = vpop.f32.mrf.mxu0 }
 0x20b   : > { %v1934_v43 = vshrl.u32 %v1750_v11, 16 }
 0x20d   : > { %v1673_v5 = vpop.permute.xlu0 %1672  ;;  %v2406_v27 = vpop.permute.xlu1 %2405  ;;  %v4427_v55 = vld [vmem:[#allocation3 + $0x40] sm:$0xf0]  ;;  %v1936_v2 = vrot.slane %v1934_v43, 4  ;;  %v2478_v43 = vld [vmem:[#allocation2 + $0x6c] sm:$0xe] }
 0x20e   : > { %1716 = vst.msk [vmem:[#allocation3 + $0x54] sm:$0xf] %vm1476_vm2, %v1673_v5  ;;  %v4048_v20 = vor.u32 %v4427_v55, %v4047_v21  ;;  %v4061_v41 = vld [vmem:[#allocation3 + $0x64] sm:$0xf0]  ;;  %v2549_v5 = vrot.slane %v2476_v4, 5  ;;  %v1923_v21 = vrot.slane %v1921_v1, 4 }
 0x20f   : > { %2447 = vst.msk [vmem:[#allocation3 + $0x84] sm:$0xf] %vm1476_vm2, %v2406_v27  ;;  %v1930_v27 = vshll.u32 %v1750_v11, 16  ;;  %v1926_v55 = vrot.slane %v1924_v31, 5 }
 0x210   : > { %3268 = vmatmul.bf16.gmra.mxu1 %v4048_v20 }
 0x211   : > { %v2412_v50 = vpop.permute.xlu2 %2411  ;;  %v4087_v0 = vld [vmem:[#allocation3 + $0x80] sm:$0xf]  ;;  %v1927_v24 = vor.u32 %v1926_v55, %v1923_v21 }
 0x212   : > { %2450 = vst.msk [vmem:[#allocation3 + $0xc0] sm:$0xf] %vm1476_vm2, %v2412_v50  ;;  %v2475_v50 = vld [vmem:[#allocation2 + $0x60] sm:$0xe] }
 0x213   : > { %v4015_v42 = vrot.slane %v2475_v50, 9  ;;  %v2480_v50 = vld [vmem:[#allocation2 + $0x74] sm:$0x1] }
 0x215   : > { %4322 = vmatmul.msk.bf16.gmra.mxu3 %vm441_vm0, %v4056_v44  ;;  %v2091_v56 = vpop.permute.xlu0 %2090  ;;  %v1679_v12 = vpop.permute.xlu1 %1678  ;;  %v4429_v29 = vld [vmem:[#allocation3 + $0x54] sm:$0xf] }
 0x216   : > { %2133 = vst.msk [vmem:[#allocation3 + $0x6c] sm:$0xf] %vm1476_vm2, %v2091_v56  ;;  %v4064_v60 = vor.u32 %v4429_v29, %v4061_v41  ;;  %v4435_v17 = vld [vmem:[#allocation3 + $0x84] sm:$0xf]  ;;  %v6085_v44 = vpop.f32.mrf.mxu1  ;;  %v2159_v56 = vld [vmem:[#allocation2 + $0x6c] sm:$0xf] }
 0x217   : > { %1719 = vst.msk [vmem:[#allocation3 + $0x90] sm:$0xf] %vm1476_vm2, %v1679_v12  ;;  %v6054_v49 = vpop.f32.mrf.mxu3  ;;  %v4092_v57 = vor.u32 %v4435_v17, %v4089_v47  ;;  %v2551_v12 = vrot.slane %v2549_v5, 4  ;;  %v4438_v41 = vld [vmem:[#allocation3 + $0x98] sm:$0xf0]  ;;  %v1928_v17 = vrot.slane %v1927_v24, 4 }
 0x218   : > { %3224 = vmatmul.bf16.gmra.mxu0 %v4064_v60  ;;  %v1932_v60 = vrot.slane %v1930_v27, 5  ;;  %2175 = vst.msk [vmem:[#allocation3 + $0x124] sm:$0xf] %vm905_vm7, %v2159_v56  ;;  %v2477_v47 = vld [vmem:[#allocation2 + $0x68] sm:$0x1]  ;;  %v4096_v16 = vor.u32 %v4438_v41, %v4095_v23  ;;  %v4016_v56 = vrot.slane %v2478_v43, 9 }
 0x219   : > { %3327 = vmatmul.bf16.gmra.mxu2 %v4092_v57  ;;  %v2097_v52 = vpop.permute.xlu2 %2096  ;;  %v4109_v62 = vld [vmem:[#allocation3 + $0xbc] sm:$0xf0]  ;;  %v2552_v39 = vrot.slane %v2477_v47, 5  ;;  %v4115_v24 = vld [vmem:[#allocation3 + $0xb0] sm:$0xf]  ;;  %v2559_v41 = vrot.slane %v2480_v50, 5 }
 0x21a   : > { %2136 = vst.msk [vmem:[#allocation3 + $0xa8] sm:$0xf] %vm1476_vm2, %v2097_v52  ;;  %v1933_v52 = vsel %vm5059_vm13, %v1928_v17, %v1932_v60 }
 0x21b   : > { %1974 = vst.msk [vmem:[#allocation3 + $0x120] sm:$0xf] %vm905_vm7, %v1933_v52 }
 0x21d   : > { %v1677_v9 = vpop.permute.xlu0 %1676  ;;  %v2410_v45 = vpop.permute.xlu1 %2409  ;;  %v4432_v7 = vld [vmem:[#allocation3 + $0x68] sm:$0xf0] }
 0x21e   : > { %1718 = vst.msk [vmem:[#allocation3 + $0x7c] sm:$0xf] %vm1476_vm2, %v1677_v9  ;;  %v4068_v30 = vor.u32 %v4432_v7, %v4067_v46  ;;  %v4081_v36 = vld [vmem:[#allocation3 + $0x8c] sm:$0xf0]  ;;  %v2550_v9 = vsel %vm5147_vm1, %v4015_v42, %v2549_v5  ;;  %v1937_v46 = vor.u32 %v1936_v2, %v1932_v60  ;;  %v2479_v5 = vld [vmem:[#allocation2 + $0x70] sm:$0xf] }
 0x21f   : > { %2449 = vst.msk [vmem:[#allocation3 + $0xac] sm:$0xf] %vm1476_vm2, %v2410_v45  ;;  %v6071_v59 = vpop.f32.mrf.mxu3  ;;  %v2553_v45 = vsel %vm5147_vm1, %v2551_v12, %v2552_v39 }
 0x220   : > { %3273 = vmatmul.bf16.gmra.mxu1 %v4068_v30  ;;  %2589 = vst.msk [vmem:[#allocation3 + $0x100] sm:$0xf] %vm905_vm7, %v2550_v9  ;;  %v1938_v34 = vrot.slane %v1937_v46, 4 }
 0x221   : > { %v2416_v33 = vpop.permute.xlu2 %2415  ;;  %2590 = vst.msk [vmem:[#allocation3 + $0x114] sm:$0xf] %vm905_vm7, %v2553_v45  ;;  %v4107_v55 = vld [vmem:[#allocation3 + $0xa8] sm:$0xf] }
 0x222   : > { %2452 = vst.msk [vmem:[#allocation3 + $0xe8] sm:$0xf] %vm1476_vm2, %v2416_v33 }
 0x225   : > { %4323 = vmatmul.msk.bf16.gmra.mxu3 %vm441_vm0, %v4076_v32  ;;  %v2095_v63 = vpop.permute.xlu0 %2094  ;;  %v1683_v10 = vpop.permute.xlu1 %1682  ;;  %v4434_v54 = vld [vmem:[#allocation3 + $0x7c] sm:$0xf] }
 0x226   : > { %2135 = vst.msk [vmem:[#allocation3 + $0x94] sm:$0xf] %vm1476_vm2, %v2095_v63  ;;  %v4084_v40 = vor.u32 %v4434_v54, %v4081_v36  ;;  %v4440_v37 = vld [vmem:[#allocation3 + $0xac] sm:$0xf] }
 0x227   : > { %1721 = vst.msk [vmem:[#allocation3 + $0xb8] sm:$0xf] %vm1476_vm2, %v1683_v10  ;;  %v6081_v3 = vpop.f32.mrf.mxu3  ;;  %v4112_v14 = vor.u32 %v4440_v37, %v4109_v62  ;;  %v1942_v10 = vrot.slane %v1940_v38, 5  ;;  %v4498_v37 = vld [vmem:[%s6425_s5 + $0x14] sm:$0xf0]  ;;  %v6114_v62 = vpop.f32.mrf.mxu1 }
 0x228   : > { %3229 = vmatmul.bf16.gmra.mxu0 %v4084_v40  ;;  %v4339_v40 = vld [vmem:[%s6425_s5 + $0x10] sm:$0xf] }
 0x229   : > { %3332 = vmatmul.bf16.gmra.mxu2 %v4112_v14  ;;  %v2101_v61 = vpop.permute.xlu2 %2100  ;;  %v4129_v30 = vld [vmem:[#allocation3 + $0xe4] sm:$0xf0]  ;;  %v6116_v14 = vpop.f32.mrf.mxu0  ;;  %v4340_v4 = vor.u32 %v4498_v37, %v4339_v40  ;;  %v1943_v11 = vsel %vm5059_vm13, %v1938_v34, %v1942_v10  ;;  %v4135_v10 = vld [vmem:[#allocation3 + $0xd8] sm:$0xf] }
 0x22a   : > { %2138 = vst.msk [vmem:[#allocation3 + $0xd0] sm:$0xf] %vm1476_vm2, %v2101_v61  ;;  %v4497_v61 = vld [vmem:[%s6425_s5 + $0x14] sm:$0xf] }
 0x22b   : > { %v4344_v31 = vor.u32 %v4497_v61, %v4341_v25  ;;  %1975 = vst.msk [vmem:[#allocation3 + $0x134] sm:$0xf] %vm905_vm7, %v1943_v11  ;;  %3510 = vmatpush.bf16.msra.mxu0 %v4340_v4 }
 0x22d   : > { %v1681_v20 = vpop.permute.xlu0 %1680  ;;  %v2414_v48 = vpop.permute.xlu1 %2413  ;;  %v4437_v18 = vld [vmem:[#allocation3 + $0x90] sm:$0xf0]  ;;  %3559 = vmatpush.bf16.msra.mxu1 %v4344_v31 }
 0x22e   : > { %1720 = vst.msk [vmem:[#allocation3 + $0xa4] sm:$0xf] %vm1476_vm2, %v1681_v20  ;;  %v4088_v19 = vor.u32 %v4437_v18, %v4087_v0  ;;  %v4101_v7 = vld [vmem:[#allocation3 + $0xb4] sm:$0xf0]  ;;  %v4443_v0 = vld [vmem:[#allocation3 + $0xc0] sm:$0xf0] }
 0x22f   : > { %2451 = vst.msk [vmem:[#allocation3 + $0xd4] sm:$0xf] %vm1476_vm2, %v2414_v48  ;;  %v6090_v29 = vpop.f32.mrf.mxu3  ;;  %v2556_v18 = vrot.slane %v2479_v5, 5  ;;  %v4116_v60 = vor.u32 %v4443_v0, %v4115_v24  ;;  %v6133_v17 = vpop.f32.mrf.mxu1  ;;  %v4331_v5 = vld [vmem:[%s6425_s5] sm:$0xf] }
 0x230   : > { %3278 = vmatmul.bf16.gmra.mxu1 %v4088_v19 }
 0x231   : > { %v2420_v57 = vpop.permute.xlu2 %2419  ;;  %v2558_v12 = vrot.slane %v2556_v18, 4  ;;  %v6135_v47 = vpop.f32.mrf.mxu0 }
 0x232   : > { %2454 = vst.msk [vmem:[#allocation3 + $0x110] sm:$0xf] %vm1476_vm2, %v2420_v57  ;;  %v2557_v57 = vsel %vm5147_vm1, %v4016_v56, %v2556_v18  ;;  %v4333_v18 = vld [vmem:[%s6425_s5 + $0x8] sm:$0xf0] }
 0x233   : > { %v2560_v23 = vsel %vm5147_vm1, %v2558_v12, %v2559_v41  ;;  %2591 = vst.msk [vmem:[#allocation3 + $0x128] sm:$0xf] %vm905_vm7, %v2557_v57  ;;  %v4155_v41 = vld [vmem:[#allocation3 + $0x100] sm:$0xf] }
 0x234   : > { %2592 = vst.msk [vmem:[#allocation3 + $0x13c] sm:$0xf] %vm905_vm7, %v2560_v23 }
 0x235   : > { %4324 = vmatmul.msk.bf16.gmra.mxu3 %vm441_vm0, %v4096_v16  ;;  %v2099_v15 = vpop.permute.xlu0 %2098  ;;  %v1687_v26 = vpop.permute.xlu1 %1686  ;;  %v4439_v33 = vld [vmem:[#allocation3 + $0xa4] sm:$0xf] }
 0x236   : > { %2137 = vst.msk [vmem:[#allocation3 + $0xbc] sm:$0xf] %vm1476_vm2, %v2099_v15  ;;  %v4104_v32 = vor.u32 %v4439_v33, %v4101_v7  ;;  %v4445_v63 = vld [vmem:[#allocation3 + $0xd4] sm:$0xf] }
 0x237   : > { %1723 = vst.msk [vmem:[#allocation3 + $0xe0] sm:$0xf] %vm1476_vm2, %v1687_v26  ;;  %v6106_v54 = vpop.f32.mrf.mxu3  ;;  %v4132_v36 = vor.u32 %v4445_v63, %v4129_v30  ;;  %v6149_v7 = vpop.f32.mrf.mxu1  ;;  %v4127_v26 = vld [vmem:[#allocation3 + $0xd0] sm:$0xf]  ;;  %v4448_v63 = vld [vmem:[#allocation3 + $0xe8] sm:$0xf0] }
 0x238   : > { %3234 = vmatmul.bf16.gmra.mxu0 %v4104_v32 }
 0x239   : > { %3337 = vmatmul.bf16.gmra.mxu2 %v4132_v36  ;;  %v2105_v1 = vpop.permute.xlu2 %2104  ;;  %v4149_v9 = vld [vmem:[#allocation3 + $0x10c] sm:$0xf0]  ;;  %v6151_v30 = vpop.f32.mrf.mxu0  ;;  %v4136_v36 = vor.u32 %v4448_v63, %v4135_v10 }
 0x23a   : > { %2140 = vst.msk [vmem:[#allocation3 + $0xf8] sm:$0xf] %vm1476_vm2, %v2105_v1 }
 0x23b   : > { %v4458_v63 = vld [vmem:[#allocation3 + $0x138] sm:$0xf0] }
 0x23d   : > { %v1685_v27 = vpop.permute.xlu0 %1684  ;;  %v2418_v21 = vpop.permute.xlu1 %2417  ;;  %v4442_v20 = vld [vmem:[#allocation3 + $0xb8] sm:$0xf0] }
 0x23e   : > { %1722 = vst.msk [vmem:[#allocation3 + $0xcc] sm:$0xf] %vm1476_vm2, %v1685_v27  ;;  %v4108_v48 = vor.u32 %v4442_v20, %v4107_v55  ;;  %v4121_v16 = vld [vmem:[#allocation3 + $0xdc] sm:$0xf0]  ;;  %v4496_v20 = vld [vmem:[%s6425_s5 + $0x4] sm:$0xf0] }
 0x23f   : > { %2453 = vst.msk [vmem:[#allocation3 + $0xfc] sm:$0xf] %vm1476_vm2, %v2418_v21  ;;  %v6130_v22 = vpop.f32.mrf.mxu3  ;;  %v6159_v31 = vpop.f32.mrf.mxu1  ;;  %v4332_v0 = vor.u32 %v4496_v20, %v4331_v5  ;;  %v6205_v5 = vld [vmem:[%s6424_s4] ss:$0 sm:$0xff] }
 0x240   : > { %3283 = vmatmul.bf16.gmra.mxu1 %v4108_v48  ;;  %v4495_v48 = vld [vmem:[%s6425_s5 + $0x4] sm:$0xf] }
 0x241   : > { %v2424_v19 = vpop.permute.xlu2 %2423  ;;  %v6167_v55 = vpop.f32.mrf.mxu0  ;;  %v4336_v43 = vor.u32 %v4495_v48, %v4333_v18  ;;  %3511 = vmatpush.bf16.msra.mxu0 %v4332_v0  ;;  %v3169_v18 = vadd.f32 %v6205_v5, %v6042_v28 }
 0x242   : > { %2456 = vst.msk [vmem:[#allocation3 + $0x138] sm:$0xf] %vm1476_vm2, %v2424_v19  ;;  %v4147_v19 = vld [vmem:[#allocation3 + $0xf8] sm:$0xf] }
 0x243   : > { %3560 = vmatpush.bf16.msra.mxu1 %v4336_v43 }
 0x245   : > { %4325 = vmatmul.msk.bf16.gmra.mxu3 %vm441_vm0, %v4116_v60  ;;  %v2103_v42 = vpop.permute.xlu0 %2102  ;;  %v4444_v2 = vld [vmem:[#allocation3 + $0xcc] sm:$0xf]  ;;  %v4453_v60 = vld [vmem:[#allocation3 + $0x110] sm:$0xf0] }
 0x246   : > { %v1691_v39 = vpop.permute.xlu1 %1690  ;;  %2139 = vst.msk [vmem:[#allocation3 + $0xe4] sm:$0xf] %vm1476_vm2, %v2103_v42  ;;  %v4124_v52 = vor.u32 %v4444_v2, %v4121_v16  ;;  %v4450_v8 = vld [vmem:[#allocation3 + $0xfc] sm:$0xf]  ;;  %v4156_v42 = vor.u32 %v4453_v60, %v4155_v41 }
 0x247   : > { %1725 = vst.msk [vmem:[#allocation3 + $0x108] sm:$0xf] %vm1476_vm2, %v1691_v39  ;;  %v6146_v45 = vpop.f32.mrf.mxu3  ;;  %v4152_v35 = vor.u32 %v4450_v8, %v4149_v9  ;;  %v6181_v57 = vpop.f32.mrf.mxu1 }
 0x248   : > { %3239 = vmatmul.bf16.gmra.mxu0 %v4124_v52 }
 0x249   : > { %3342 = vmatmul.bf16.gmra.mxu2 %v4152_v35  ;;  %v2109_v46 = vpop.permute.xlu2 %2108  ;;  %v4169_v25 = vld [vmem:[#allocation3 + $0x134] sm:$0xf0]  ;;  %v6183_v23 = vpop.f32.mrf.mxu0 }
 0x24a   : > { %2142 = vst.msk [vmem:[#allocation3 + $0x120] sm:$0xf] %vm1476_vm2, %v2109_v46 }
 0x24d   : > { %v1689_v38 = vpop.permute.xlu0 %1688  ;;  %v4447_v33 = vld [vmem:[#allocation3 + $0xe0] sm:$0xf0] }
 0x24e   : > { %v2422_v15 = vpop.permute.xlu1 %2421  ;;  %1724 = vst.msk [vmem:[#allocation3 + $0xf4] sm:$0xf] %vm1476_vm2, %v1689_v38  ;;  %v4128_v34 = vor.u32 %v4447_v33, %v4127_v26  ;;  %v4141_v61 = vld [vmem:[#allocation3 + $0x104] sm:$0xf0] }
 0x24f   : > { %2455 = vst.msk [vmem:[#allocation3 + $0x124] sm:$0xf] %vm1476_vm2, %v2422_v15  ;;  %v6155_v32 = vpop.f32.mrf.mxu3  ;;  %v6189_v9 = vpop.f32.mrf.mxu1 }
 0x250   : > { %3288 = vmatmul.bf16.gmra.mxu1 %v4128_v34  ;;  %v4175_v34 = vld [vmem:[#allocation3 + $0x128] sm:$0xf] }
 0x251   : > { %v6191_v46 = vpop.f32.mrf.mxu0  ;;  %v4167_v38 = vld [vmem:[#allocation3 + $0x120] sm:$0xf]  ;;  %v4176_v10 = vor.u32 %v4458_v63, %v4175_v34 }
 0x255   : > { %4326 = vmatmul.msk.bf16.gmra.mxu3 %vm441_vm0, %v4136_v36  ;;  %v2107_v40 = vpop.permute.xlu0 %2106  ;;  %v4449_v4 = vld [vmem:[#allocation3 + $0xf4] sm:$0xf] }
 0x256   : > { %v1695_v37 = vpop.permute.xlu1 %1694  ;;  %2141 = vst.msk [vmem:[#allocation3 + $0x10c] sm:$0xf] %vm1476_vm2, %v2107_v40  ;;  %v4144_v11 = vor.u32 %v4449_v4, %v4141_v61  ;;  %v4455_v1 = vld [vmem:[#allocation3 + $0x124] sm:$0xf] }
 0x257   : > { %1727 = vst.msk [vmem:[#allocation3 + $0x130] sm:$0xf] %vm1476_vm2, %v1695_v37  ;;  %v4172_v21 = vor.u32 %v4455_v1, %v4169_v25  ;;  %v6196_v40 = vpop.f32.mrf.mxu1 }
 0x258   : > { %v6165_v27 = vpop.f32.mrf.mxu3  ;;  %3244 = vmatmul.bf16.gmra.mxu0 %v4144_v11 }
 0x259   : > { %3347 = vmatmul.bf16.gmra.mxu2 %v4172_v21  ;;  %v3167_v21 = vadd.f32 %v6205_v5, %v6031_v53 }
 0x25d   : > { %v1693_v50 = vpop.permute.xlu0 %1692  ;;  %v4452_v24 = vld [vmem:[#allocation3 + $0x108] sm:$0xf0] }
 0x25e   : > { %1726 = vst.msk [vmem:[#allocation3 + $0x11c] sm:$0xf] %vm1476_vm2, %v1693_v50  ;;  %v4148_v56 = vor.u32 %v4452_v24, %v4147_v19  ;;  %v4161_v16 = vld [vmem:[#allocation3 + $0x12c] sm:$0xf0] }
 0x260   : > { %v6179_v12 = vpop.f32.mrf.mxu3  ;;  %3293 = vmatmul.bf16.gmra.mxu1 %v4148_v56 }
 0x265   : > { %4327 = vmatmul.msk.bf16.gmra.mxu3 %vm441_vm0, %v4156_v42  ;;  %v2111_v39 = vpop.permute.xlu0 %2110  ;;  %v4454_v2 = vld [vmem:[#allocation3 + $0x11c] sm:$0xf] }
 0x266   : > { %2143 = vst.msk [vmem:[#allocation3 + $0x134] sm:$0xf] %vm1476_vm2, %v2111_v39  ;;  %v4164_v52 = vor.u32 %v4454_v2, %v4161_v16 }
 0x268   : > { %v6187_v8 = vpop.f32.mrf.mxu3  ;;  %3249 = vmatmul.bf16.gmra.mxu0 %v4164_v52 }
 0x26b   : > { %v3313_v35 = vpop.f32.mrf.mxu2 }
 0x26d   : > { %v4457_v15 = vld [vmem:[#allocation3 + $0x130] sm:$0xf0] }
 0x26e   : > { %v4168_v26 = vor.u32 %v4457_v15, %v4167_v38 }
 0x270   : > { %v6193_v33 = vpop.f32.mrf.mxu3  ;;  %3298 = vmatmul.bf16.gmra.mxu1 %v4168_v26  ;;  %v3172_v26 = vadd.f32 %v6205_v5, %v6054_v49 }
 0x273   : > { %v3315_v36 = vpop.f32.mrf.mxu2 }
 0x275   : > { %4328 = vmatmul.msk.bf16.gmra.mxu3 %vm441_vm0, %v4176_v10  ;;  %v3215_v37 = vpop.f32.mrf.mxu0  ;;  %v3174_v10 = vadd.f32 %v6205_v5, %v6071_v59 }
 0x276   : > { %v3216_v43 = vadd.f32 %v3215_v37, %v3167_v21 }
 0x278   : > { %v6198_v4 = vpop.f32.mrf.mxu3 }
 0x27c   : > { %v3318_v61 = vpop.f32.mrf.mxu2 }
 0x27d   : > { %v3217_v25 = vpop.f32.mrf.mxu0  ;;  %v3264_v11 = vpop.f32.mrf.mxu1 }
 0x27e   : > { %v3218_v19 = vadd.f32 %v3217_v25, %v3169_v18  ;;  %v3265_v24 = vadd.f32 %v3264_v11, %v3216_v43 }
 0x280   : > { %v6200_v1 = vpop.f32.mrf.mxu3  ;;  %v3314_v41 = vadd.f32 %v3313_v35, %v3265_v24 }
 0x284   : > { %v3320_v20 = vpop.f32.mrf.mxu2 }
 0x285   : > { %v3220_v48 = vpop.f32.mrf.mxu0  ;;  %v3266_v0 = vpop.f32.mrf.mxu1 }
 0x286   : > { %v3267_v56 = vadd.f32 %v3266_v0, %v3218_v19  ;;  %v3221_v37 = vadd.f32 %v3220_v48, %v3172_v26  ;;  %v3177_v48 = vadd.f32 %v6205_v5, %v6081_v3 }
 0x288   : > { %v3362_v50 = vpop.f32.mrf.mxu3  ;;  %v3316_v16 = vadd.f32 %v3315_v36, %v3267_v56 }
 0x289   : > { %v3363_v39 = vadd.f32 %v3362_v50, %v3314_v41 }
 0x28b   : > { %v3402_v53 = vmax.f32 %v3363_v39, 0.0 }
 0x28c   : > { %v3323_v2 = vpop.f32.mrf.mxu2 }
 0x28d   : > { %v3222_v60 = vpop.f32.mrf.mxu0  ;;  %v3269_v42 = vpop.f32.mrf.mxu1 }
 0x28e   : > { %v3223_v36 = vadd.f32 %v3222_v60, %v3174_v10  ;;  %v3270_v25 = vadd.f32 %v3269_v42, %v3221_v37  ;;  %v3179_v60 = vadd.f32 %v6205_v5, %v6090_v29  ;;  %v3182_v29 = vadd.f32 %v6205_v5, %v6106_v54 }
 0x290   : > { %v3364_v52 = vpop.f32.mrf.mxu3  ;;  %v3319_v0 = vadd.f32 %v3318_v61, %v3270_v25 }
 0x291   : > { %v3365_v38 = vadd.f32 %v3364_v52, %v3316_v16 }
 0x293   : > { %v3403_v15 = vmax.f32 %v3365_v38, 0.0 }
 0x294   : > { %v3325_v11 = vpop.f32.mrf.mxu2 }
 0x295   : > { %v3418_v34 = vpack.c.bf16 %v3403_v15, %v3402_v53  ;;  %v3225_v28 = vpop.f32.mrf.mxu0  ;;  %v3271_v63 = vpop.f32.mrf.mxu1 }
 0x296   : > { %v3272_v21 = vadd.f32 %v3271_v63, %v3223_v36  ;;  %v3226_v42 = vadd.f32 %v3225_v28, %v3177_v48 }
 0x297   : > { %4361 = vmatmul.msk.bf16.vlgmr.msra.gmra.mxu0 %vm441_vm0, %v3418_v34  ;;  %4369 = vmatmul.msk.bf16.vlgmr.msra.gmra.mxu1 %vm441_vm0, %v3418_v34 }
 0x298   : > { %v3367_v35 = vpop.f32.mrf.mxu3  ;;  %v3321_v50 = vadd.f32 %v3320_v20, %v3272_v21 }
 0x299   : > { %v3368_v49 = vadd.f32 %v3367_v35, %v3319_v0 }
 0x29b   : > { %v3404_v56 = vmax.f32 %v3368_v49, 0.0 }
 0x29c   : > { %v3328_v41 = vpop.f32.mrf.mxu2 }
 0x29d   : > { %v3227_v18 = vpop.f32.mrf.mxu0  ;;  %v3274_v43 = vpop.f32.mrf.mxu1 }
 0x29e   : > { %v3228_v20 = vadd.f32 %v3227_v18, %v3179_v60  ;;  %v3275_v38 = vadd.f32 %v3274_v43, %v3226_v42  ;;  %v3184_v18 = vadd.f32 %v6205_v5, %v6130_v22 }
 0x2a0   : > { %v3369_v19 = vpop.f32.mrf.mxu3  ;;  %v3324_v26 = vadd.f32 %v3323_v2, %v3275_v38 }
 0x2a1   : > { %v3370_v24 = vadd.f32 %v3369_v19, %v3321_v50 }
 0x2a3   : > { %v3405_v59 = vmax.f32 %v3370_v24, 0.0 }
 0x2a4   : > { %v3330_v15 = vpop.f32.mrf.mxu2 }
 0x2a5   : > { %v3419_v39 = vpack.c.bf16 %v3405_v59, %v3404_v56  ;;  %v3230_v16 = vpop.f32.mrf.mxu0  ;;  %v3276_v52 = vpop.f32.mrf.mxu1 }
 0x2a6   : > { %v3277_v53 = vadd.f32 %v3276_v52, %v3228_v20  ;;  %v3231_v43 = vadd.f32 %v3230_v16, %v3182_v29  ;;  %v3187_v16 = vadd.f32 %v6205_v5, %v6146_v45 }
 0x2a7   : > { %4362 = vmatmul.msk.bf16.gmra.mxu0 %vm441_vm0, %v3419_v39  ;;  %4370 = vmatmul.msk.bf16.gmra.mxu1 %vm441_vm0, %v3419_v39 }
 0x2a8   : > { %v3372_v61 = vpop.f32.mrf.mxu3  ;;  %v3326_v10 = vadd.f32 %v3325_v11, %v3277_v53  ;;  %v3189_v53 = vadd.f32 %v6205_v5, %v6155_v32  ;;  %v3192_v32 = vadd.f32 %v6205_v5, %v6165_v27 }
 0x2a9   : > { %v3373_v3 = vadd.f32 %v3372_v61, %v3324_v26 }
 0x2ab   : > { %v3406_v36 = vmax.f32 %v3373_v3, 0.0 }
 0x2ac   : > { %v3333_v2 = vpop.f32.mrf.mxu2 }
 0x2ad   : > { %v3232_v34 = vpop.f32.mrf.mxu0  ;;  %v3279_v63 = vpop.f32.mrf.mxu1 }
 0x2ae   : > { %v3233_v49 = vadd.f32 %v3232_v34, %v3184_v18  ;;  %v3280_v50 = vadd.f32 %v3279_v63, %v3231_v43 }
 0x2b0   : > { %v3374_v37 = vpop.f32.mrf.mxu3  ;;  %v3329_v24 = vadd.f32 %v3328_v41, %v3280_v50 }
 0x2b1   : > { %v3375_v35 = vadd.f32 %v3374_v37, %v3326_v10 }
 0x2b3   : > { %v3407_v25 = vmax.f32 %v3375_v35, 0.0 }
 0x2b4   : > { %v3335_v60 = vpop.f32.mrf.mxu2 }
 0x2b5   : > { %v3420_v28 = vpack.c.bf16 %v3407_v25, %v3406_v36  ;;  %v3235_v21 = vpop.f32.mrf.mxu0  ;;  %v3281_v0 = vpop.f32.mrf.mxu1 }
 0x2b6   : > { %v3282_v19 = vadd.f32 %v3281_v0, %v3233_v49  ;;  %v3236_v26 = vadd.f32 %v3235_v21, %v3187_v16  ;;  %v3197_v16 = vadd.f32 %v6205_v5, %v6187_v8 }
 0x2b7   : > { %4363 = vmatmul.msk.bf16.gmra.mxu0 %vm441_vm0, %v3420_v28  ;;  %4371 = vmatmul.msk.bf16.gmra.mxu1 %vm441_vm0, %v3420_v28 }
 0x2b8   : > { %v3377_v11 = vpop.f32.mrf.mxu3  ;;  %v3331_v48 = vadd.f32 %v3330_v15, %v3282_v19 }
 0x2b9   : > { %v3378_v54 = vadd.f32 %v3377_v11, %v3329_v24  ;;  %v3194_v11 = vadd.f32 %v6205_v5, %v6179_v12 }
 0x2bb   : > { %v3408_v42 = vmax.f32 %v3378_v54, 0.0 }
 0x2bc   : > { %v3338_v3 = vpop.f32.mrf.mxu2 }
 0x2bd   : > { %v3237_v56 = vpop.f32.mrf.mxu0  ;;  %v3284_v59 = vpop.f32.mrf.mxu1 }
 0x2be   : > { %v3238_v15 = vadd.f32 %v3237_v56, %v3189_v53  ;;  %v3285_v34 = vadd.f32 %v3284_v59, %v3236_v26 }
 0x2c0   : > { %v3379_v39 = vpop.f32.mrf.mxu3  ;;  %v3334_v10 = vadd.f32 %v3333_v2, %v3285_v34 }
 0x2c1   : > { %v3380_v52 = vadd.f32 %v3379_v39, %v3331_v48 }
 0x2c3   : > { %v3409_v22 = vmax.f32 %v3380_v52, 0.0 }
 0x2c4   : > { %v3340_v18 = vpop.f32.mrf.mxu2 }
 0x2c5   : > { %v3421_v61 = vpack.c.bf16 %v3409_v22, %v3408_v42  ;;  %v3240_v20 = vpop.f32.mrf.mxu0  ;;  %v3286_v38 = vpop.f32.mrf.mxu1 }
 0x2c6   : > { %v3287_v63 = vadd.f32 %v3286_v38, %v3238_v15  ;;  %v3241_v49 = vadd.f32 %v3240_v20, %v3192_v32  ;;  %v3199_v38 = vadd.f32 %v6205_v5, %v6193_v33 }
 0x2c7   : > { %4364 = vmatmul.msk.bf16.gmra.mxu0 %vm441_vm0, %v3421_v61  ;;  %4372 = vmatmul.msk.bf16.gmra.mxu1 %vm441_vm0, %v3421_v61 }
 0x2c8   : > { %v3382_v41 = vpop.f32.mrf.mxu3  ;;  %v3336_v36 = vadd.f32 %v3335_v60, %v3287_v63 }
 0x2c9   : > { %v3383_v45 = vadd.f32 %v3382_v41, %v3334_v10 }
 0x2cb   : > { %v3410_v28 = vmax.f32 %v3383_v45, 0.0 }
 0x2cc   : > { %v3343_v39 = vpop.f32.mrf.mxu2 }
 0x2cd   : > { %v3242_v37 = vpop.f32.mrf.mxu0  ;;  %v3289_v35 = vpop.f32.mrf.mxu1 }
 0x2ce   : > { %v3243_v19 = vadd.f32 %v3242_v37, %v3194_v11  ;;  %v3290_v24 = vadd.f32 %v3289_v35, %v3241_v49 }
 0x2d0   : > { %v3384_v25 = vpop.f32.mrf.mxu3  ;;  %v3339_v59 = vadd.f32 %v3338_v3, %v3290_v24 }
 0x2d1   : > { %v3385_v29 = vadd.f32 %v3384_v25, %v3336_v36 }
 0x2d3   : > { %v3411_v0 = vmax.f32 %v3385_v29, 0.0 }
 0x2d4   : > { %v3345_v34 = vpop.f32.mrf.mxu2 }
 0x2d5   : > { %v3422_v21 = vpack.c.bf16 %v3411_v0, %v3410_v28  ;;  %v3291_v43 = vpop.f32.mrf.mxu1  ;;  %v3245_v2 = vpop.f32.mrf.mxu0  ;;  %v3202_v28 = vadd.f32 %v6205_v5, %v6198_v4 }
 0x2d6   : > { %v3292_v56 = vadd.f32 %v3291_v43, %v3243_v19  ;;  %v3246_v53 = vadd.f32 %v3245_v2, %v3197_v16 }
 0x2d7   : > { %4365 = vmatmul.msk.bf16.gmra.mxu0 %vm441_vm0, %v3422_v21  ;;  %4373 = vmatmul.msk.bf16.gmra.mxu1 %vm441_vm0, %v3422_v21  ;;  %v3204_v21 = vadd.f32 %v6205_v5, %v6200_v1 }
 0x2d8   : > { %v3387_v50 = vpop.f32.mrf.mxu3  ;;  %v3341_v27 = vadd.f32 %v3340_v18, %v3292_v56 }
 0x2d9   : > { %v3388_v48 = vadd.f32 %v3387_v50, %v3339_v59 }
 0x2db   : > { %v3412_v22 = vmax.f32 %v3388_v48, 0.0 }
 0x2dc   : > { %v3348_v33 = vpop.f32.mrf.mxu2 }
 0x2dd   : > { %v3294_v54 = vpop.f32.mrf.mxu1  ;;  %v3247_v42 = vpop.f32.mrf.mxu0 }
 0x2de   : > { %v3248_v41 = vadd.f32 %v3247_v42, %v3199_v38  ;;  %v3295_v15 = vadd.f32 %v3294_v54, %v3246_v53  ;;  %v3635_v38 = vld [vmem:[%s4967_s20 + $0x8] sm:$0xff] }
 0x2e0   : > { %v3389_v52 = vpop.f32.mrf.mxu3  ;;  %v3344_v10 = vadd.f32 %v3343_v39, %v3295_v15 }
 0x2e1   : > { %v3390_v60 = vadd.f32 %v3389_v52, %v3341_v27  ;;  %v3434_v27 = vld [vmem:[%s6426_s6] sm:$0x3] }
 0x2e2   : > { %v6258_v39 = vperm.slane %v3434_v27, 0  ;;  %v6260_v52 = vperm.slane %v3434_v27, 1 }
 0x2e3   : > { %v3413_v12 = vmax.f32 %v3390_v60, 0.0 }
 0x2e4   : > { %v3350_v24 = vpop.f32.mrf.mxu2 }
 0x2e5   : > { %v3423_v61 = vpack.c.bf16 %v3413_v12, %v3412_v22  ;;  %v3296_v20 = vpop.f32.mrf.mxu1  ;;  %v3250_v3 = vpop.f32.mrf.mxu0 }
 0x2e6   : > { %v3297_v63 = vadd.f32 %v3296_v20, %v3248_v41  ;;  %v3251_v18 = vadd.f32 %v3250_v3, %v3202_v28  ;;  %v3634_v20 = vld [vmem:[%s4967_s20] sm:$0xff]  ;;  %v481_v28 = vadd.f32 %v6077_v51, %v4963_v58  ;;  %v483_v51 = vadd.f32 %v6087_v13, %v4963_v58 }
 0x2e7   : > { %4366 = vmatmul.msk.bf16.gmra.mxu0 %vm441_vm0, %v3423_v61  ;;  %4374 = vmatmul.msk.bf16.gmra.mxu1 %vm441_vm0, %v3423_v61  ;;  %v486_v13 = vadd.f32 %v6116_v14, %v4963_v58  ;;  %v488_v14 = vadd.f32 %v6135_v47, %v4963_v58  ;;  %v491_v47 = vadd.f32 %v6151_v30, %v4963_v58 }
 0x2e8   : > { %v3392_v26 = vpop.f32.mrf.mxu3  ;;  %v3346_v8 = vadd.f32 %v3345_v34, %v3297_v63  ;;  %v493_v30 = vadd.f32 %v6167_v55, %v4963_v58  ;;  %v496_v55 = vadd.f32 %v6183_v23, %v4963_v58  ;;  %v498_v23 = vadd.f32 %v6191_v46, %v4963_v58 }
 0x2e9   : > { %v3393_v35 = vadd.f32 %v3392_v26, %v3344_v10 }
 0x2eb   : > { %v3414_v25 = vmax.f32 %v3393_v35, 0.0  ;;  %v3637_v35 = vld [vmem:[%s4967_s20 + $0x18] sm:$0xff] }
 0x2ed   : > { %v3299_v37 = vpop.f32.mrf.mxu1  ;;  %v3252_v32 = vpop.f32.mrf.mxu0 }
 0x2ee   : > { %v3253_v49 = vadd.f32 %v3252_v32, %v3204_v21  ;;  %v3300_v2 = vadd.f32 %v3299_v37, %v3251_v18  ;;  %v3636_v37 = vld [vmem:[%s4967_s20 + $0x10] sm:$0xff] }
 0x2f0   : > { %v3394_v45 = vpop.f32.mrf.mxu3  ;;  %v3349_v19 = vadd.f32 %v3348_v33, %v3300_v2 }
 0x2f1   : > { %v3395_v36 = vadd.f32 %v3394_v45, %v3346_v8 }
 0x2f3   : > { %v3415_v29 = vmax.f32 %v3395_v36, 0.0 }
 0x2f5   : > { %v3424_v0 = vpack.c.bf16 %v3415_v29, %v3414_v25  ;;  %v3301_v43 = vpop.f32.mrf.mxu1 }
 0x2f6   : > { %v3302_v50 = vadd.f32 %v3301_v43, %v3253_v49 }
 0x2f7   : > { %4367 = vmatmul.msk.bf16.gmra.mxu0 %vm441_vm0, %v3424_v0  ;;  %4375 = vmatmul.msk.bf16.gmra.mxu1 %vm441_vm0, %v3424_v0  ;;  %v530_v0 = vadd.f32 %v6085_v44, %v4986_v6  ;;  %v532_v44 = vadd.f32 %v6114_v62, %v4986_v6  ;;  %v535_v62 = vadd.f32 %v6133_v17, %v4986_v6 }
 0x2f8   : > { %v3397_v11 = vpop.f32.mrf.mxu3  ;;  %v3351_v59 = vadd.f32 %v3350_v24, %v3302_v50  ;;  %v537_v17 = vadd.f32 %v6149_v7, %v4986_v6  ;;  %v540_v7 = vadd.f32 %v6159_v31, %v4986_v6  ;;  %v542_v31 = vadd.f32 %v6181_v57, %v4986_v6 }
 0x2f9   : > { %v3398_v56 = vadd.f32 %v3397_v11, %v3349_v19  ;;  %v545_v57 = vadd.f32 %v6189_v9, %v4986_v6  ;;  %v547_v9 = vadd.f32 %v6196_v40, %v4986_v6  ;;  %v3655_v6 = vld [vmem:[%s4967_s20 + $0xa8] sm:$0xff] }
 0x2fb   : > { %v3416_v48 = vmax.f32 %v3398_v56, 0.0 }
 0x300   : > { %v3399_v4 = vpop.f32.mrf.mxu3 }
 0x301   : > { %v3400_v54 = vadd.f32 %v3399_v4, %v3351_v59 }
 0x303   : > { %v3417_v1 = vmax.f32 %v3400_v54, 0.0 }
 0x305   : > { %v3425_v5 = vpack.c.bf16 %v3417_v1, %v3416_v48 }
 0x307   : > { %4368 = vmatmul.msk.bf16.gmra.mxu0 %vm441_vm0, %v3425_v5  ;;  %4376 = vmatmul.msk.bf16.gmra.mxu1 %vm441_vm0, %v3425_v5 }
 0x314   : > { %v3513_v60 = vpop.f32.mrf.mxu0  ;;  %v3562_v42 = vpop.f32.mrf.mxu1 }
 0x315   : > { %v3514_v22 = vadd.f32 %v3513_v60, %v6258_v39  ;;  %v3563_v12 = vadd.f32 %v3562_v42, %v6260_v52 }
 0x317   : > { %v3602_v16 = vmax.f32 %v3514_v22, 0.0  ;;  %v3603_v61 = vmax.f32 %v3563_v12, 0.0 }
 0x319   : > { %v3666_v53 = vadd.f32 %v3634_v20, %v3602_v16  ;;  %v3667_v26 = vadd.f32 %v3635_v38, %v3603_v61 }
 0x31b   : > { %3698 = vst [vmem:[%s4967_s20] sm:$0xff] %v3666_v53 }
 0x31c   : > { %3699 = vst [vmem:[%s4967_s20 + $0x8] sm:$0xff] %v3667_v26  ;;  %v3515_v41 = vpop.f32.mrf.mxu0  ;;  %v3564_v15 = vpop.f32.mrf.mxu1 }
 0x31d   : > { %v3516_v34 = vadd.f32 %v3515_v41, %v6258_v39  ;;  %v3565_v63 = vadd.f32 %v3564_v15, %v6260_v52 }
 0x31f   : > { %v3604_v3 = vmax.f32 %v3516_v34, 0.0  ;;  %v3605_v10 = vmax.f32 %v3565_v63, 0.0 }
 0x321   : > { %v3668_v8 = vadd.f32 %v3636_v37, %v3604_v3  ;;  %v3669_v45 = vadd.f32 %v3637_v35, %v3605_v10 }
 0x323   : > { %3700 = vst [vmem:[%s4967_s20 + $0x10] sm:$0xff] %v3668_v8 }
 0x324   : > { %3701 = vst [vmem:[%s4967_s20 + $0x18] sm:$0xff] %v3669_v45  ;;  %v3518_v36 = vpop.f32.mrf.mxu0  ;;  %v3567_v25 = vpop.f32.mrf.mxu1 }
 0x325   : > { %v3519_v29 = vadd.f32 %v3518_v36, %v6258_v39  ;;  %v3568_v33 = vadd.f32 %v3567_v25, %v6260_v52 }
 0x327   : > { %v3606_v32 = vmax.f32 %v3519_v29, 0.0  ;;  %v3607_v21 = vmax.f32 %v3568_v33, 0.0 }
 0x329   : > { %v3670_v18 = vadd.f32 %v3606_v32, %v481_v28  ;;  %v3671_v43 = vadd.f32 %v3607_v21, %v530_v0 }
 0x32b   : > { %3702 = vst [vmem:[%s4967_s20 + $0x20] sm:$0xff] %v3670_v18 }
 0x32c   : > { %3703 = vst [vmem:[%s4967_s20 + $0x28] sm:$0xff] %v3671_v43  ;;  %v3520_v11 = vpop.f32.mrf.mxu0  ;;  %v3569_v49 = vpop.f32.mrf.mxu1 }
 0x32d   : > { %v3521_v2 = vadd.f32 %v3520_v11, %v6258_v39  ;;  %v3570_v50 = vadd.f32 %v3569_v49, %v6260_v52 }
 0x32f   : > { %v3608_v19 = vmax.f32 %v3521_v2, 0.0  ;;  %v3609_v24 = vmax.f32 %v3570_v50, 0.0 }
 0x331   : > { %v3672_v56 = vadd.f32 %v3608_v19, %v483_v51  ;;  %v3673_v59 = vadd.f32 %v3609_v24, %v532_v44 }
 0x333   : > { %3704 = vst [vmem:[%s4967_s20 + $0x30] sm:$0xff] %v3672_v56 }
 0x334   : > { %3705 = vst [vmem:[%s4967_s20 + $0x38] sm:$0xff] %v3673_v59  ;;  %v3523_v4 = vpop.f32.mrf.mxu0  ;;  %v3572_v54 = vpop.f32.mrf.mxu1 }
 0x335   : > { %v3524_v48 = vadd.f32 %v3523_v4, %v6258_v39  ;;  %v3573_v1 = vadd.f32 %v3572_v54, %v6260_v52 }
 0x337   : > { %v3610_v5 = vmax.f32 %v3524_v48, 0.0  ;;  %v3611_v27 = vmax.f32 %v3573_v1, 0.0 }
 0x339   : > { %v3674_v60 = vadd.f32 %v3610_v5, %v486_v13  ;;  %v3675_v42 = vadd.f32 %v3611_v27, %v535_v62  ;;  %v3654_v5 = vld [vmem:[%s4967_s20 + $0xa0] sm:$0xff] }
 0x33b   : > { %3706 = vst [vmem:[%s4967_s20 + $0x40] sm:$0xff] %v3674_v60 }
 0x33c   : > { %3707 = vst [vmem:[%s4967_s20 + $0x48] sm:$0xff] %v3675_v42  ;;  %v3525_v22 = vpop.f32.mrf.mxu0  ;;  %v3574_v12 = vpop.f32.mrf.mxu1 }
 0x33d   : > { %v3526_v16 = vadd.f32 %v3525_v22, %v6258_v39  ;;  %v3575_v61 = vadd.f32 %v3574_v12, %v6260_v52 }
 0x33f   : > { %v3612_v20 = vmax.f32 %v3526_v16, 0.0  ;;  %v3613_v38 = vmax.f32 %v3575_v61, 0.0 }
 0x341   : > { %v3676_v53 = vadd.f32 %v3612_v20, %v488_v14  ;;  %v3677_v26 = vadd.f32 %v3613_v38, %v537_v17  ;;  %v3656_v14 = vld [vmem:[%s4967_s20 + $0xb0] sm:$0xff]  ;;  %v3657_v17 = vld [vmem:[%s4967_s20 + $0xb8] sm:$0xff] }
 0x343   : > { %3708 = vst [vmem:[%s4967_s20 + $0x50] sm:$0xff] %v3676_v53 }
 0x344   : > { %3709 = vst [vmem:[%s4967_s20 + $0x58] sm:$0xff] %v3677_v26  ;;  %v3528_v41 = vpop.f32.mrf.mxu0  ;;  %v3577_v15 = vpop.f32.mrf.mxu1 }
 0x345   : > { %v3529_v34 = vadd.f32 %v3528_v41, %v6258_v39  ;;  %v3578_v63 = vadd.f32 %v3577_v15, %v6260_v52 }
 0x347   : > { %v3614_v3 = vmax.f32 %v3529_v34, 0.0  ;;  %v3615_v10 = vmax.f32 %v3578_v63, 0.0 }
 0x349   : > { %v3678_v37 = vadd.f32 %v3614_v3, %v491_v47  ;;  %v3679_v35 = vadd.f32 %v3615_v10, %v540_v7  ;;  %v3658_v47 = vld [vmem:[%s4967_s20 + $0xc0] sm:$0xff]  ;;  %v3659_v7 = vld [vmem:[%s4967_s20 + $0xc8] sm:$0xff] }
 0x34b   : > { %3710 = vst [vmem:[%s4967_s20 + $0x60] sm:$0xff] %v3678_v37 }
 0x34c   : > { %3711 = vst [vmem:[%s4967_s20 + $0x68] sm:$0xff] %v3679_v35  ;;  %v3530_v8 = vpop.f32.mrf.mxu0  ;;  %v3579_v45 = vpop.f32.mrf.mxu1 }
 0x34d   : > { %v3531_v36 = vadd.f32 %v3530_v8, %v6258_v39  ;;  %v3580_v25 = vadd.f32 %v3579_v45, %v6260_v52 }
 0x34f   : > { %v3616_v29 = vmax.f32 %v3531_v36, 0.0  ;;  %v3617_v33 = vmax.f32 %v3580_v25, 0.0 }
 0x351   : > { %v3680_v28 = vadd.f32 %v3616_v29, %v493_v30  ;;  %v3681_v0 = vadd.f32 %v3617_v33, %v542_v31  ;;  %v3660_v30 = vld [vmem:[%s4967_s20 + $0xd0] sm:$0xff]  ;;  %v3661_v31 = vld [vmem:[%s4967_s20 + $0xd8] sm:$0xff] }
 0x353   : > { %3712 = vst [vmem:[%s4967_s20 + $0x70] sm:$0xff] %v3680_v28 }
 0x354   : > { %3713 = vst [vmem:[%s4967_s20 + $0x78] sm:$0xff] %v3681_v0  ;;  %v3533_v32 = vpop.f32.mrf.mxu0  ;;  %v3582_v21 = vpop.f32.mrf.mxu1 }
 0x355   : > { %v3534_v18 = vadd.f32 %v3533_v32, %v6258_v39  ;;  %v3583_v43 = vadd.f32 %v3582_v21, %v6260_v52 }
 0x357   : > { %v3618_v11 = vmax.f32 %v3534_v18, 0.0  ;;  %v3619_v49 = vmax.f32 %v3583_v43, 0.0 }
 0x359   : > { %v3682_v2 = vadd.f32 %v3618_v11, %v496_v55  ;;  %v3683_v50 = vadd.f32 %v3619_v49, %v545_v57  ;;  %v3662_v55 = vld [vmem:[%s4967_s20 + $0xe0] sm:$0xff]  ;;  %v3663_v57 = vld [vmem:[%s4967_s20 + $0xe8] sm:$0xff] }
 0x35b   : > { %3714 = vst [vmem:[%s4967_s20 + $0x80] sm:$0xff] %v3682_v2 }
 0x35c   : > { %3715 = vst [vmem:[%s4967_s20 + $0x88] sm:$0xff] %v3683_v50  ;;  %v3535_v51 = vpop.f32.mrf.mxu0  ;;  %v3584_v44 = vpop.f32.mrf.mxu1 }
 0x35d   : > { %v3536_v19 = vadd.f32 %v3535_v51, %v6258_v39  ;;  %v3585_v24 = vadd.f32 %v3584_v44, %v6260_v52 }
 0x35f   : > { %v3620_v56 = vmax.f32 %v3536_v19, 0.0  ;;  %v3621_v59 = vmax.f32 %v3585_v24, 0.0 }
 0x361   : > { %v3684_v4 = vadd.f32 %v3620_v56, %v498_v23  ;;  %v3685_v54 = vadd.f32 %v3621_v59, %v547_v9  ;;  %v3664_v23 = vld [vmem:[%s4967_s20 + $0xf0] sm:$0xff]  ;;  %v3665_v9 = vld [vmem:[%s4967_s20 + $0xf8] sm:$0xff] }
 0x363   : > { %3716 = vst [vmem:[%s4967_s20 + $0x90] sm:$0xff] %v3684_v4 }
 0x364   : > { %3717 = vst [vmem:[%s4967_s20 + $0x98] sm:$0xff] %v3685_v54  ;;  %v3538_v48 = vpop.f32.mrf.mxu0  ;;  %v3587_v1 = vpop.f32.mrf.mxu1 }
 0x365   : > { %v3539_v13 = vadd.f32 %v3538_v48, %v6258_v39  ;;  %v3588_v62 = vadd.f32 %v3587_v1, %v6260_v52 }
 0x367   : > { %v3622_v58 = vmax.f32 %v3539_v13, 0.0  ;;  %v3623_v46 = vmax.f32 %v3588_v62, 0.0 }
 0x369   : > { %v3686_v40 = vadd.f32 %v3654_v5, %v3622_v58  ;;  %v3687_v27 = vadd.f32 %v3655_v6, %v3623_v46 }
 0x36b   : > { %3718 = vst [vmem:[%s4967_s20 + $0xa0] sm:$0xff] %v3686_v40 }
 0x36c   : > { %3719 = vst [vmem:[%s4967_s20 + $0xa8] sm:$0xff] %v3687_v27  ;;  %v3540_v60 = vpop.f32.mrf.mxu0  ;;  %v3589_v42 = vpop.f32.mrf.mxu1 }
 0x36d   : > { %v3541_v22 = vadd.f32 %v3540_v60, %v6258_v39  ;;  %v3590_v12 = vadd.f32 %v3589_v42, %v6260_v52 }
 0x36f   : > { %v3624_v16 = vmax.f32 %v3541_v22, 0.0  ;;  %v3625_v61 = vmax.f32 %v3590_v12, 0.0 }
 0x371   : > { %v3688_v20 = vadd.f32 %v3656_v14, %v3624_v16  ;;  %v3689_v38 = vadd.f32 %v3657_v17, %v3625_v61 }
 0x373   : > { %3720 = vst [vmem:[%s4967_s20 + $0xb0] sm:$0xff] %v3688_v20 }
 0x374   : > { %3721 = vst [vmem:[%s4967_s20 + $0xb8] sm:$0xff] %v3689_v38  ;;  %v3543_v53 = vpop.f32.mrf.mxu0  ;;  %v3592_v26 = vpop.f32.mrf.mxu1 }
 0x375   : > { %v3544_v41 = vadd.f32 %v3543_v53, %v6258_v39  ;;  %v3593_v15 = vadd.f32 %v3592_v26, %v6260_v52 }
 0x377   : > { %v3626_v34 = vmax.f32 %v3544_v41, 0.0  ;;  %v3627_v63 = vmax.f32 %v3593_v15, 0.0 }
 0x379   : > { %v3690_v3 = vadd.f32 %v3658_v47, %v3626_v34  ;;  %v3691_v10 = vadd.f32 %v3659_v7, %v3627_v63 }
 0x37b   : > { %3722 = vst [vmem:[%s4967_s20 + $0xc0] sm:$0xff] %v3690_v3 }
 0x37c   : > { %3723 = vst [vmem:[%s4967_s20 + $0xc8] sm:$0xff] %v3691_v10  ;;  %v3545_v37 = vpop.f32.mrf.mxu0  ;;  %v3594_v35 = vpop.f32.mrf.mxu1 }
 0x37d   : > { %v3546_v8 = vadd.f32 %v3545_v37, %v6258_v39  ;;  %v3595_v45 = vadd.f32 %v3594_v35, %v6260_v52 }
 0x37f   : > { %v3628_v36 = vmax.f32 %v3546_v8, 0.0  ;;  %v3629_v25 = vmax.f32 %v3595_v45, 0.0 }
 0x381   : > { %v3692_v29 = vadd.f32 %v3660_v30, %v3628_v36  ;;  %v3693_v33 = vadd.f32 %v3661_v31, %v3629_v25 }
 0x383   : > { %3724 = vst [vmem:[%s4967_s20 + $0xd0] sm:$0xff] %v3692_v29 }
 0x384   : > { %3725 = vst [vmem:[%s4967_s20 + $0xd8] sm:$0xff] %v3693_v33  ;;  %v3548_v28 = vpop.f32.mrf.mxu0  ;;  %v3597_v0 = vpop.f32.mrf.mxu1 }
 0x385   : > { %v3549_v32 = vadd.f32 %v3548_v28, %v6258_v39  ;;  %v3598_v21 = vadd.f32 %v3597_v0, %v6260_v52 }
 0x387   : > { %v3630_v18 = vmax.f32 %v3549_v32, 0.0  ;;  %v3631_v43 = vmax.f32 %v3598_v21, 0.0 }
 0x389   : > { %v3694_v11 = vadd.f32 %v3662_v55, %v3630_v18  ;;  %v3695_v49 = vadd.f32 %v3663_v57, %v3631_v43 }
 0x38b   : > { %3726 = vst [vmem:[%s4967_s20 + $0xe0] sm:$0xff] %v3694_v11 }
 0x38c   : > { %3727 = vst [vmem:[%s4967_s20 + $0xe8] sm:$0xff] %v3695_v49  ;;  %v3550_v2 = vpop.f32.mrf.mxu0  ;;  %v3599_v50 = vpop.f32.mrf.mxu1 }
 0x38d   : > { %v3551_v51 = vadd.f32 %v3550_v2, %v6258_v39  ;;  %v3600_v44 = vadd.f32 %v3599_v50, %v6260_v52 }
 0x38f   : > { %v3632_v19 = vmax.f32 %v3551_v51, 0.0  ;;  %v3633_v24 = vmax.f32 %v3600_v44, 0.0 }
 0x391   : > { %v3696_v56 = vadd.f32 %v3664_v23, %v3632_v19  ;;  %v3697_v59 = vadd.f32 %v3665_v9, %v3633_v24 }
 0x393   : > { %3728 = vst [vmem:[%s4967_s20 + $0xf0] sm:$0xff] %v3696_v56 }
 0x394   : > { %3729 = vst [vmem:[%s4967_s20 + $0xf8] sm:$0xff] %v3697_v59 }
 0x395   : > { %4618 = shalt.err (!%p4615_p11)
}
 0x396   : > { %s4688_s22 = smov 256   ;;  %s4689_s20 = smov 16  }
 0x397   : > { %4516 = dma.vmem_to_hbm [thread:$0]  (%p4781_p3), %s3747_s18, 4096, %s3749_s9, %s3731_s10, %s4688_s22, %s4688_s22, %s4689_s20  }
 0x398 PF: > { %p4522_p12 = scmp.ge.s32.totalorder %s4685_s8, 2  ;;  %s3763_s12 = sand.u32 1, %s4657_s24  }
 0x399   : > { %s3764_s13 = scalar_lea.sflag [#allocation5], %s3763_s12 }
 0x39a   : > { %p4519_p13 = pnand %p4522_p12, %p4790_p8 }
 0x39c   : > { %p4520_p0 = pneg %p4519_p13 }
 0x39e   : > { %4652 = dma.done.wait (%p4520_p0), %s3764_s13, 4096  }
 0x39f   : > { %4654 = vsyncadd (%p4520_p0), %s3764_s13, 4294963200  ;;  %s20_s8 = sadd.s32 1, %s4685_s8   ;;  %s6450_s14 = sld [smem:[#allocation7_spill]] }
 0x3a0   : > { %p17_p1 = scmp.ge.s32.totalorder %s20_s8, 6   ;;  %s6451_s18 = sld [smem:[#allocation8_spill]] }
 0x3a1   : > { %s6452_s24 = smov %s4661_s25  ;;  %s6453_s25 = smov %s4665_s26 }
 0x3a2   : > { %s6454_s26 = smov %s4799_s19  ;;  %s6455_s27 = smov %s4677_s29 }
 0x3a3   : > { %s6456_s28 = smov %s4681_s30  ;;  %19 = sbr.rel (!%p17_p1) target bundleno = 5 (0x5), region = 89 }
 0x3a5   : > { %s6457_s29 = smov %s6450_s14 }
 0x3a6   : > { %s6458_s30 = smov %s6451_s18 }
 0x3a8   :  { %3770 = vsyncpa [#allocation5], 1 }
 0x3a9   :  { %3772 = vsyncpa [#allocation5 + $0x1], 1 }

</bundles_post_ra>
